<compile_context>
chip_gen: v7x
topology: tpu7x:2x2x1
jax: 0.10.0
libtpu: 0.0.40
codegen_flags: <defaults>
</compile_context>

<pallas_src>
import functools
import math

import jax
import jax.numpy as jnp
from jax import lax
from jax.experimental import pallas as pl
from jax.experimental.pallas import tpu as pltpu


def _round_up(n, m):
    return ((n + m - 1) // m) * m


def _choose_tc(t_valid, cap=128):
    """Timesteps per grid step: prefer a divisor of t_valid (no time mask)."""
    if t_valid <= cap:
        return t_valid
    for c in range(cap, cap // 2, -1):
        if t_valid % c == 0:
            return c
    return cap  # fall back to masking the padded tail


# -----------------------------------------------------------------------------
# Fused multi-layer GRU + readout kernel
# -----------------------------------------------------------------------------
def _fused_gru_kernel(*args, hidden, bsz, tc, t_valid, n_layer, unroll):
    """One time block (tc steps) of ALL GRU layers + (last block) readout.

    args layout:
      [x_block,
       (w_ih_t, w_hh_t, b_ih_folded, b_hh_n) * n_layer,
       w_out, b_out,                      # inputs
       pred_ref,                          # output
       gi_scratch, seq_scratch, h_scratch]  # VMEM scratch
    """
    x_ref = args[0]
    w_refs = args[1:1 + 4 * n_layer]
    wout_ref = args[1 + 4 * n_layer]
    bout_ref = args[2 + 4 * n_layer]
    pred_ref = args[3 + 4 * n_layer]
    gi_scratch, seq_scratch, h_scratch = args[4 + 4 * n_layer:]

    blk = pl.program_id(0)
    H = hidden
    mask_needed = (t_valid % tc) != 0  # static: only if the time axis was padded

    @pl.when(blk == 0)
    def _init():
        h_scratch[...] = jnp.zeros_like(h_scratch)

    for l in range(n_layer):
        wih = w_refs[4 * l][...]
        whh = w_refs[4 * l + 1][...]
        bih = w_refs[4 * l + 2][...]          # b_ih with r/z slices of b_hh folded in
        bhhn = w_refs[4 * l + 3][...]         # (1, H) n-gate slice of b_hh
        last_layer = (l == n_layer - 1)

        # (1) Hoisted, batched input projection for the whole time block:
        #     one (tc*B, D_in) @ (D_in, 3H) MXU matmul. The block input is fully
        #     consumed here, so the next layer may overwrite seq_scratch in place.
        inp = x_ref[...] if l == 0 else seq_scratch[...]
        gi_scratch[...] = (
            jnp.dot(inp, wih, preferred_element_type=jnp.float32) + bih)

        h = h_scratch[l]

        # (2) Recurrence over the tc timesteps of this block; only h @ W_hh
        #     (plus the gate nonlinearities) stays on the serial chain.
        def step(i, h, whh=whh, bhhn=bhhn, last_layer=last_layer):
            if isinstance(i, int):
                start = i * bsz
            else:
                start = pl.multiple_of(i * bsz, bsz)
            gi_t = gi_scratch[pl.ds(start, bsz), :]                     # (B, 3H)
            gh = jnp.dot(h, whh, preferred_element_type=jnp.float32)   # (B, 3H)
            rz = jax.nn.sigmoid(gi_t[:, :2 * H] + gh[:, :2 * H])       # one EUP pass
            r = rz[:, :H]
            z = rz[:, H:]
            n = jnp.tanh(gi_t[:, 2 * H:] + r * (gh[:, 2 * H:] + bhhn))
            h_new = (1.0 - z) * n + z * h
            if mask_needed:
                h_new = jnp.where(blk * tc + i < t_valid, h_new, h)
            if not last_layer:
                seq_scratch[pl.ds(start, bsz), :] = h_new
            return h_new

        if unroll >= tc:
            for i in range(tc):
                h = step(i, h)
        else:
            h = lax.fori_loop(0, tc, step, h, unroll=unroll)

        h_scratch[l] = h

    # (3) Fused linear readout on the final hidden state, emitted once.
    @pl.when(blk == pl.num_programs(0) - 1)
    def _readout():
        pred_ref[...] = (
            jnp.dot(h_scratch[n_layer - 1], wout_ref[...],
                    preferred_element_type=jnp.float32)
            + bout_ref[...]).astype(pred_ref.dtype)


def fused_gru_forward(x, padded_params, *, bsz, tc, t_valid, single_buffer_weights):
    """x: (T_pad*bsz, D_in0) time-major flattened -> pred (bsz, D_out_pad)."""
    rows, d_in0 = x.shape
    gru = padded_params["gru"]
    n_layer = len(gru)
    h_pad = gru[0]["w_hh_t"].shape[0]
    wout = padded_params["readout_w_t"]
    bout = padded_params["readout_b"]
    d_out = wout.shape[1]
    n_blk = rows // (tc * bsz)

    buffered_cls = getattr(pl, "Buffered", None)
    use_single = bool(single_buffer_weights and buffered_cls is not None)

    def const_spec(shape):
        # Time-invariant operand: constant index_map; single-buffer if possible.
        if use_single:
            return pl.BlockSpec(shape, lambda t: (0, 0),
                                pipeline_mode=buffered_cls(1))
        return pl.BlockSpec(shape, lambda t: (0, 0))

    in_specs = [pl.BlockSpec((tc * bsz, d_in0), lambda t: (t, 0))]
    operands = [x]
    for lp in gru:
        for name in ("w_ih_t", "w_hh_t", "b_ih", "b_hhn"):
            arr = lp[name]
            in_specs.append(const_spec(arr.shape))
            operands.append(arr)
    in_specs.append(const_spec(wout.shape))
    in_specs.append(const_spec(bout.shape))
    operands.append(wout)
    operands.append(bout)

    # Bound the unroll of the per-timestep loop: full unroll only while the
    # live set (gh/r/z/n at (bsz, H_pad)) comfortably fits the 64-vreg file.
    unroll = tc if (tc <= 32 and h_pad <= 256) else 8

    # Explicit VMEM budget (weights x buffer count + activations/scratch) + margin.
    wbuf = 1 if use_single else 2
    weight_bytes = sum(int(math.prod(a.shape)) for a in operands[1:]) * 4 * wbuf
    act_bytes = 4 * (2 * tc * bsz * d_in0        # x block, double-buffered
                     + tc * bsz * 3 * h_pad      # gi scratch
                     + tc * bsz * h_pad          # seq scratch
                     + n_layer * bsz * h_pad     # hidden states
                     + 2 * bsz * d_out)          # pred
    vmem_limit = int(min(max((weight_bytes + act_bytes) * 3 // 2 + (4 << 20),
                             32 << 20), 100 << 20))

    kernel = functools.partial(_fused_gru_kernel, hidden=h_pad, bsz=bsz,
                               tc=tc, t_valid=t_valid, n_layer=n_layer,
                               unroll=unroll)

    return pl.pallas_call(
        kernel,
        out_shape=jax.ShapeDtypeStruct((bsz, d_out), jnp.float32),
        grid_spec=pltpu.PrefetchScalarGridSpec(
            num_scalar_prefetch=0,
            grid=(n_blk,),
            in_specs=in_specs,
            out_specs=pl.BlockSpec((bsz, d_out), lambda t: (0, 0)),
            scratch_shapes=[
                pltpu.VMEM((tc * bsz, 3 * h_pad), jnp.float32),   # gi staging
                pltpu.VMEM((tc * bsz, h_pad), jnp.float32),       # inter-layer seq
                pltpu.VMEM((n_layer, bsz, h_pad), jnp.float32),   # hidden states
            ],
        ),
        compiler_params=pltpu.CompilerParams(
            dimension_semantics=("arbitrary",),
            vmem_limit_bytes=vmem_limit),
    )(*operands)


# -----------------------------------------------------------------------------
# Params (PyTorch-equivalent, unpadded) + padding/folding to TPU-friendly layout
# -----------------------------------------------------------------------------
def init_params(key, n_dims, n_embd, n_layer):
    """Deterministic init matching PyTorch shapes: U(-1/sqrt(H), 1/sqrt(H))."""
    params = {"gru": []}
    bound = 1.0 / jnp.sqrt(jnp.float32(n_embd))
    for layer in range(n_layer):
        d_in = n_dims if layer == 0 else n_embd
        key, k1, k2, k3, k4 = jax.random.split(key, 5)
        params["gru"].append({
            # stored pre-transposed for right-multiplication: x @ W, gates [r,z,n]
            "w_ih_t": jax.random.uniform(k1, (d_in, 3 * n_embd), jnp.float32,
                                         -bound, bound),
            "w_hh_t": jax.random.uniform(k2, (n_embd, 3 * n_embd), jnp.float32,
                                         -bound, bound),
            "b_ih": jax.random.uniform(k3, (1, 3 * n_embd), jnp.float32,
                                       -bound, bound),
            "b_hh": jax.random.uniform(k4, (1, 3 * n_embd), jnp.float32,
                                       -bound, bound),
        })
    key, k1, k2 = jax.random.split(key, 3)
    params["readout_w_t"] = jax.random.uniform(k1, (n_embd, n_dims),
                                               jnp.float32, -bound, bound)
    params["readout_b"] = jax.random.uniform(k2, (1, n_dims),
                                             jnp.float32, -bound, bound)
    return params


def pad_params(params, n_dims, n_embd):
    """Pad hidden (lane) dims to multiples of 128 gate-block by gate-block and
    fold the r/z slices of b_hh into b_ih (the n-gate slice stays separate,
    since PyTorch computes n = tanh(i_n + b_in + r*(W_hn h + b_hn)))."""
    h = n_embd
    h_pad = _round_up(h, 128)
    d_out_pad = _round_up(n_dims, 128)

    def pad_gate_mat(w, rows_pad):
        rows = w.shape[0]
        w3 = w.reshape(rows, 3, h)
        w3 = jnp.pad(w3, ((0, rows_pad - rows), (0, 0), (0, h_pad - h)))
        return w3.reshape(rows_pad, 3 * h_pad)

    out = {"gru": []}
    for layer, lp in enumerate(params["gru"]):
        rows_ih = lp["w_ih_t"].shape[0]
        rows_ih_pad = rows_ih if layer == 0 else h_pad   # layer-0 input stays n_dims
        b_ih_folded = lp["b_ih"].at[:, :2 * h].add(lp["b_hh"][:, :2 * h])
        b_hh_n = jnp.pad(lp["b_hh"][:, 2 * h:], ((0, 0), (0, h_pad - h)))
        out["gru"].append({
            "w_ih_t": pad_gate_mat(lp["w_ih_t"], rows_ih_pad),
            "w_hh_t": pad_gate_mat(lp["w_hh_t"], h_pad),
            "b_ih": pad_gate_mat(b_ih_folded, 1),
            "b_hhn": b_hh_n,
        })
    out["readout_w_t"] = jnp.pad(params["readout_w_t"],
                                 ((0, h_pad - h), (0, d_out_pad - n_dims)))
    out["readout_b"] = jnp.pad(params["readout_b"],
                               ((0, 0), (0, d_out_pad - n_dims)))
    return out


# -----------------------------------------------------------------------------
# Forward pass (== GRUModel.forward(data, o_vars) -> (pred, gt))
# -----------------------------------------------------------------------------
@functools.partial(jax.jit, static_argnames=("single_buffer_weights",))
def gru_model_forward(data, padded_params, *, single_buffer_weights=True):
    """data: (B, T, n_dims), batch_first like PyTorch."""
    B, T, n_dims = data.shape
    if T < 2:
        raise ValueError("GRUModel forward requires T >= 2 (GRU input is data[:, :-1]).")
    t_valid = T - 1
    b_pad = _round_up(B, 8)
    tc = _choose_tc(t_valid, cap=128)
    t_pad = _round_up(t_valid, tc)

    # Time-major, batch-padded, flattened-to-2D layer-0 input (small copy).
    # TODO(synk): for very large T*B this transpose/pad could be folded into the
    # first layer's BlockSpec index_map instead of a wrapper-side copy.
    x = jnp.transpose(data[:, :-1, :], (1, 0, 2))                 # (T-1, B, D)
    x = jnp.pad(x, ((0, t_pad - t_valid), (0, b_pad - B), (0, 0)))
    x = x.reshape(t_pad * b_pad, n_dims)

    pred_pad = fused_gru_forward(x, padded_params, bsz=b_pad, tc=tc,
                                 t_valid=t_valid,
                                 single_buffer_weights=single_buffer_weights)

    pred = pred_pad[:B, :n_dims]
    gt = data[:, -1, :]
    return pred, gt


# Pure-JAX reference (unpadded params) for verification ----------------------
def _reference_forward(data, params):
    x = jnp.transpose(data[:, :-1, :], (1, 0, 2))
    for lp in params["gru"]:
        H = lp["w_hh_t"].shape[0]
        h = jnp.zeros((x.shape[1], H), jnp.float32)

        def step(h, xt, lp=lp, H=H):
            gi = xt @ lp["w_ih_t"] + lp["b_ih"]
            gh = h @ lp["w_hh_t"] + lp["b_hh"]
            r = jax.nn.sigmoid(gi[:, :H] + gh[:, :H])
            z = jax.nn.sigmoid(gi[:, H:2 * H] + gh[:, H:2 * H])
            n = jnp.tanh(gi[:, 2 * H:] + r * gh[:, 2 * H:])
            h_new = (1 - z) * n + z * h
            return h_new, h_new

        _, x = jax.lax.scan(step, h, x)
    pred = x[-1] @ params["readout_w_t"] + params["readout_b"]
    return pred, data[:, -1, :]


if __name__ == "__main__":
    # Small shapes consistent with the module's forward.
    B, T, n_dims, n_embd, n_layer = 2, 8, 4, 32, 2

    key = jax.random.PRNGKey(0)
    key, dkey = jax.random.split(key)
    data = jax.random.normal(dkey, (B, T, n_dims), dtype=jnp.float32)
    params = init_params(key, n_dims, n_embd, n_layer)
    padded = pad_params(params, n_dims, n_embd)

    try:
        pred, gt = gru_model_forward(data, padded, single_buffer_weights=True)
        pred, gt = jax.block_until_ready((pred, gt))
    except Exception:
        # Fallback if single-buffered (pl.Buffered(1)) weight specs are not
        # supported by the running Pallas build: double-buffered weights.
        pred, gt = gru_model_forward(data, padded, single_buffer_weights=False)
        pred, gt = jax.block_until_ready((pred, gt))

    ref_pred, ref_gt = _reference_forward(data, params)
    assert pred.shape == (B, n_dims) and gt.shape == (B, n_dims)
    assert jnp.allclose(pred, ref_pred, atol=1e-4, rtol=1e-4)
    assert jnp.allclose(gt, ref_gt)

    print("KERNEL_OK")
</pallas_src>

<mosaic_0001>
module attributes {stable_mosaic.version = 11 : i64} {
  func.func @_fused_gru_kernel(%arg0: i32, %arg1: memref<56x4xf32, #tpu.memory_space<vmem>>, %arg2: memref<4x384xf32, #tpu.memory_space<vmem>>, %arg3: memref<128x384xf32, #tpu.memory_space<vmem>>, %arg4: memref<1x384xf32, #tpu.memory_space<vmem>>, %arg5: memref<1x128xf32, #tpu.memory_space<vmem>>, %arg6: memref<128x384xf32, #tpu.memory_space<vmem>>, %arg7: memref<128x384xf32, #tpu.memory_space<vmem>>, %arg8: memref<1x384xf32, #tpu.memory_space<vmem>>, %arg9: memref<1x128xf32, #tpu.memory_space<vmem>>, %arg10: memref<128x128xf32, #tpu.memory_space<vmem>>, %arg11: memref<1x128xf32, #tpu.memory_space<vmem>>, %arg12: memref<8x128xf32, #tpu.memory_space<vmem>>, %arg13: memref<56x384xf32, #tpu.memory_space<vmem>>, %arg14: memref<56x128xf32, #tpu.memory_space<vmem>>, %arg15: memref<2x8x128xf32, #tpu.memory_space<vmem>>) attributes {dimension_semantics = [#tpu.dimension_semantics<arbitrary>], iteration_bounds = array<i64: 1>, scalar_prefetch = 0 : i64, scratch_operands = 3 : i64, tpu.core_type = #tpu.core_type<tc>, window_params = [{transform_indices = @transform_0, window_bounds = array<i64: 56, 4>}, {pipeline_mode = #tpu.pipeline_mode<synchronous>, transform_indices = @transform_1, window_bounds = array<i64: 4, 384>}, {pipeline_mode = #tpu.pipeline_mode<synchronous>, transform_indices = @transform_2, window_bounds = array<i64: 128, 384>}, {pipeline_mode = #tpu.pipeline_mode<synchronous>, transform_indices = @transform_3, window_bounds = array<i64: 1, 384>}, {pipeline_mode = #tpu.pipeline_mode<synchronous>, transform_indices = @transform_4, window_bounds = array<i64: 1, 128>}, {pipeline_mode = #tpu.pipeline_mode<synchronous>, transform_indices = @transform_5, window_bounds = array<i64: 128, 384>}, {pipeline_mode = #tpu.pipeline_mode<synchronous>, transform_indices = @transform_6, window_bounds = array<i64: 128, 384>}, {pipeline_mode = #tpu.pipeline_mode<synchronous>, transform_indices = @transform_7, window_bounds = array<i64: 1, 384>}, {pipeline_mode = #tpu.pipeline_mode<synchronous>, transform_indices = @transform_8, window_bounds = array<i64: 1, 128>}, {pipeline_mode = #tpu.pipeline_mode<synchronous>, transform_indices = @transform_9, window_bounds = array<i64: 128, 128>}, {pipeline_mode = #tpu.pipeline_mode<synchronous>, transform_indices = @transform_10, window_bounds = array<i64: 1, 128>}, {pipeline_mode = #tpu.pipeline_mode<synchronous>, transform_indices = @transform_11, window_bounds = array<i64: 8, 128>}]} {
    %c0_i32 = arith.constant 0 : i32
    %0 = arith.cmpi eq, %arg0, %c0_i32 : i32
    %1 = arith.extui %0 : i1 to i32
    %c0_i32_0 = arith.constant 0 : i32
    %2 = arith.cmpi ne, %1, %c0_i32_0 : i32
    scf.if %2 {
      %cst_116 = arith.constant 0.000000e+00 : f32
      %377 = vector.broadcast %cst_116 : f32 to vector<2x8x128xf32>
      %c0_117 = arith.constant 0 : index
      %c0_118 = arith.constant 0 : index
      %c0_119 = arith.constant 0 : index
      %378 = vector.load %arg15[%c0_117, %c0_118, %c0_119] : memref<2x8x128xf32, #tpu.memory_space<vmem>>, vector<2x8x128xf32>
      tpu.vector_store %arg15[%c0_117, %c0_118, %c0_119], %377 {strides = array<i32>} : memref<2x8x128xf32, #tpu.memory_space<vmem>>, vector<2x8x128xf32>,
    } else {
    }
    %c0 = arith.constant 0 : index
    %c0_1 = arith.constant 0 : index
    %3 = vector.load %arg2[%c0, %c0_1] : memref<4x384xf32, #tpu.memory_space<vmem>>, vector<4x384xf32>
    %c0_2 = arith.constant 0 : index
    %c0_3 = arith.constant 0 : index
    %4 = vector.load %arg3[%c0_2, %c0_3] : memref<128x384xf32, #tpu.memory_space<vmem>>, vector<128x384xf32>
    %c0_4 = arith.constant 0 : index
    %c0_5 = arith.constant 0 : index
    %5 = vector.load %arg4[%c0_4, %c0_5] : memref<1x384xf32, #tpu.memory_space<vmem>>, vector<1x384xf32>
    %c0_6 = arith.constant 0 : index
    %c0_7 = arith.constant 0 : index
    %6 = vector.load %arg5[%c0_6, %c0_7] : memref<1x128xf32, #tpu.memory_space<vmem>>, vector<1x128xf32>
    %c0_8 = arith.constant 0 : index
    %c0_9 = arith.constant 0 : index
    %7 = vector.load %arg1[%c0_8, %c0_9] : memref<56x4xf32, #tpu.memory_space<vmem>>, vector<56x4xf32>
    %cst = arith.constant dense<0.000000e+00> : vector<56x384xf32>
    %8 = tpu.matmul %7, %3, %cst {dimension_numbers = #tpu.dot_dimension_numbers<[1], [0], [0], [1], [0, 0, 1, 1], [], []>} : vector<56x4xf32>, vector<4x384xf32>, vector<56x384xf32> -> vector<56x384xf32>
    %9 = vector.broadcast %5 : vector<1x384xf32> to vector<56x384xf32>
    %10 = arith.addf %8, %9 : vector<56x384xf32>
    %c0_10 = arith.constant 0 : index
    %c0_11 = arith.constant 0 : index
    %11 = vector.load %arg13[%c0_10, %c0_11] : memref<56x384xf32, #tpu.memory_space<vmem>>, vector<56x384xf32>
    tpu.vector_store %arg13[%c0_10, %c0_11], %10 {strides = array<i32>} : memref<56x384xf32, #tpu.memory_space<vmem>>, vector<56x384xf32>,
    %c0_12 = arith.constant 0 : index
    %c0_13 = arith.constant 0 : index
    %c0_14 = arith.constant 0 : index
    %12 = vector.load %arg15[%c0_12, %c0_13, %c0_14] : memref<2x8x128xf32, #tpu.memory_space<vmem>>, vector<1x8x128xf32>
    %13 = vector.shape_cast %12 : vector<1x8x128xf32> to vector<8x128xf32>
    %c0_15 = arith.constant 0 : index
    %c0_16 = arith.constant 0 : index
    %14 = vector.load %arg13[%c0_15, %c0_16] : memref<56x384xf32, #tpu.memory_space<vmem>>, vector<8x384xf32>
    %cst_17 = arith.constant dense<0.000000e+00> : vector<8x384xf32>
    %15 = tpu.matmul %13, %4, %cst_17 {dimension_numbers = #tpu.dot_dimension_numbers<[1], [0], [0], [1], [0, 0, 1, 1], [], []>} : vector<8x128xf32>, vector<128x384xf32>, vector<8x384xf32> -> vector<8x384xf32>
    %16 = vector.extract_strided_slice %14 {offsets = [0, 0], sizes = [8, 256], strides = [1, 1]} : vector<8x384xf32> to vector<8x256xf32>
    %17 = vector.extract_strided_slice %15 {offsets = [0, 0], sizes = [8, 256], strides = [1, 1]} : vector<8x384xf32> to vector<8x256xf32>
    %18 = arith.addf %16, %17 : vector<8x256xf32>
    %19 = arith.negf %18 : vector<8x256xf32>
    %20 = math.exp %19 : vector<8x256xf32>
    %cst_18 = arith.constant 1.000000e+00 : f32
    %21 = vector.broadcast %cst_18 : f32 to vector<8x256xf32>
    %22 = arith.addf %21, %20 : vector<8x256xf32>
    %23 = arith.divf %21, %22 : vector<8x256xf32>
    %24 = vector.extract_strided_slice %23 {offsets = [0, 0], sizes = [8, 128], strides = [1, 1]} : vector<8x256xf32> to vector<8x128xf32>
    %25 = vector.extract_strided_slice %23 {offsets = [0, 128], sizes = [8, 128], strides = [1, 1]} : vector<8x256xf32> to vector<8x128xf32>
    %26 = vector.extract_strided_slice %14 {offsets = [0, 256], sizes = [8, 128], strides = [1, 1]} : vector<8x384xf32> to vector<8x128xf32>
    %27 = vector.extract_strided_slice %15 {offsets = [0, 256], sizes = [8, 128], strides = [1, 1]} : vector<8x384xf32> to vector<8x128xf32>
    %28 = vector.broadcast %6 : vector<1x128xf32> to vector<8x128xf32>
    %29 = arith.addf %27, %28 : vector<8x128xf32>
    %30 = arith.mulf %24, %29 : vector<8x128xf32>
    %31 = arith.addf %26, %30 : vector<8x128xf32>
    %32 = math.tanh %31 : vector<8x128xf32>
    %cst_19 = arith.constant 1.000000e+00 : f32
    %33 = vector.broadcast %cst_19 : f32 to vector<8x128xf32>
    %34 = arith.subf %33, %25 : vector<8x128xf32>
    %35 = arith.mulf %34, %32 : vector<8x128xf32>
    %36 = arith.mulf %25, %13 : vector<8x128xf32>
    %37 = arith.addf %35, %36 : vector<8x128xf32>
    %c0_20 = arith.constant 0 : index
    %c0_21 = arith.constant 0 : index
    %38 = vector.load %arg14[%c0_20, %c0_21] : memref<56x128xf32, #tpu.memory_space<vmem>>, vector<8x128xf32>
    tpu.vector_store %arg14[%c0_20, %c0_21], %37 {strides = array<i32>} : memref<56x128xf32, #tpu.memory_space<vmem>>, vector<8x128xf32>,
    %c8 = arith.constant 8 : index
    %c0_22 = arith.constant 0 : index
    %39 = vector.load %arg13[%c8, %c0_22] : memref<56x384xf32, #tpu.memory_space<vmem>>, vector<8x384xf32>
    %cst_23 = arith.constant dense<0.000000e+00> : vector<8x384xf32>
    %40 = tpu.matmul %37, %4, %cst_23 {dimension_numbers = #tpu.dot_dimension_numbers<[1], [0], [0], [1], [0, 0, 1, 1], [], []>} : vector<8x128xf32>, vector<128x384xf32>, vector<8x384xf32> -> vector<8x384xf32>
    %41 = vector.extract_strided_slice %39 {offsets = [0, 0], sizes = [8, 256], strides = [1, 1]} : vector<8x384xf32> to vector<8x256xf32>
    %42 = vector.extract_strided_slice %40 {offsets = [0, 0], sizes = [8, 256], strides = [1, 1]} : vector<8x384xf32> to vector<8x256xf32>
    %43 = arith.addf %41, %42 : vector<8x256xf32>
    %44 = arith.negf %43 : vector<8x256xf32>
    %45 = math.exp %44 : vector<8x256xf32>
    %cst_24 = arith.constant 1.000000e+00 : f32
    %46 = vector.broadcast %cst_24 : f32 to vector<8x256xf32>
    %47 = arith.addf %46, %45 : vector<8x256xf32>
    %48 = arith.divf %46, %47 : vector<8x256xf32>
    %49 = vector.extract_strided_slice %48 {offsets = [0, 0], sizes = [8, 128], strides = [1, 1]} : vector<8x256xf32> to vector<8x128xf32>
    %50 = vector.extract_strided_slice %48 {offsets = [0, 128], sizes = [8, 128], strides = [1, 1]} : vector<8x256xf32> to vector<8x128xf32>
    %51 = vector.extract_strided_slice %39 {offsets = [0, 256], sizes = [8, 128], strides = [1, 1]} : vector<8x384xf32> to vector<8x128xf32>
    %52 = vector.extract_strided_slice %40 {offsets = [0, 256], sizes = [8, 128], strides = [1, 1]} : vector<8x384xf32> to vector<8x128xf32>
    %53 = vector.broadcast %6 : vector<1x128xf32> to vector<8x128xf32>
    %54 = arith.addf %52, %53 : vector<8x128xf32>
    %55 = arith.mulf %49, %54 : vector<8x128xf32>
    %56 = arith.addf %51, %55 : vector<8x128xf32>
    %57 = math.tanh %56 : vector<8x128xf32>
    %cst_25 = arith.constant 1.000000e+00 : f32
    %58 = vector.broadcast %cst_25 : f32 to vector<8x128xf32>
    %59 = arith.subf %58, %50 : vector<8x128xf32>
    %60 = arith.mulf %59, %57 : vector<8x128xf32>
    %61 = arith.mulf %50, %37 : vector<8x128xf32>
    %62 = arith.addf %60, %61 : vector<8x128xf32>
    %c8_26 = arith.constant 8 : index
    %c0_27 = arith.constant 0 : index
    %63 = vector.load %arg14[%c8_26, %c0_27] : memref<56x128xf32, #tpu.memory_space<vmem>>, vector<8x128xf32>
    tpu.vector_store %arg14[%c8_26, %c0_27], %62 {strides = array<i32>} : memref<56x128xf32, #tpu.memory_space<vmem>>, vector<8x128xf32>,
    %c16 = arith.constant 16 : index
    %c0_28 = arith.constant 0 : index
    %64 = vector.load %arg13[%c16, %c0_28] : memref<56x384xf32, #tpu.memory_space<vmem>>, vector<8x384xf32>
    %cst_29 = arith.constant dense<0.000000e+00> : vector<8x384xf32>
    %65 = tpu.matmul %62, %4, %cst_29 {dimension_numbers = #tpu.dot_dimension_numbers<[1], [0], [0], [1], [0, 0, 1, 1], [], []>} : vector<8x128xf32>, vector<128x384xf32>, vector<8x384xf32> -> vector<8x384xf32>
    %66 = vector.extract_strided_slice %64 {offsets = [0, 0], sizes = [8, 256], strides = [1, 1]} : vector<8x384xf32> to vector<8x256xf32>
    %67 = vector.extract_strided_slice %65 {offsets = [0, 0], sizes = [8, 256], strides = [1, 1]} : vector<8x384xf32> to vector<8x256xf32>
    %68 = arith.addf %66, %67 : vector<8x256xf32>
    %69 = arith.negf %68 : vector<8x256xf32>
    %70 = math.exp %69 : vector<8x256xf32>
    %cst_30 = arith.constant 1.000000e+00 : f32
    %71 = vector.broadcast %cst_30 : f32 to vector<8x256xf32>
    %72 = arith.addf %71, %70 : vector<8x256xf32>
    %73 = arith.divf %71, %72 : vector<8x256xf32>
    %74 = vector.extract_strided_slice %73 {offsets = [0, 0], sizes = [8, 128], strides = [1, 1]} : vector<8x256xf32> to vector<8x128xf32>
    %75 = vector.extract_strided_slice %73 {offsets = [0, 128], sizes = [8, 128], strides = [1, 1]} : vector<8x256xf32> to vector<8x128xf32>
    %76 = vector.extract_strided_slice %64 {offsets = [0, 256], sizes = [8, 128], strides = [1, 1]} : vector<8x384xf32> to vector<8x128xf32>
    %77 = vector.extract_strided_slice %65 {offsets = [0, 256], sizes = [8, 128], strides = [1, 1]} : vector<8x384xf32> to vector<8x128xf32>
    %78 = vector.broadcast %6 : vector<1x128xf32> to vector<8x128xf32>
    %79 = arith.addf %77, %78 : vector<8x128xf32>
    %80 = arith.mulf %74, %79 : vector<8x128xf32>
    %81 = arith.addf %76, %80 : vector<8x128xf32>
    %82 = math.tanh %81 : vector<8x128xf32>
    %cst_31 = arith.constant 1.000000e+00 : f32
    %83 = vector.broadcast %cst_31 : f32 to vector<8x128xf32>
    %84 = arith.subf %83, %75 : vector<8x128xf32>
    %85 = arith.mulf %84, %82 : vector<8x128xf32>
    %86 = arith.mulf %75, %62 : vector<8x128xf32>
    %87 = arith.addf %85, %86 : vector<8x128xf32>
    %c16_32 = arith.constant 16 : index
    %c0_33 = arith.constant 0 : index
    %88 = vector.load %arg14[%c16_32, %c0_33] : memref<56x128xf32, #tpu.memory_space<vmem>>, vector<8x128xf32>
    tpu.vector_store %arg14[%c16_32, %c0_33], %87 {strides = array<i32>} : memref<56x128xf32, #tpu.memory_space<vmem>>, vector<8x128xf32>,
    %c24 = arith.constant 24 : index
    %c0_34 = arith.constant 0 : index
    %89 = vector.load %arg13[%c24, %c0_34] : memref<56x384xf32, #tpu.memory_space<vmem>>, vector<8x384xf32>
    %cst_35 = arith.constant dense<0.000000e+00> : vector<8x384xf32>
    %90 = tpu.matmul %87, %4, %cst_35 {dimension_numbers = #tpu.dot_dimension_numbers<[1], [0], [0], [1], [0, 0, 1, 1], [], []>} : vector<8x128xf32>, vector<128x384xf32>, vector<8x384xf32> -> vector<8x384xf32>
    %91 = vector.extract_strided_slice %89 {offsets = [0, 0], sizes = [8, 256], strides = [1, 1]} : vector<8x384xf32> to vector<8x256xf32>
    %92 = vector.extract_strided_slice %90 {offsets = [0, 0], sizes = [8, 256], strides = [1, 1]} : vector<8x384xf32> to vector<8x256xf32>
    %93 = arith.addf %91, %92 : vector<8x256xf32>
    %94 = arith.negf %93 : vector<8x256xf32>
    %95 = math.exp %94 : vector<8x256xf32>
    %cst_36 = arith.constant 1.000000e+00 : f32
    %96 = vector.broadcast %cst_36 : f32 to vector<8x256xf32>
    %97 = arith.addf %96, %95 : vector<8x256xf32>
    %98 = arith.divf %96, %97 : vector<8x256xf32>
    %99 = vector.extract_strided_slice %98 {offsets = [0, 0], sizes = [8, 128], strides = [1, 1]} : vector<8x256xf32> to vector<8x128xf32>
    %100 = vector.extract_strided_slice %98 {offsets = [0, 128], sizes = [8, 128], strides = [1, 1]} : vector<8x256xf32> to vector<8x128xf32>
    %101 = vector.extract_strided_slice %89 {offsets = [0, 256], sizes = [8, 128], strides = [1, 1]} : vector<8x384xf32> to vector<8x128xf32>
    %102 = vector.extract_strided_slice %90 {offsets = [0, 256], sizes = [8, 128], strides = [1, 1]} : vector<8x384xf32> to vector<8x128xf32>
    %103 = vector.broadcast %6 : vector<1x128xf32> to vector<8x128xf32>
    %104 = arith.addf %102, %103 : vector<8x128xf32>
    %105 = arith.mulf %99, %104 : vector<8x128xf32>
    %106 = arith.addf %101, %105 : vector<8x128xf32>
    %107 = math.tanh %106 : vector<8x128xf32>
    %cst_37 = arith.constant 1.000000e+00 : f32
    %108 = vector.broadcast %cst_37 : f32 to vector<8x128xf32>
    %109 = arith.subf %108, %100 : vector<8x128xf32>
    %110 = arith.mulf %109, %107 : vector<8x128xf32>
    %111 = arith.mulf %100, %87 : vector<8x128xf32>
    %112 = arith.addf %110, %111 : vector<8x128xf32>
    %c24_38 = arith.constant 24 : index
    %c0_39 = arith.constant 0 : index
    %113 = vector.load %arg14[%c24_38, %c0_39] : memref<56x128xf32, #tpu.memory_space<vmem>>, vector<8x128xf32>
    tpu.vector_store %arg14[%c24_38, %c0_39], %112 {strides = array<i32>} : memref<56x128xf32, #tpu.memory_space<vmem>>, vector<8x128xf32>,
    %c32 = arith.constant 32 : index
    %c0_40 = arith.constant 0 : index
    %114 = vector.load %arg13[%c32, %c0_40] : memref<56x384xf32, #tpu.memory_space<vmem>>, vector<8x384xf32>
    %cst_41 = arith.constant dense<0.000000e+00> : vector<8x384xf32>
    %115 = tpu.matmul %112, %4, %cst_41 {dimension_numbers = #tpu.dot_dimension_numbers<[1], [0], [0], [1], [0, 0, 1, 1], [], []>} : vector<8x128xf32>, vector<128x384xf32>, vector<8x384xf32> -> vector<8x384xf32>
    %116 = vector.extract_strided_slice %114 {offsets = [0, 0], sizes = [8, 256], strides = [1, 1]} : vector<8x384xf32> to vector<8x256xf32>
    %117 = vector.extract_strided_slice %115 {offsets = [0, 0], sizes = [8, 256], strides = [1, 1]} : vector<8x384xf32> to vector<8x256xf32>
    %118 = arith.addf %116, %117 : vector<8x256xf32>
    %119 = arith.negf %118 : vector<8x256xf32>
    %120 = math.exp %119 : vector<8x256xf32>
    %cst_42 = arith.constant 1.000000e+00 : f32
    %121 = vector.broadcast %cst_42 : f32 to vector<8x256xf32>
    %122 = arith.addf %121, %120 : vector<8x256xf32>
    %123 = arith.divf %121, %122 : vector<8x256xf32>
    %124 = vector.extract_strided_slice %123 {offsets = [0, 0], sizes = [8, 128], strides = [1, 1]} : vector<8x256xf32> to vector<8x128xf32>
    %125 = vector.extract_strided_slice %123 {offsets = [0, 128], sizes = [8, 128], strides = [1, 1]} : vector<8x256xf32> to vector<8x128xf32>
    %126 = vector.extract_strided_slice %114 {offsets = [0, 256], sizes = [8, 128], strides = [1, 1]} : vector<8x384xf32> to vector<8x128xf32>
    %127 = vector.extract_strided_slice %115 {offsets = [0, 256], sizes = [8, 128], strides = [1, 1]} : vector<8x384xf32> to vector<8x128xf32>
    %128 = vector.broadcast %6 : vector<1x128xf32> to vector<8x128xf32>
    %129 = arith.addf %127, %128 : vector<8x128xf32>
    %130 = arith.mulf %124, %129 : vector<8x128xf32>
    %131 = arith.addf %126, %130 : vector<8x128xf32>
    %132 = math.tanh %131 : vector<8x128xf32>
    %cst_43 = arith.constant 1.000000e+00 : f32
    %133 = vector.broadcast %cst_43 : f32 to vector<8x128xf32>
    %134 = arith.subf %133, %125 : vector<8x128xf32>
    %135 = arith.mulf %134, %132 : vector<8x128xf32>
    %136 = arith.mulf %125, %112 : vector<8x128xf32>
    %137 = arith.addf %135, %136 : vector<8x128xf32>
    %c32_44 = arith.constant 32 : index
    %c0_45 = arith.constant 0 : index
    %138 = vector.load %arg14[%c32_44, %c0_45] : memref<56x128xf32, #tpu.memory_space<vmem>>, vector<8x128xf32>
    tpu.vector_store %arg14[%c32_44, %c0_45], %137 {strides = array<i32>} : memref<56x128xf32, #tpu.memory_space<vmem>>, vector<8x128xf32>,
    %c40 = arith.constant 40 : index
    %c0_46 = arith.constant 0 : index
    %139 = vector.load %arg13[%c40, %c0_46] : memref<56x384xf32, #tpu.memory_space<vmem>>, vector<8x384xf32>
    %cst_47 = arith.constant dense<0.000000e+00> : vector<8x384xf32>
    %140 = tpu.matmul %137, %4, %cst_47 {dimension_numbers = #tpu.dot_dimension_numbers<[1], [0], [0], [1], [0, 0, 1, 1], [], []>} : vector<8x128xf32>, vector<128x384xf32>, vector<8x384xf32> -> vector<8x384xf32>
    %141 = vector.extract_strided_slice %139 {offsets = [0, 0], sizes = [8, 256], strides = [1, 1]} : vector<8x384xf32> to vector<8x256xf32>
    %142 = vector.extract_strided_slice %140 {offsets = [0, 0], sizes = [8, 256], strides = [1, 1]} : vector<8x384xf32> to vector<8x256xf32>
    %143 = arith.addf %141, %142 : vector<8x256xf32>
    %144 = arith.negf %143 : vector<8x256xf32>
    %145 = math.exp %144 : vector<8x256xf32>
    %cst_48 = arith.constant 1.000000e+00 : f32
    %146 = vector.broadcast %cst_48 : f32 to vector<8x256xf32>
    %147 = arith.addf %146, %145 : vector<8x256xf32>
    %148 = arith.divf %146, %147 : vector<8x256xf32>
    %149 = vector.extract_strided_slice %148 {offsets = [0, 0], sizes = [8, 128], strides = [1, 1]} : vector<8x256xf32> to vector<8x128xf32>
    %150 = vector.extract_strided_slice %148 {offsets = [0, 128], sizes = [8, 128], strides = [1, 1]} : vector<8x256xf32> to vector<8x128xf32>
    %151 = vector.extract_strided_slice %139 {offsets = [0, 256], sizes = [8, 128], strides = [1, 1]} : vector<8x384xf32> to vector<8x128xf32>
    %152 = vector.extract_strided_slice %140 {offsets = [0, 256], sizes = [8, 128], strides = [1, 1]} : vector<8x384xf32> to vector<8x128xf32>
    %153 = vector.broadcast %6 : vector<1x128xf32> to vector<8x128xf32>
    %154 = arith.addf %152, %153 : vector<8x128xf32>
    %155 = arith.mulf %149, %154 : vector<8x128xf32>
    %156 = arith.addf %151, %155 : vector<8x128xf32>
    %157 = math.tanh %156 : vector<8x128xf32>
    %cst_49 = arith.constant 1.000000e+00 : f32
    %158 = vector.broadcast %cst_49 : f32 to vector<8x128xf32>
    %159 = arith.subf %158, %150 : vector<8x128xf32>
    %160 = arith.mulf %159, %157 : vector<8x128xf32>
    %161 = arith.mulf %150, %137 : vector<8x128xf32>
    %162 = arith.addf %160, %161 : vector<8x128xf32>
    %c40_50 = arith.constant 40 : index
    %c0_51 = arith.constant 0 : index
    %163 = vector.load %arg14[%c40_50, %c0_51] : memref<56x128xf32, #tpu.memory_space<vmem>>, vector<8x128xf32>
    tpu.vector_store %arg14[%c40_50, %c0_51], %162 {strides = array<i32>} : memref<56x128xf32, #tpu.memory_space<vmem>>, vector<8x128xf32>,
    %c48 = arith.constant 48 : index
    %c0_52 = arith.constant 0 : index
    %164 = vector.load %arg13[%c48, %c0_52] : memref<56x384xf32, #tpu.memory_space<vmem>>, vector<8x384xf32>
    %cst_53 = arith.constant dense<0.000000e+00> : vector<8x384xf32>
    %165 = tpu.matmul %162, %4, %cst_53 {dimension_numbers = #tpu.dot_dimension_numbers<[1], [0], [0], [1], [0, 0, 1, 1], [], []>} : vector<8x128xf32>, vector<128x384xf32>, vector<8x384xf32> -> vector<8x384xf32>
    %166 = vector.extract_strided_slice %164 {offsets = [0, 0], sizes = [8, 256], strides = [1, 1]} : vector<8x384xf32> to vector<8x256xf32>
    %167 = vector.extract_strided_slice %165 {offsets = [0, 0], sizes = [8, 256], strides = [1, 1]} : vector<8x384xf32> to vector<8x256xf32>
    %168 = arith.addf %166, %167 : vector<8x256xf32>
    %169 = arith.negf %168 : vector<8x256xf32>
    %170 = math.exp %169 : vector<8x256xf32>
    %cst_54 = arith.constant 1.000000e+00 : f32
    %171 = vector.broadcast %cst_54 : f32 to vector<8x256xf32>
    %172 = arith.addf %171, %170 : vector<8x256xf32>
    %173 = arith.divf %171, %172 : vector<8x256xf32>
    %174 = vector.extract_strided_slice %173 {offsets = [0, 0], sizes = [8, 128], strides = [1, 1]} : vector<8x256xf32> to vector<8x128xf32>
    %175 = vector.extract_strided_slice %173 {offsets = [0, 128], sizes = [8, 128], strides = [1, 1]} : vector<8x256xf32> to vector<8x128xf32>
    %176 = vector.extract_strided_slice %164 {offsets = [0, 256], sizes = [8, 128], strides = [1, 1]} : vector<8x384xf32> to vector<8x128xf32>
    %177 = vector.extract_strided_slice %165 {offsets = [0, 256], sizes = [8, 128], strides = [1, 1]} : vector<8x384xf32> to vector<8x128xf32>
    %178 = vector.broadcast %6 : vector<1x128xf32> to vector<8x128xf32>
    %179 = arith.addf %177, %178 : vector<8x128xf32>
    %180 = arith.mulf %174, %179 : vector<8x128xf32>
    %181 = arith.addf %176, %180 : vector<8x128xf32>
    %182 = math.tanh %181 : vector<8x128xf32>
    %cst_55 = arith.constant 1.000000e+00 : f32
    %183 = vector.broadcast %cst_55 : f32 to vector<8x128xf32>
    %184 = arith.subf %183, %175 : vector<8x128xf32>
    %185 = arith.mulf %184, %182 : vector<8x128xf32>
    %186 = arith.mulf %175, %162 : vector<8x128xf32>
    %187 = arith.addf %185, %186 : vector<8x128xf32>
    %c48_56 = arith.constant 48 : index
    %c0_57 = arith.constant 0 : index
    %188 = vector.load %arg14[%c48_56, %c0_57] : memref<56x128xf32, #tpu.memory_space<vmem>>, vector<8x128xf32>
    tpu.vector_store %arg14[%c48_56, %c0_57], %187 {strides = array<i32>} : memref<56x128xf32, #tpu.memory_space<vmem>>, vector<8x128xf32>,
    %c0_58 = arith.constant 0 : index
    %c0_59 = arith.constant 0 : index
    %c0_60 = arith.constant 0 : index
    %189 = vector.load %arg15[%c0_58, %c0_59, %c0_60] : memref<2x8x128xf32, #tpu.memory_space<vmem>>, vector<1x8x128xf32>
    %190 = vector.shape_cast %189 : vector<1x8x128xf32> to vector<8x128xf32>
    %191 = vector.shape_cast %187 : vector<8x128xf32> to vector<1x8x128xf32>
    tpu.vector_store %arg15[%c0_58, %c0_59, %c0_60], %191 {strides = array<i32>} : memref<2x8x128xf32, #tpu.memory_space<vmem>>, vector<1x8x128xf32>,
    %c0_61 = arith.constant 0 : index
    %c0_62 = arith.constant 0 : index
    %192 = vector.load %arg6[%c0_61, %c0_62] : memref<128x384xf32, #tpu.memory_space<vmem>>, vector<128x384xf32>
    %c0_63 = arith.constant 0 : index
    %c0_64 = arith.constant 0 : index
    %193 = vector.load %arg7[%c0_63, %c0_64] : memref<128x384xf32, #tpu.memory_space<vmem>>, vector<128x384xf32>
    %c0_65 = arith.constant 0 : index
    %c0_66 = arith.constant 0 : index
    %194 = vector.load %arg8[%c0_65, %c0_66] : memref<1x384xf32, #tpu.memory_space<vmem>>, vector<1x384xf32>
    %c0_67 = arith.constant 0 : index
    %c0_68 = arith.constant 0 : index
    %195 = vector.load %arg9[%c0_67, %c0_68] : memref<1x128xf32, #tpu.memory_space<vmem>>, vector<1x128xf32>
    %c0_69 = arith.constant 0 : index
    %c0_70 = arith.constant 0 : index
    %196 = vector.load %arg14[%c0_69, %c0_70] : memref<56x128xf32, #tpu.memory_space<vmem>>, vector<56x128xf32>
    %cst_71 = arith.constant dense<0.000000e+00> : vector<56x384xf32>
    %197 = tpu.matmul %196, %192, %cst_71 {dimension_numbers = #tpu.dot_dimension_numbers<[1], [0], [0], [1], [0, 0, 1, 1], [], []>} : vector<56x128xf32>, vector<128x384xf32>, vector<56x384xf32> -> vector<56x384xf32>
    %198 = vector.broadcast %194 : vector<1x384xf32> to vector<56x384xf32>
    %199 = arith.addf %197, %198 : vector<56x384xf32>
    %c0_72 = arith.constant 0 : index
    %c0_73 = arith.constant 0 : index
    %200 = vector.load %arg13[%c0_72, %c0_73] : memref<56x384xf32, #tpu.memory_space<vmem>>, vector<56x384xf32>
    tpu.vector_store %arg13[%c0_72, %c0_73], %199 {strides = array<i32>} : memref<56x384xf32, #tpu.memory_space<vmem>>, vector<56x384xf32>,
    %c1 = arith.constant 1 : index
    %c0_74 = arith.constant 0 : index
    %c0_75 = arith.constant 0 : index
    %201 = vector.load %arg15[%c1, %c0_74, %c0_75] : memref<2x8x128xf32, #tpu.memory_space<vmem>>, vector<1x8x128xf32>
    %202 = vector.shape_cast %201 : vector<1x8x128xf32> to vector<8x128xf32>
    %c0_76 = arith.constant 0 : index
    %c0_77 = arith.constant 0 : index
    %203 = vector.load %arg13[%c0_76, %c0_77] : memref<56x384xf32, #tpu.memory_space<vmem>>, vector<8x384xf32>
    %cst_78 = arith.constant dense<0.000000e+00> : vector<8x384xf32>
    %204 = tpu.matmul %202, %193, %cst_78 {dimension_numbers = #tpu.dot_dimension_numbers<[1], [0], [0], [1], [0, 0, 1, 1], [], []>} : vector<8x128xf32>, vector<128x384xf32>, vector<8x384xf32> -> vector<8x384xf32>
    %205 = vector.extract_strided_slice %203 {offsets = [0, 0], sizes = [8, 256], strides = [1, 1]} : vector<8x384xf32> to vector<8x256xf32>
    %206 = vector.extract_strided_slice %204 {offsets = [0, 0], sizes = [8, 256], strides = [1, 1]} : vector<8x384xf32> to vector<8x256xf32>
    %207 = arith.addf %205, %206 : vector<8x256xf32>
    %208 = arith.negf %207 : vector<8x256xf32>
    %209 = math.exp %208 : vector<8x256xf32>
    %cst_79 = arith.constant 1.000000e+00 : f32
    %210 = vector.broadcast %cst_79 : f32 to vector<8x256xf32>
    %211 = arith.addf %210, %209 : vector<8x256xf32>
    %212 = arith.divf %210, %211 : vector<8x256xf32>
    %213 = vector.extract_strided_slice %212 {offsets = [0, 0], sizes = [8, 128], strides = [1, 1]} : vector<8x256xf32> to vector<8x128xf32>
    %214 = vector.extract_strided_slice %212 {offsets = [0, 128], sizes = [8, 128], strides = [1, 1]} : vector<8x256xf32> to vector<8x128xf32>
    %215 = vector.extract_strided_slice %203 {offsets = [0, 256], sizes = [8, 128], strides = [1, 1]} : vector<8x384xf32> to vector<8x128xf32>
    %216 = vector.extract_strided_slice %204 {offsets = [0, 256], sizes = [8, 128], strides = [1, 1]} : vector<8x384xf32> to vector<8x128xf32>
    %217 = vector.broadcast %195 : vector<1x128xf32> to vector<8x128xf32>
    %218 = arith.addf %216, %217 : vector<8x128xf32>
    %219 = arith.mulf %213, %218 : vector<8x128xf32>
    %220 = arith.addf %215, %219 : vector<8x128xf32>
    %221 = math.tanh %220 : vector<8x128xf32>
    %cst_80 = arith.constant 1.000000e+00 : f32
    %222 = vector.broadcast %cst_80 : f32 to vector<8x128xf32>
    %223 = arith.subf %222, %214 : vector<8x128xf32>
    %224 = arith.mulf %223, %221 : vector<8x128xf32>
    %225 = arith.mulf %214, %202 : vector<8x128xf32>
    %226 = arith.addf %224, %225 : vector<8x128xf32>
    %c8_81 = arith.constant 8 : index
    %c0_82 = arith.constant 0 : index
    %227 = vector.load %arg13[%c8_81, %c0_82] : memref<56x384xf32, #tpu.memory_space<vmem>>, vector<8x384xf32>
    %cst_83 = arith.constant dense<0.000000e+00> : vector<8x384xf32>
    %228 = tpu.matmul %226, %193, %cst_83 {dimension_numbers = #tpu.dot_dimension_numbers<[1], [0], [0], [1], [0, 0, 1, 1], [], []>} : vector<8x128xf32>, vector<128x384xf32>, vector<8x384xf32> -> vector<8x384xf32>
    %229 = vector.extract_strided_slice %227 {offsets = [0, 0], sizes = [8, 256], strides = [1, 1]} : vector<8x384xf32> to vector<8x256xf32>
    %230 = vector.extract_strided_slice %228 {offsets = [0, 0], sizes = [8, 256], strides = [1, 1]} : vector<8x384xf32> to vector<8x256xf32>
    %231 = arith.addf %229, %230 : vector<8x256xf32>
    %232 = arith.negf %231 : vector<8x256xf32>
    %233 = math.exp %232 : vector<8x256xf32>
    %cst_84 = arith.constant 1.000000e+00 : f32
    %234 = vector.broadcast %cst_84 : f32 to vector<8x256xf32>
    %235 = arith.addf %234, %233 : vector<8x256xf32>
    %236 = arith.divf %234, %235 : vector<8x256xf32>
    %237 = vector.extract_strided_slice %236 {offsets = [0, 0], sizes = [8, 128], strides = [1, 1]} : vector<8x256xf32> to vector<8x128xf32>
    %238 = vector.extract_strided_slice %236 {offsets = [0, 128], sizes = [8, 128], strides = [1, 1]} : vector<8x256xf32> to vector<8x128xf32>
    %239 = vector.extract_strided_slice %227 {offsets = [0, 256], sizes = [8, 128], strides = [1, 1]} : vector<8x384xf32> to vector<8x128xf32>
    %240 = vector.extract_strided_slice %228 {offsets = [0, 256], sizes = [8, 128], strides = [1, 1]} : vector<8x384xf32> to vector<8x128xf32>
    %241 = vector.broadcast %195 : vector<1x128xf32> to vector<8x128xf32>
    %242 = arith.addf %240, %241 : vector<8x128xf32>
    %243 = arith.mulf %237, %242 : vector<8x128xf32>
    %244 = arith.addf %239, %243 : vector<8x128xf32>
    %245 = math.tanh %244 : vector<8x128xf32>
    %cst_85 = arith.constant 1.000000e+00 : f32
    %246 = vector.broadcast %cst_85 : f32 to vector<8x128xf32>
    %247 = arith.subf %246, %238 : vector<8x128xf32>
    %248 = arith.mulf %247, %245 : vector<8x128xf32>
    %249 = arith.mulf %238, %226 : vector<8x128xf32>
    %250 = arith.addf %248, %249 : vector<8x128xf32>
    %c16_86 = arith.constant 16 : index
    %c0_87 = arith.constant 0 : index
    %251 = vector.load %arg13[%c16_86, %c0_87] : memref<56x384xf32, #tpu.memory_space<vmem>>, vector<8x384xf32>
    %cst_88 = arith.constant dense<0.000000e+00> : vector<8x384xf32>
    %252 = tpu.matmul %250, %193, %cst_88 {dimension_numbers = #tpu.dot_dimension_numbers<[1], [0], [0], [1], [0, 0, 1, 1], [], []>} : vector<8x128xf32>, vector<128x384xf32>, vector<8x384xf32> -> vector<8x384xf32>
    %253 = vector.extract_strided_slice %251 {offsets = [0, 0], sizes = [8, 256], strides = [1, 1]} : vector<8x384xf32> to vector<8x256xf32>
    %254 = vector.extract_strided_slice %252 {offsets = [0, 0], sizes = [8, 256], strides = [1, 1]} : vector<8x384xf32> to vector<8x256xf32>
    %255 = arith.addf %253, %254 : vector<8x256xf32>
    %256 = arith.negf %255 : vector<8x256xf32>
    %257 = math.exp %256 : vector<8x256xf32>
    %cst_89 = arith.constant 1.000000e+00 : f32
    %258 = vector.broadcast %cst_89 : f32 to vector<8x256xf32>
    %259 = arith.addf %258, %257 : vector<8x256xf32>
    %260 = arith.divf %258, %259 : vector<8x256xf32>
    %261 = vector.extract_strided_slice %260 {offsets = [0, 0], sizes = [8, 128], strides = [1, 1]} : vector<8x256xf32> to vector<8x128xf32>
    %262 = vector.extract_strided_slice %260 {offsets = [0, 128], sizes = [8, 128], strides = [1, 1]} : vector<8x256xf32> to vector<8x128xf32>
    %263 = vector.extract_strided_slice %251 {offsets = [0, 256], sizes = [8, 128], strides = [1, 1]} : vector<8x384xf32> to vector<8x128xf32>
    %264 = vector.extract_strided_slice %252 {offsets = [0, 256], sizes = [8, 128], strides = [1, 1]} : vector<8x384xf32> to vector<8x128xf32>
    %265 = vector.broadcast %195 : vector<1x128xf32> to vector<8x128xf32>
    %266 = arith.addf %264, %265 : vector<8x128xf32>
    %267 = arith.mulf %261, %266 : vector<8x128xf32>
    %268 = arith.addf %263, %267 : vector<8x128xf32>
    %269 = math.tanh %268 : vector<8x128xf32>
    %cst_90 = arith.constant 1.000000e+00 : f32
    %270 = vector.broadcast %cst_90 : f32 to vector<8x128xf32>
    %271 = arith.subf %270, %262 : vector<8x128xf32>
    %272 = arith.mulf %271, %269 : vector<8x128xf32>
    %273 = arith.mulf %262, %250 : vector<8x128xf32>
    %274 = arith.addf %272, %273 : vector<8x128xf32>
    %c24_91 = arith.constant 24 : index
    %c0_92 = arith.constant 0 : index
    %275 = vector.load %arg13[%c24_91, %c0_92] : memref<56x384xf32, #tpu.memory_space<vmem>>, vector<8x384xf32>
    %cst_93 = arith.constant dense<0.000000e+00> : vector<8x384xf32>
    %276 = tpu.matmul %274, %193, %cst_93 {dimension_numbers = #tpu.dot_dimension_numbers<[1], [0], [0], [1], [0, 0, 1, 1], [], []>} : vector<8x128xf32>, vector<128x384xf32>, vector<8x384xf32> -> vector<8x384xf32>
    %277 = vector.extract_strided_slice %275 {offsets = [0, 0], sizes = [8, 256], strides = [1, 1]} : vector<8x384xf32> to vector<8x256xf32>
    %278 = vector.extract_strided_slice %276 {offsets = [0, 0], sizes = [8, 256], strides = [1, 1]} : vector<8x384xf32> to vector<8x256xf32>
    %279 = arith.addf %277, %278 : vector<8x256xf32>
    %280 = arith.negf %279 : vector<8x256xf32>
    %281 = math.exp %280 : vector<8x256xf32>
    %cst_94 = arith.constant 1.000000e+00 : f32
    %282 = vector.broadcast %cst_94 : f32 to vector<8x256xf32>
    %283 = arith.addf %282, %281 : vector<8x256xf32>
    %284 = arith.divf %282, %283 : vector<8x256xf32>
    %285 = vector.extract_strided_slice %284 {offsets = [0, 0], sizes = [8, 128], strides = [1, 1]} : vector<8x256xf32> to vector<8x128xf32>
    %286 = vector.extract_strided_slice %284 {offsets = [0, 128], sizes = [8, 128], strides = [1, 1]} : vector<8x256xf32> to vector<8x128xf32>
    %287 = vector.extract_strided_slice %275 {offsets = [0, 256], sizes = [8, 128], strides = [1, 1]} : vector<8x384xf32> to vector<8x128xf32>
    %288 = vector.extract_strided_slice %276 {offsets = [0, 256], sizes = [8, 128], strides = [1, 1]} : vector<8x384xf32> to vector<8x128xf32>
    %289 = vector.broadcast %195 : vector<1x128xf32> to vector<8x128xf32>
    %290 = arith.addf %288, %289 : vector<8x128xf32>
    %291 = arith.mulf %285, %290 : vector<8x128xf32>
    %292 = arith.addf %287, %291 : vector<8x128xf32>
    %293 = math.tanh %292 : vector<8x128xf32>
    %cst_95 = arith.constant 1.000000e+00 : f32
    %294 = vector.broadcast %cst_95 : f32 to vector<8x128xf32>
    %295 = arith.subf %294, %286 : vector<8x128xf32>
    %296 = arith.mulf %295, %293 : vector<8x128xf32>
    %297 = arith.mulf %286, %274 : vector<8x128xf32>
    %298 = arith.addf %296, %297 : vector<8x128xf32>
    %c32_96 = arith.constant 32 : index
    %c0_97 = arith.constant 0 : index
    %299 = vector.load %arg13[%c32_96, %c0_97] : memref<56x384xf32, #tpu.memory_space<vmem>>, vector<8x384xf32>
    %cst_98 = arith.constant dense<0.000000e+00> : vector<8x384xf32>
    %300 = tpu.matmul %298, %193, %cst_98 {dimension_numbers = #tpu.dot_dimension_numbers<[1], [0], [0], [1], [0, 0, 1, 1], [], []>} : vector<8x128xf32>, vector<128x384xf32>, vector<8x384xf32> -> vector<8x384xf32>
    %301 = vector.extract_strided_slice %299 {offsets = [0, 0], sizes = [8, 256], strides = [1, 1]} : vector<8x384xf32> to vector<8x256xf32>
    %302 = vector.extract_strided_slice %300 {offsets = [0, 0], sizes = [8, 256], strides = [1, 1]} : vector<8x384xf32> to vector<8x256xf32>
    %303 = arith.addf %301, %302 : vector<8x256xf32>
    %304 = arith.negf %303 : vector<8x256xf32>
    %305 = math.exp %304 : vector<8x256xf32>
    %cst_99 = arith.constant 1.000000e+00 : f32
    %306 = vector.broadcast %cst_99 : f32 to vector<8x256xf32>
    %307 = arith.addf %306, %305 : vector<8x256xf32>
    %308 = arith.divf %306, %307 : vector<8x256xf32>
    %309 = vector.extract_strided_slice %308 {offsets = [0, 0], sizes = [8, 128], strides = [1, 1]} : vector<8x256xf32> to vector<8x128xf32>
    %310 = vector.extract_strided_slice %308 {offsets = [0, 128], sizes = [8, 128], strides = [1, 1]} : vector<8x256xf32> to vector<8x128xf32>
    %311 = vector.extract_strided_slice %299 {offsets = [0, 256], sizes = [8, 128], strides = [1, 1]} : vector<8x384xf32> to vector<8x128xf32>
    %312 = vector.extract_strided_slice %300 {offsets = [0, 256], sizes = [8, 128], strides = [1, 1]} : vector<8x384xf32> to vector<8x128xf32>
    %313 = vector.broadcast %195 : vector<1x128xf32> to vector<8x128xf32>
    %314 = arith.addf %312, %313 : vector<8x128xf32>
    %315 = arith.mulf %309, %314 : vector<8x128xf32>
    %316 = arith.addf %311, %315 : vector<8x128xf32>
    %317 = math.tanh %316 : vector<8x128xf32>
    %cst_100 = arith.constant 1.000000e+00 : f32
    %318 = vector.broadcast %cst_100 : f32 to vector<8x128xf32>
    %319 = arith.subf %318, %310 : vector<8x128xf32>
    %320 = arith.mulf %319, %317 : vector<8x128xf32>
    %321 = arith.mulf %310, %298 : vector<8x128xf32>
    %322 = arith.addf %320, %321 : vector<8x128xf32>
    %c40_101 = arith.constant 40 : index
    %c0_102 = arith.constant 0 : index
    %323 = vector.load %arg13[%c40_101, %c0_102] : memref<56x384xf32, #tpu.memory_space<vmem>>, vector<8x384xf32>
    %cst_103 = arith.constant dense<0.000000e+00> : vector<8x384xf32>
    %324 = tpu.matmul %322, %193, %cst_103 {dimension_numbers = #tpu.dot_dimension_numbers<[1], [0], [0], [1], [0, 0, 1, 1], [], []>} : vector<8x128xf32>, vector<128x384xf32>, vector<8x384xf32> -> vector<8x384xf32>
    %325 = vector.extract_strided_slice %323 {offsets = [0, 0], sizes = [8, 256], strides = [1, 1]} : vector<8x384xf32> to vector<8x256xf32>
    %326 = vector.extract_strided_slice %324 {offsets = [0, 0], sizes = [8, 256], strides = [1, 1]} : vector<8x384xf32> to vector<8x256xf32>
    %327 = arith.addf %325, %326 : vector<8x256xf32>
    %328 = arith.negf %327 : vector<8x256xf32>
    %329 = math.exp %328 : vector<8x256xf32>
    %cst_104 = arith.constant 1.000000e+00 : f32
    %330 = vector.broadcast %cst_104 : f32 to vector<8x256xf32>
    %331 = arith.addf %330, %329 : vector<8x256xf32>
    %332 = arith.divf %330, %331 : vector<8x256xf32>
    %333 = vector.extract_strided_slice %332 {offsets = [0, 0], sizes = [8, 128], strides = [1, 1]} : vector<8x256xf32> to vector<8x128xf32>
    %334 = vector.extract_strided_slice %332 {offsets = [0, 128], sizes = [8, 128], strides = [1, 1]} : vector<8x256xf32> to vector<8x128xf32>
    %335 = vector.extract_strided_slice %323 {offsets = [0, 256], sizes = [8, 128], strides = [1, 1]} : vector<8x384xf32> to vector<8x128xf32>
    %336 = vector.extract_strided_slice %324 {offsets = [0, 256], sizes = [8, 128], strides = [1, 1]} : vector<8x384xf32> to vector<8x128xf32>
    %337 = vector.broadcast %195 : vector<1x128xf32> to vector<8x128xf32>
    %338 = arith.addf %336, %337 : vector<8x128xf32>
    %339 = arith.mulf %333, %338 : vector<8x128xf32>
    %340 = arith.addf %335, %339 : vector<8x128xf32>
    %341 = math.tanh %340 : vector<8x128xf32>
    %cst_105 = arith.constant 1.000000e+00 : f32
    %342 = vector.broadcast %cst_105 : f32 to vector<8x128xf32>
    %343 = arith.subf %342, %334 : vector<8x128xf32>
    %344 = arith.mulf %343, %341 : vector<8x128xf32>
    %345 = arith.mulf %334, %322 : vector<8x128xf32>
    %346 = arith.addf %344, %345 : vector<8x128xf32>
    %c48_106 = arith.constant 48 : index
    %c0_107 = arith.constant 0 : index
    %347 = vector.load %arg13[%c48_106, %c0_107] : memref<56x384xf32, #tpu.memory_space<vmem>>, vector<8x384xf32>
    %cst_108 = arith.constant dense<0.000000e+00> : vector<8x384xf32>
    %348 = tpu.matmul %346, %193, %cst_108 {dimension_numbers = #tpu.dot_dimension_numbers<[1], [0], [0], [1], [0, 0, 1, 1], [], []>} : vector<8x128xf32>, vector<128x384xf32>, vector<8x384xf32> -> vector<8x384xf32>
    %349 = vector.extract_strided_slice %347 {offsets = [0, 0], sizes = [8, 256], strides = [1, 1]} : vector<8x384xf32> to vector<8x256xf32>
    %350 = vector.extract_strided_slice %348 {offsets = [0, 0], sizes = [8, 256], strides = [1, 1]} : vector<8x384xf32> to vector<8x256xf32>
    %351 = arith.addf %349, %350 : vector<8x256xf32>
    %352 = arith.negf %351 : vector<8x256xf32>
    %353 = math.exp %352 : vector<8x256xf32>
    %cst_109 = arith.constant 1.000000e+00 : f32
    %354 = vector.broadcast %cst_109 : f32 to vector<8x256xf32>
    %355 = arith.addf %354, %353 : vector<8x256xf32>
    %356 = arith.divf %354, %355 : vector<8x256xf32>
    %357 = vector.extract_strided_slice %356 {offsets = [0, 0], sizes = [8, 128], strides = [1, 1]} : vector<8x256xf32> to vector<8x128xf32>
    %358 = vector.extract_strided_slice %356 {offsets = [0, 128], sizes = [8, 128], strides = [1, 1]} : vector<8x256xf32> to vector<8x128xf32>
    %359 = vector.extract_strided_slice %347 {offsets = [0, 256], sizes = [8, 128], strides = [1, 1]} : vector<8x384xf32> to vector<8x128xf32>
    %360 = vector.extract_strided_slice %348 {offsets = [0, 256], sizes = [8, 128], strides = [1, 1]} : vector<8x384xf32> to vector<8x128xf32>
    %361 = vector.broadcast %195 : vector<1x128xf32> to vector<8x128xf32>
    %362 = arith.addf %360, %361 : vector<8x128xf32>
    %363 = arith.mulf %357, %362 : vector<8x128xf32>
    %364 = arith.addf %359, %363 : vector<8x128xf32>
    %365 = math.tanh %364 : vector<8x128xf32>
    %cst_110 = arith.constant 1.000000e+00 : f32
    %366 = vector.broadcast %cst_110 : f32 to vector<8x128xf32>
    %367 = arith.subf %366, %358 : vector<8x128xf32>
    %368 = arith.mulf %367, %365 : vector<8x128xf32>
    %369 = arith.mulf %358, %346 : vector<8x128xf32>
    %370 = arith.addf %368, %369 : vector<8x128xf32>
    %c1_111 = arith.constant 1 : index
    %c0_112 = arith.constant 0 : index
    %c0_113 = arith.constant 0 : index
    %371 = vector.load %arg15[%c1_111, %c0_112, %c0_113] : memref<2x8x128xf32, #tpu.memory_space<vmem>>, vector<1x8x128xf32>
    %372 = vector.shape_cast %371 : vector<1x8x128xf32> to vector<8x128xf32>
    %373 = vector.shape_cast %370 : vector<8x128xf32> to vector<1x8x128xf32>
    tpu.vector_store %arg15[%c1_111, %c0_112, %c0_113], %373 {strides = array<i32>} : memref<2x8x128xf32, #tpu.memory_space<vmem>>, vector<1x8x128xf32>,
    %c0_i32_114 = arith.constant 0 : i32
    %374 = arith.cmpi eq, %arg0, %c0_i32_114 : i32
    %375 = arith.extui %374 : i1 to i32
    %c0_i32_115 = arith.constant 0 : i32
    %376 = arith.cmpi ne, %375, %c0_i32_115 : i32
    scf.if %376 {
      %c1_116 = arith.constant 1 : index
      %c0_117 = arith.constant 0 : index
      %c0_118 = arith.constant 0 : index
      %377 = vector.load %arg15[%c1_116, %c0_117, %c0_118] : memref<2x8x128xf32, #tpu.memory_space<vmem>>, vector<1x8x128xf32>
      %378 = vector.shape_cast %377 : vector<1x8x128xf32> to vector<8x128xf32>
      %c0_119 = arith.constant 0 : index
      %c0_120 = arith.constant 0 : index
      %379 = vector.load %arg10[%c0_119, %c0_120] : memref<128x128xf32, #tpu.memory_space<vmem>>, vector<128x128xf32>
      %cst_121 = arith.constant dense<0.000000e+00> : vector<8x128xf32>
      %380 = tpu.matmul %378, %379, %cst_121 {dimension_numbers = #tpu.dot_dimension_numbers<[1], [0], [0], [1], [0, 0, 1, 1], [], []>} : vector<8x128xf32>, vector<128x128xf32>, vector<8x128xf32> -> vector<8x128xf32>
      %c0_122 = arith.constant 0 : index
      %c0_123 = arith.constant 0 : index
      %381 = vector.load %arg11[%c0_122, %c0_123] : memref<1x128xf32, #tpu.memory_space<vmem>>, vector<1x128xf32>
      %382 = vector.broadcast %381 : vector<1x128xf32> to vector<8x128xf32>
      %383 = arith.addf %380, %382 : vector<8x128xf32>
      %c0_124 = arith.constant 0 : index
      %c0_125 = arith.constant 0 : index
      %384 = vector.load %arg12[%c0_124, %c0_125] : memref<8x128xf32, #tpu.memory_space<vmem>>, vector<8x128xf32>
      tpu.vector_store %arg12[%c0_124, %c0_125], %383 {strides = array<i32>} : memref<8x128xf32, #tpu.memory_space<vmem>>, vector<8x128xf32>,
    } else {
    }
    return
  }
  func.func @transform_0(%arg0: i32) -> (i32, i32) {
    %c0_i32 = arith.constant 0 : i32
    %c0_i32_0 = arith.constant 0 : i32
    return %arg0, %c0_i32 : i32, i32
  }
  func.func @transform_1(%arg0: i32) -> (i32, i32) {
    %c0_i32 = arith.constant 0 : i32
    %c0_i32_0 = arith.constant 0 : i32
    %c0_i32_1 = arith.constant 0 : i32
    return %c0_i32, %c0_i32_0 : i32, i32
  }
  func.func @transform_2(%arg0: i32) -> (i32, i32) {
    %c0_i32 = arith.constant 0 : i32
    %c0_i32_0 = arith.constant 0 : i32
    %c0_i32_1 = arith.constant 0 : i32
    return %c0_i32, %c0_i32_0 : i32, i32
  }
  func.func @transform_3(%arg0: i32) -> (i32, i32) {
    %c0_i32 = arith.constant 0 : i32
    %c0_i32_0 = arith.constant 0 : i32
    %c0_i32_1 = arith.constant 0 : i32
    return %c0_i32, %c0_i32_0 : i32, i32
  }
  func.func @transform_4(%arg0: i32) -> (i32, i32) {
    %c0_i32 = arith.constant 0 : i32
    %c0_i32_0 = arith.constant 0 : i32
    %c0_i32_1 = arith.constant 0 : i32
    return %c0_i32, %c0_i32_0 : i32, i32
  }
  func.func @transform_5(%arg0: i32) -> (i32, i32) {
    %c0_i32 = arith.constant 0 : i32
    %c0_i32_0 = arith.constant 0 : i32
    %c0_i32_1 = arith.constant 0 : i32
    return %c0_i32, %c0_i32_0 : i32, i32
  }
  func.func @transform_6(%arg0: i32) -> (i32, i32) {
    %c0_i32 = arith.constant 0 : i32
    %c0_i32_0 = arith.constant 0 : i32
    %c0_i32_1 = arith.constant 0 : i32
    return %c0_i32, %c0_i32_0 : i32, i32
  }
  func.func @transform_7(%arg0: i32) -> (i32, i32) {
    %c0_i32 = arith.constant 0 : i32
    %c0_i32_0 = arith.constant 0 : i32
    %c0_i32_1 = arith.constant 0 : i32
    return %c0_i32, %c0_i32_0 : i32, i32
  }
  func.func @transform_8(%arg0: i32) -> (i32, i32) {
    %c0_i32 = arith.constant 0 : i32
    %c0_i32_0 = arith.constant 0 : i32
    %c0_i32_1 = arith.constant 0 : i32
    return %c0_i32, %c0_i32_0 : i32, i32
  }
  func.func @transform_9(%arg0: i32) -> (i32, i32) {
    %c0_i32 = arith.constant 0 : i32
    %c0_i32_0 = arith.constant 0 : i32
    %c0_i32_1 = arith.constant 0 : i32
    return %c0_i32, %c0_i32_0 : i32, i32
  }
  func.func @transform_10(%arg0: i32) -> (i32, i32) {
    %c0_i32 = arith.constant 0 : i32
    %c0_i32_0 = arith.constant 0 : i32
    %c0_i32_1 = arith.constant 0 : i32
    return %c0_i32, %c0_i32_0 : i32, i32
  }
  func.func @transform_11(%arg0: i32) -> (i32, i32) {
    %c0_i32 = arith.constant 0 : i32
    %c0_i32_0 = arith.constant 0 : i32
    %c0_i32_1 = arith.constant 0 : i32
    return %c0_i32, %c0_i32_0 : i32, i32
  }
}

module attributes {stable_mosaic.version = 11 : i64} {
  func.func @_fused_gru_kernel(%arg0: i32, %arg1: memref<56x4xf32, #tpu.memory_space<vmem>>, %arg2: memref<4x384xf32, #tpu.memory_space<vmem>>, %arg3: memref<128x384xf32, #tpu.memory_space<vmem>>, %arg4: memref<1x384xf32, #tpu.memory_space<vmem>>, %arg5: memref<1x128xf32, #tpu.memory_space<vmem>>, %arg6: memref<128x384xf32, #tpu.memory_space<vmem>>, %arg7: memref<128x384xf32, #tpu.memory_space<vmem>>, %arg8: memref<1x384xf32, #tpu.memory_space<vmem>>, %arg9: memref<1x128xf32, #tpu.memory_space<vmem>>, %arg10: memref<128x128xf32, #tpu.memory_space<vmem>>, %arg11: memref<1x128xf32, #tpu.memory_space<vmem>>, %arg12: memref<8x128xf32, #tpu.memory_space<vmem>>, %arg13: memref<56x384xf32, #tpu.memory_space<vmem>>, %arg14: memref<56x128xf32, #tpu.memory_space<vmem>>, %arg15: memref<2x8x128xf32, #tpu.memory_space<vmem>>) attributes {dimension_semantics = [#tpu.dimension_semantics<arbitrary>], iteration_bounds = array<i64: 1>, scalar_prefetch = 0 : i64, scratch_operands = 3 : i64, tpu.core_type = #tpu.core_type<tc>, window_params = [{transform_indices = @transform_0, window_bounds = array<i64: 56, 4>}, {pipeline_mode = #tpu.pipeline_mode<synchronous>, transform_indices = @transform_1, window_bounds = array<i64: 4, 384>}, {pipeline_mode = #tpu.pipeline_mode<synchronous>, transform_indices = @transform_2, window_bounds = array<i64: 128, 384>}, {pipeline_mode = #tpu.pipeline_mode<synchronous>, transform_indices = @transform_3, window_bounds = array<i64: 1, 384>}, {pipeline_mode = #tpu.pipeline_mode<synchronous>, transform_indices = @transform_4, window_bounds = array<i64: 1, 128>}, {pipeline_mode = #tpu.pipeline_mode<synchronous>, transform_indices = @transform_5, window_bounds = array<i64: 128, 384>}, {pipeline_mode = #tpu.pipeline_mode<synchronous>, transform_indices = @transform_6, window_bounds = array<i64: 128, 384>}, {pipeline_mode = #tpu.pipeline_mode<synchronous>, transform_indices = @transform_7, window_bounds = array<i64: 1, 384>}, {pipeline_mode = #tpu.pipeline_mode<synchronous>, transform_indices = @transform_8, window_bounds = array<i64: 1, 128>}, {pipeline_mode = #tpu.pipeline_mode<synchronous>, transform_indices = @transform_9, window_bounds = array<i64: 128, 128>}, {pipeline_mode = #tpu.pipeline_mode<synchronous>, transform_indices = @transform_10, window_bounds = array<i64: 1, 128>}, {pipeline_mode = #tpu.pipeline_mode<synchronous>, transform_indices = @transform_11, window_bounds = array<i64: 8, 128>}]} {
    %c0_i32 = arith.constant 0 : i32
    %0 = arith.cmpi eq, %arg0, %c0_i32 : i32
    %1 = arith.extui %0 : i1 to i32
    %c0_i32_0 = arith.constant 0 : i32
    %2 = arith.cmpi ne, %1, %c0_i32_0 : i32
    scf.if %2 {
      %cst_116 = arith.constant 0.000000e+00 : f32
      %377 = vector.broadcast %cst_116 : f32 to vector<2x8x128xf32>
      %c0_117 = arith.constant 0 : index
      %c0_118 = arith.constant 0 : index
      %c0_119 = arith.constant 0 : index
      %378 = vector.load %arg15[%c0_117, %c0_118, %c0_119] : memref<2x8x128xf32, #tpu.memory_space<vmem>>, vector<2x8x128xf32>
      tpu.vector_store %arg15[%c0_117, %c0_118, %c0_119], %377 {strides = array<i32>} : memref<2x8x128xf32, #tpu.memory_space<vmem>>, vector<2x8x128xf32>,
    } else {
    }
    %c0 = arith.constant 0 : index
    %c0_1 = arith.constant 0 : index
    %3 = vector.load %arg2[%c0, %c0_1] : memref<4x384xf32, #tpu.memory_space<vmem>>, vector<4x384xf32>
    %c0_2 = arith.constant 0 : index
    %c0_3 = arith.constant 0 : index
    %4 = vector.load %arg3[%c0_2, %c0_3] : memref<128x384xf32, #tpu.memory_space<vmem>>, vector<128x384xf32>
    %c0_4 = arith.constant 0 : index
    %c0_5 = arith.constant 0 : index
    %5 = vector.load %arg4[%c0_4, %c0_5] : memref<1x384xf32, #tpu.memory_space<vmem>>, vector<1x384xf32>
    %c0_6 = arith.constant 0 : index
    %c0_7 = arith.constant 0 : index
    %6 = vector.load %arg5[%c0_6, %c0_7] : memref<1x128xf32, #tpu.memory_space<vmem>>, vector<1x128xf32>
    %c0_8 = arith.constant 0 : index
    %c0_9 = arith.constant 0 : index
    %7 = vector.load %arg1[%c0_8, %c0_9] : memref<56x4xf32, #tpu.memory_space<vmem>>, vector<56x4xf32>
    %cst = arith.constant dense<0.000000e+00> : vector<56x384xf32>
    %8 = tpu.matmul %7, %3, %cst {dimension_numbers = #tpu.dot_dimension_numbers<[1], [0], [0], [1], [0, 0, 1, 1], [], []>} : vector<56x4xf32>, vector<4x384xf32>, vector<56x384xf32> -> vector<56x384xf32>
    %9 = vector.broadcast %5 : vector<1x384xf32> to vector<56x384xf32>
    %10 = arith.addf %8, %9 : vector<56x384xf32>
    %c0_10 = arith.constant 0 : index
    %c0_11 = arith.constant 0 : index
    %11 = vector.load %arg13[%c0_10, %c0_11] : memref<56x384xf32, #tpu.memory_space<vmem>>, vector<56x384xf32>
    tpu.vector_store %arg13[%c0_10, %c0_11], %10 {strides = array<i32>} : memref<56x384xf32, #tpu.memory_space<vmem>>, vector<56x384xf32>,
    %c0_12 = arith.constant 0 : index
    %c0_13 = arith.constant 0 : index
    %c0_14 = arith.constant 0 : index
    %12 = vector.load %arg15[%c0_12, %c0_13, %c0_14] : memref<2x8x128xf32, #tpu.memory_space<vmem>>, vector<1x8x128xf32>
    %13 = vector.shape_cast %12 : vector<1x8x128xf32> to vector<8x128xf32>
    %c0_15 = arith.constant 0 : index
    %c0_16 = arith.constant 0 : index
    %14 = vector.load %arg13[%c0_15, %c0_16] : memref<56x384xf32, #tpu.memory_space<vmem>>, vector<8x384xf32>
    %cst_17 = arith.constant dense<0.000000e+00> : vector<8x384xf32>
    %15 = tpu.matmul %13, %4, %cst_17 {dimension_numbers = #tpu.dot_dimension_numbers<[1], [0], [0], [1], [0, 0, 1, 1], [], []>} : vector<8x128xf32>, vector<128x384xf32>, vector<8x384xf32> -> vector<8x384xf32>
    %16 = vector.extract_strided_slice %14 {offsets = [0, 0], sizes = [8, 256], strides = [1, 1]} : vector<8x384xf32> to vector<8x256xf32>
    %17 = vector.extract_strided_slice %15 {offsets = [0, 0], sizes = [8, 256], strides = [1, 1]} : vector<8x384xf32> to vector<8x256xf32>
    %18 = arith.addf %16, %17 : vector<8x256xf32>
    %19 = arith.negf %18 : vector<8x256xf32>
    %20 = math.exp %19 : vector<8x256xf32>
    %cst_18 = arith.constant 1.000000e+00 : f32
    %21 = vector.broadcast %cst_18 : f32 to vector<8x256xf32>
    %22 = arith.addf %21, %20 : vector<8x256xf32>
    %23 = arith.divf %21, %22 : vector<8x256xf32>
    %24 = vector.extract_strided_slice %23 {offsets = [0, 0], sizes = [8, 128], strides = [1, 1]} : vector<8x256xf32> to vector<8x128xf32>
    %25 = vector.extract_strided_slice %23 {offsets = [0, 128], sizes = [8, 128], strides = [1, 1]} : vector<8x256xf32> to vector<8x128xf32>
    %26 = vector.extract_strided_slice %14 {offsets = [0, 256], sizes = [8, 128], strides = [1, 1]} : vector<8x384xf32> to vector<8x128xf32>
    %27 = vector.extract_strided_slice %15 {offsets = [0, 256], sizes = [8, 128], strides = [1, 1]} : vector<8x384xf32> to vector<8x128xf32>
    %28 = vector.broadcast %6 : vector<1x128xf32> to vector<8x128xf32>
    %29 = arith.addf %27, %28 : vector<8x128xf32>
    %30 = arith.mulf %24, %29 : vector<8x128xf32>
    %31 = arith.addf %26, %30 : vector<8x128xf32>
    %32 = math.tanh %31 : vector<8x128xf32>
    %cst_19 = arith.constant 1.000000e+00 : f32
    %33 = vector.broadcast %cst_19 : f32 to vector<8x128xf32>
    %34 = arith.subf %33, %25 : vector<8x128xf32>
    %35 = arith.mulf %34, %32 : vector<8x128xf32>
    %36 = arith.mulf %25, %13 : vector<8x128xf32>
    %37 = arith.addf %35, %36 : vector<8x128xf32>
    %c0_20 = arith.constant 0 : index
    %c0_21 = arith.constant 0 : index
    %38 = vector.load %arg14[%c0_20, %c0_21] : memref<56x128xf32, #tpu.memory_space<vmem>>, vector<8x128xf32>
    tpu.vector_store %arg14[%c0_20, %c0_21], %37 {strides = array<i32>} : memref<56x128xf32, #tpu.memory_space<vmem>>, vector<8x128xf32>,
    %c8 = arith.constant 8 : index
    %c0_22 = arith.constant 0 : index
    %39 = vector.load %arg13[%c8, %c0_22] : memref<56x384xf32, #tpu.memory_space<vmem>>, vector<8x384xf32>
    %cst_23 = arith.constant dense<0.000000e+00> : vector<8x384xf32>
    %40 = tpu.matmul %37, %4, %cst_23 {dimension_numbers = #tpu.dot_dimension_numbers<[1], [0], [0], [1], [0, 0, 1, 1], [], []>} : vector<8x128xf32>, vector<128x384xf32>, vector<8x384xf32> -> vector<8x384xf32>
    %41 = vector.extract_strided_slice %39 {offsets = [0, 0], sizes = [8, 256], strides = [1, 1]} : vector<8x384xf32> to vector<8x256xf32>
    %42 = vector.extract_strided_slice %40 {offsets = [0, 0], sizes = [8, 256], strides = [1, 1]} : vector<8x384xf32> to vector<8x256xf32>
    %43 = arith.addf %41, %42 : vector<8x256xf32>
    %44 = arith.negf %43 : vector<8x256xf32>
    %45 = math.exp %44 : vector<8x256xf32>
    %cst_24 = arith.constant 1.000000e+00 : f32
    %46 = vector.broadcast %cst_24 : f32 to vector<8x256xf32>
    %47 = arith.addf %46, %45 : vector<8x256xf32>
    %48 = arith.divf %46, %47 : vector<8x256xf32>
    %49 = vector.extract_strided_slice %48 {offsets = [0, 0], sizes = [8, 128], strides = [1, 1]} : vector<8x256xf32> to vector<8x128xf32>
    %50 = vector.extract_strided_slice %48 {offsets = [0, 128], sizes = [8, 128], strides = [1, 1]} : vector<8x256xf32> to vector<8x128xf32>
    %51 = vector.extract_strided_slice %39 {offsets = [0, 256], sizes = [8, 128], strides = [1, 1]} : vector<8x384xf32> to vector<8x128xf32>
    %52 = vector.extract_strided_slice %40 {offsets = [0, 256], sizes = [8, 128], strides = [1, 1]} : vector<8x384xf32> to vector<8x128xf32>
    %53 = vector.broadcast %6 : vector<1x128xf32> to vector<8x128xf32>
    %54 = arith.addf %52, %53 : vector<8x128xf32>
    %55 = arith.mulf %49, %54 : vector<8x128xf32>
    %56 = arith.addf %51, %55 : vector<8x128xf32>
    %57 = math.tanh %56 : vector<8x128xf32>
    %cst_25 = arith.constant 1.000000e+00 : f32
    %58 = vector.broadcast %cst_25 : f32 to vector<8x128xf32>
    %59 = arith.subf %58, %50 : vector<8x128xf32>
    %60 = arith.mulf %59, %57 : vector<8x128xf32>
    %61 = arith.mulf %50, %37 : vector<8x128xf32>
    %62 = arith.addf %60, %61 : vector<8x128xf32>
    %c8_26 = arith.constant 8 : index
    %c0_27 = arith.constant 0 : index
    %63 = vector.load %arg14[%c8_26, %c0_27] : memref<56x128xf32, #tpu.memory_space<vmem>>, vector<8x128xf32>
    tpu.vector_store %arg14[%c8_26, %c0_27], %62 {strides = array<i32>} : memref<56x128xf32, #tpu.memory_space<vmem>>, vector<8x128xf32>,
    %c16 = arith.constant 16 : index
    %c0_28 = arith.constant 0 : index
    %64 = vector.load %arg13[%c16, %c0_28] : memref<56x384xf32, #tpu.memory_space<vmem>>, vector<8x384xf32>
    %cst_29 = arith.constant dense<0.000000e+00> : vector<8x384xf32>
    %65 = tpu.matmul %62, %4, %cst_29 {dimension_numbers = #tpu.dot_dimension_numbers<[1], [0], [0], [1], [0, 0, 1, 1], [], []>} : vector<8x128xf32>, vector<128x384xf32>, vector<8x384xf32> -> vector<8x384xf32>
    %66 = vector.extract_strided_slice %64 {offsets = [0, 0], sizes = [8, 256], strides = [1, 1]} : vector<8x384xf32> to vector<8x256xf32>
    %67 = vector.extract_strided_slice %65 {offsets = [0, 0], sizes = [8, 256], strides = [1, 1]} : vector<8x384xf32> to vector<8x256xf32>
    %68 = arith.addf %66, %67 : vector<8x256xf32>
    %69 = arith.negf %68 : vector<8x256xf32>
    %70 = math.exp %69 : vector<8x256xf32>
    %cst_30 = arith.constant 1.000000e+00 : f32
    %71 = vector.broadcast %cst_30 : f32 to vector<8x256xf32>
    %72 = arith.addf %71, %70 : vector<8x256xf32>
    %73 = arith.divf %71, %72 : vector<8x256xf32>
    %74 = vector.extract_strided_slice %73 {offsets = [0, 0], sizes = [8, 128], strides = [1, 1]} : vector<8x256xf32> to vector<8x128xf32>
    %75 = vector.extract_strided_slice %73 {offsets = [0, 128], sizes = [8, 128], strides = [1, 1]} : vector<8x256xf32> to vector<8x128xf32>
    %76 = vector.extract_strided_slice %64 {offsets = [0, 256], sizes = [8, 128], strides = [1, 1]} : vector<8x384xf32> to vector<8x128xf32>
    %77 = vector.extract_strided_slice %65 {offsets = [0, 256], sizes = [8, 128], strides = [1, 1]} : vector<8x384xf32> to vector<8x128xf32>
    %78 = vector.broadcast %6 : vector<1x128xf32> to vector<8x128xf32>
    %79 = arith.addf %77, %78 : vector<8x128xf32>
    %80 = arith.mulf %74, %79 : vector<8x128xf32>
    %81 = arith.addf %76, %80 : vector<8x128xf32>
    %82 = math.tanh %81 : vector<8x128xf32>
    %cst_31 = arith.constant 1.000000e+00 : f32
    %83 = vector.broadcast %cst_31 : f32 to vector<8x128xf32>
    %84 = arith.subf %83, %75 : vector<8x128xf32>
    %85 = arith.mulf %84, %82 : vector<8x128xf32>
    %86 = arith.mulf %75, %62 : vector<8x128xf32>
    %87 = arith.addf %85, %86 : vector<8x128xf32>
    %c16_32 = arith.constant 16 : index
    %c0_33 = arith.constant 0 : index
    %88 = vector.load %arg14[%c16_32, %c0_33] : memref<56x128xf32, #tpu.memory_space<vmem>>, vector<8x128xf32>
    tpu.vector_store %arg14[%c16_32, %c0_33], %87 {strides = array<i32>} : memref<56x128xf32, #tpu.memory_space<vmem>>, vector<8x128xf32>,
    %c24 = arith.constant 24 : index
    %c0_34 = arith.constant 0 : index
    %89 = vector.load %arg13[%c24, %c0_34] : memref<56x384xf32, #tpu.memory_space<vmem>>, vector<8x384xf32>
    %cst_35 = arith.constant dense<0.000000e+00> : vector<8x384xf32>
    %90 = tpu.matmul %87, %4, %cst_35 {dimension_numbers = #tpu.dot_dimension_numbers<[1], [0], [0], [1], [0, 0, 1, 1], [], []>} : vector<8x128xf32>, vector<128x384xf32>, vector<8x384xf32> -> vector<8x384xf32>
    %91 = vector.extract_strided_slice %89 {offsets = [0, 0], sizes = [8, 256], strides = [1, 1]} : vector<8x384xf32> to vector<8x256xf32>
    %92 = vector.extract_strided_slice %90 {offsets = [0, 0], sizes = [8, 256], strides = [1, 1]} : vector<8x384xf32> to vector<8x256xf32>
    %93 = arith.addf %91, %92 : vector<8x256xf32>
    %94 = arith.negf %93 : vector<8x256xf32>
    %95 = math.exp %94 : vector<8x256xf32>
    %cst_36 = arith.constant 1.000000e+00 : f32
    %96 = vector.broadcast %cst_36 : f32 to vector<8x256xf32>
    %97 = arith.addf %96, %95 : vector<8x256xf32>
    %98 = arith.divf %96, %97 : vector<8x256xf32>
    %99 = vector.extract_strided_slice %98 {offsets = [0, 0], sizes = [8, 128], strides = [1, 1]} : vector<8x256xf32> to vector<8x128xf32>
    %100 = vector.extract_strided_slice %98 {offsets = [0, 128], sizes = [8, 128], strides = [1, 1]} : vector<8x256xf32> to vector<8x128xf32>
    %101 = vector.extract_strided_slice %89 {offsets = [0, 256], sizes = [8, 128], strides = [1, 1]} : vector<8x384xf32> to vector<8x128xf32>
    %102 = vector.extract_strided_slice %90 {offsets = [0, 256], sizes = [8, 128], strides = [1, 1]} : vector<8x384xf32> to vector<8x128xf32>
    %103 = vector.broadcast %6 : vector<1x128xf32> to vector<8x128xf32>
    %104 = arith.addf %102, %103 : vector<8x128xf32>
    %105 = arith.mulf %99, %104 : vector<8x128xf32>
    %106 = arith.addf %101, %105 : vector<8x128xf32>
    %107 = math.tanh %106 : vector<8x128xf32>
    %cst_37 = arith.constant 1.000000e+00 : f32
    %108 = vector.broadcast %cst_37 : f32 to vector<8x128xf32>
    %109 = arith.subf %108, %100 : vector<8x128xf32>
    %110 = arith.mulf %109, %107 : vector<8x128xf32>
    %111 = arith.mulf %100, %87 : vector<8x128xf32>
    %112 = arith.addf %110, %111 : vector<8x128xf32>
    %c24_38 = arith.constant 24 : index
    %c0_39 = arith.constant 0 : index
    %113 = vector.load %arg14[%c24_38, %c0_39] : memref<56x128xf32, #tpu.memory_space<vmem>>, vector<8x128xf32>
    tpu.vector_store %arg14[%c24_38, %c0_39], %112 {strides = array<i32>} : memref<56x128xf32, #tpu.memory_space<vmem>>, vector<8x128xf32>,
    %c32 = arith.constant 32 : index
    %c0_40 = arith.constant 0 : index
    %114 = vector.load %arg13[%c32, %c0_40] : memref<56x384xf32, #tpu.memory_space<vmem>>, vector<8x384xf32>
    %cst_41 = arith.constant dense<0.000000e+00> : vector<8x384xf32>
    %115 = tpu.matmul %112, %4, %cst_41 {dimension_numbers = #tpu.dot_dimension_numbers<[1], [0], [0], [1], [0, 0, 1, 1], [], []>} : vector<8x128xf32>, vector<128x384xf32>, vector<8x384xf32> -> vector<8x384xf32>
    %116 = vector.extract_strided_slice %114 {offsets = [0, 0], sizes = [8, 256], strides = [1, 1]} : vector<8x384xf32> to vector<8x256xf32>
    %117 = vector.extract_strided_slice %115 {offsets = [0, 0], sizes = [8, 256], strides = [1, 1]} : vector<8x384xf32> to vector<8x256xf32>
    %118 = arith.addf %116, %117 : vector<8x256xf32>
    %119 = arith.negf %118 : vector<8x256xf32>
    %120 = math.exp %119 : vector<8x256xf32>
    %cst_42 = arith.constant 1.000000e+00 : f32
    %121 = vector.broadcast %cst_42 : f32 to vector<8x256xf32>
    %122 = arith.addf %121, %120 : vector<8x256xf32>
    %123 = arith.divf %121, %122 : vector<8x256xf32>
    %124 = vector.extract_strided_slice %123 {offsets = [0, 0], sizes = [8, 128], strides = [1, 1]} : vector<8x256xf32> to vector<8x128xf32>
    %125 = vector.extract_strided_slice %123 {offsets = [0, 128], sizes = [8, 128], strides = [1, 1]} : vector<8x256xf32> to vector<8x128xf32>
    %126 = vector.extract_strided_slice %114 {offsets = [0, 256], sizes = [8, 128], strides = [1, 1]} : vector<8x384xf32> to vector<8x128xf32>
    %127 = vector.extract_strided_slice %115 {offsets = [0, 256], sizes = [8, 128], strides = [1, 1]} : vector<8x384xf32> to vector<8x128xf32>
    %128 = vector.broadcast %6 : vector<1x128xf32> to vector<8x128xf32>
    %129 = arith.addf %127, %128 : vector<8x128xf32>
    %130 = arith.mulf %124, %129 : vector<8x128xf32>
    %131 = arith.addf %126, %130 : vector<8x128xf32>
    %132 = math.tanh %131 : vector<8x128xf32>
    %cst_43 = arith.constant 1.000000e+00 : f32
    %133 = vector.broadcast %cst_43 : f32 to vector<8x128xf32>
    %134 = arith.subf %133, %125 : vector<8x128xf32>
    %135 = arith.mulf %134, %132 : vector<8x128xf32>
    %136 = arith.mulf %125, %112 : vector<8x128xf32>
    %137 = arith.addf %135, %136 : vector<8x128xf32>
    %c32_44 = arith.constant 32 : index
    %c0_45 = arith.constant 0 : index
    %138 = vector.load %arg14[%c32_44, %c0_45] : memref<56x128xf32, #tpu.memory_space<vmem>>, vector<8x128xf32>
    tpu.vector_store %arg14[%c32_44, %c0_45], %137 {strides = array<i32>} : memref<56x128xf32, #tpu.memory_space<vmem>>, vector<8x128xf32>,
    %c40 = arith.constant 40 : index
    %c0_46 = arith.constant 0 : index
    %139 = vector.load %arg13[%c40, %c0_46] : memref<56x384xf32, #tpu.memory_space<vmem>>, vector<8x384xf32>
    %cst_47 = arith.constant dense<0.000000e+00> : vector<8x384xf32>
    %140 = tpu.matmul %137, %4, %cst_47 {dimension_numbers = #tpu.dot_dimension_numbers<[1], [0], [0], [1], [0, 0, 1, 1], [], []>} : vector<8x128xf32>, vector<128x384xf32>, vector<8x384xf32> -> vector<8x384xf32>
    %141 = vector.extract_strided_slice %139 {offsets = [0, 0], sizes = [8, 256], strides = [1, 1]} : vector<8x384xf32> to vector<8x256xf32>
    %142 = vector.extract_strided_slice %140 {offsets = [0, 0], sizes = [8, 256], strides = [1, 1]} : vector<8x384xf32> to vector<8x256xf32>
    %143 = arith.addf %141, %142 : vector<8x256xf32>
    %144 = arith.negf %143 : vector<8x256xf32>
    %145 = math.exp %144 : vector<8x256xf32>
    %cst_48 = arith.constant 1.000000e+00 : f32
    %146 = vector.broadcast %cst_48 : f32 to vector<8x256xf32>
    %147 = arith.addf %146, %145 : vector<8x256xf32>
    %148 = arith.divf %146, %147 : vector<8x256xf32>
    %149 = vector.extract_strided_slice %148 {offsets = [0, 0], sizes = [8, 128], strides = [1, 1]} : vector<8x256xf32> to vector<8x128xf32>
    %150 = vector.extract_strided_slice %148 {offsets = [0, 128], sizes = [8, 128], strides = [1, 1]} : vector<8x256xf32> to vector<8x128xf32>
    %151 = vector.extract_strided_slice %139 {offsets = [0, 256], sizes = [8, 128], strides = [1, 1]} : vector<8x384xf32> to vector<8x128xf32>
    %152 = vector.extract_strided_slice %140 {offsets = [0, 256], sizes = [8, 128], strides = [1, 1]} : vector<8x384xf32> to vector<8x128xf32>
    %153 = vector.broadcast %6 : vector<1x128xf32> to vector<8x128xf32>
    %154 = arith.addf %152, %153 : vector<8x128xf32>
    %155 = arith.mulf %149, %154 : vector<8x128xf32>
    %156 = arith.addf %151, %155 : vector<8x128xf32>
    %157 = math.tanh %156 : vector<8x128xf32>
    %cst_49 = arith.constant 1.000000e+00 : f32
    %158 = vector.broadcast %cst_49 : f32 to vector<8x128xf32>
    %159 = arith.subf %158, %150 : vector<8x128xf32>
    %160 = arith.mulf %159, %157 : vector<8x128xf32>
    %161 = arith.mulf %150, %137 : vector<8x128xf32>
    %162 = arith.addf %160, %161 : vector<8x128xf32>
    %c40_50 = arith.constant 40 : index
    %c0_51 = arith.constant 0 : index
    %163 = vector.load %arg14[%c40_50, %c0_51] : memref<56x128xf32, #tpu.memory_space<vmem>>, vector<8x128xf32>
    tpu.vector_store %arg14[%c40_50, %c0_51], %162 {strides = array<i32>} : memref<56x128xf32, #tpu.memory_space<vmem>>, vector<8x128xf32>,
    %c48 = arith.constant 48 : index
    %c0_52 = arith.constant 0 : index
    %164 = vector.load %arg13[%c48, %c0_52] : memref<56x384xf32, #tpu.memory_space<vmem>>, vector<8x384xf32>
    %cst_53 = arith.constant dense<0.000000e+00> : vector<8x384xf32>
    %165 = tpu.matmul %162, %4, %cst_53 {dimension_numbers = #tpu.dot_dimension_numbers<[1], [0], [0], [1], [0, 0, 1, 1], [], []>} : vector<8x128xf32>, vector<128x384xf32>, vector<8x384xf32> -> vector<8x384xf32>
    %166 = vector.extract_strided_slice %164 {offsets = [0, 0], sizes = [8, 256], strides = [1, 1]} : vector<8x384xf32> to vector<8x256xf32>
    %167 = vector.extract_strided_slice %165 {offsets = [0, 0], sizes = [8, 256], strides = [1, 1]} : vector<8x384xf32> to vector<8x256xf32>
    %168 = arith.addf %166, %167 : vector<8x256xf32>
    %169 = arith.negf %168 : vector<8x256xf32>
    %170 = math.exp %169 : vector<8x256xf32>
    %cst_54 = arith.constant 1.000000e+00 : f32
    %171 = vector.broadcast %cst_54 : f32 to vector<8x256xf32>
    %172 = arith.addf %171, %170 : vector<8x256xf32>
    %173 = arith.divf %171, %172 : vector<8x256xf32>
    %174 = vector.extract_strided_slice %173 {offsets = [0, 0], sizes = [8, 128], strides = [1, 1]} : vector<8x256xf32> to vector<8x128xf32>
    %175 = vector.extract_strided_slice %173 {offsets = [0, 128], sizes = [8, 128], strides = [1, 1]} : vector<8x256xf32> to vector<8x128xf32>
    %176 = vector.extract_strided_slice %164 {offsets = [0, 256], sizes = [8, 128], strides = [1, 1]} : vector<8x384xf32> to vector<8x128xf32>
    %177 = vector.extract_strided_slice %165 {offsets = [0, 256], sizes = [8, 128], strides = [1, 1]} : vector<8x384xf32> to vector<8x128xf32>
    %178 = vector.broadcast %6 : vector<1x128xf32> to vector<8x128xf32>
    %179 = arith.addf %177, %178 : vector<8x128xf32>
    %180 = arith.mulf %174, %179 : vector<8x128xf32>
    %181 = arith.addf %176, %180 : vector<8x128xf32>
    %182 = math.tanh %181 : vector<8x128xf32>
    %cst_55 = arith.constant 1.000000e+00 : f32
    %183 = vector.broadcast %cst_55 : f32 to vector<8x128xf32>
    %184 = arith.subf %183, %175 : vector<8x128xf32>
    %185 = arith.mulf %184, %182 : vector<8x128xf32>
    %186 = arith.mulf %175, %162 : vector<8x128xf32>
    %187 = arith.addf %185, %186 : vector<8x128xf32>
    %c48_56 = arith.constant 48 : index
    %c0_57 = arith.constant 0 : index
    %188 = vector.load %arg14[%c48_56, %c0_57] : memref<56x128xf32, #tpu.memory_space<vmem>>, vector<8x128xf32>
    tpu.vector_store %arg14[%c48_56, %c0_57], %187 {strides = array<i32>} : memref<56x128xf32, #tpu.memory_space<vmem>>, vector<8x128xf32>,
    %c0_58 = arith.constant 0 : index
    %c0_59 = arith.constant 0 : index
    %c0_60 = arith.constant 0 : index
    %189 = vector.load %arg15[%c0_58, %c0_59, %c0_60] : memref<2x8x128xf32, #tpu.memory_space<vmem>>, vector<1x8x128xf32>
    %190 = vector.shape_cast %189 : vector<1x8x128xf32> to vector<8x128xf32>
    %191 = vector.shape_cast %187 : vector<8x128xf32> to vector<1x8x128xf32>
    tpu.vector_store %arg15[%c0_58, %c0_59, %c0_60], %191 {strides = array<i32>} : memref<2x8x128xf32, #tpu.memory_space<vmem>>, vector<1x8x128xf32>,
    %c0_61 = arith.constant 0 : index
    %c0_62 = arith.constant 0 : index
    %192 = vector.load %arg6[%c0_61, %c0_62] : memref<128x384xf32, #tpu.memory_space<vmem>>, vector<128x384xf32>
    %c0_63 = arith.constant 0 : index
    %c0_64 = arith.constant 0 : index
    %193 = vector.load %arg7[%c0_63, %c0_64] : memref<128x384xf32, #tpu.memory_space<vmem>>, vector<128x384xf32>
    %c0_65 = arith.constant 0 : index
    %c0_66 = arith.constant 0 : index
    %194 = vector.load %arg8[%c0_65, %c0_66] : memref<1x384xf32, #tpu.memory_space<vmem>>, vector<1x384xf32>
    %c0_67 = arith.constant 0 : index
    %c0_68 = arith.constant 0 : index
    %195 = vector.load %arg9[%c0_67, %c0_68] : memref<1x128xf32, #tpu.memory_space<vmem>>, vector<1x128xf32>
    %c0_69 = arith.constant 0 : index
    %c0_70 = arith.constant 0 : index
    %196 = vector.load %arg14[%c0_69, %c0_70] : memref<56x128xf32, #tpu.memory_space<vmem>>, vector<56x128xf32>
    %cst_71 = arith.constant dense<0.000000e+00> : vector<56x384xf32>
    %197 = tpu.matmul %196, %192, %cst_71 {dimension_numbers = #tpu.dot_dimension_numbers<[1], [0], [0], [1], [0, 0, 1, 1], [], []>} : vector<56x128xf32>, vector<128x384xf32>, vector<56x384xf32> -> vector<56x384xf32>
    %198 = vector.broadcast %194 : vector<1x384xf32> to vector<56x384xf32>
    %199 = arith.addf %197, %198 : vector<56x384xf32>
    %c0_72 = arith.constant 0 : index
    %c0_73 = arith.constant 0 : index
    %200 = vector.load %arg13[%c0_72, %c0_73] : memref<56x384xf32, #tpu.memory_space<vmem>>, vector<56x384xf32>
    tpu.vector_store %arg13[%c0_72, %c0_73], %199 {strides = array<i32>} : memref<56x384xf32, #tpu.memory_space<vmem>>, vector<56x384xf32>,
    %c1 = arith.constant 1 : index
    %c0_74 = arith.constant 0 : index
    %c0_75 = arith.constant 0 : index
    %201 = vector.load %arg15[%c1, %c0_74, %c0_75] : memref<2x8x128xf32, #tpu.memory_space<vmem>>, vector<1x8x128xf32>
    %202 = vector.shape_cast %201 : vector<1x8x128xf32> to vector<8x128xf32>
    %c0_76 = arith.constant 0 : index
    %c0_77 = arith.constant 0 : index
    %203 = vector.load %arg13[%c0_76, %c0_77] : memref<56x384xf32, #tpu.memory_space<vmem>>, vector<8x384xf32>
    %cst_78 = arith.constant dense<0.000000e+00> : vector<8x384xf32>
    %204 = tpu.matmul %202, %193, %cst_78 {dimension_numbers = #tpu.dot_dimension_numbers<[1], [0], [0], [1], [0, 0, 1, 1], [], []>} : vector<8x128xf32>, vector<128x384xf32>, vector<8x384xf32> -> vector<8x384xf32>
    %205 = vector.extract_strided_slice %203 {offsets = [0, 0], sizes = [8, 256], strides = [1, 1]} : vector<8x384xf32> to vector<8x256xf32>
    %206 = vector.extract_strided_slice %204 {offsets = [0, 0], sizes = [8, 256], strides = [1, 1]} : vector<8x384xf32> to vector<8x256xf32>
    %207 = arith.addf %205, %206 : vector<8x256xf32>
    %208 = arith.negf %207 : vector<8x256xf32>
    %209 = math.exp %208 : vector<8x256xf32>
    %cst_79 = arith.constant 1.000000e+00 : f32
    %210 = vector.broadcast %cst_79 : f32 to vector<8x256xf32>
    %211 = arith.addf %210, %209 : vector<8x256xf32>
    %212 = arith.divf %210, %211 : vector<8x256xf32>
    %213 = vector.extract_strided_slice %212 {offsets = [0, 0], sizes = [8, 128], strides = [1, 1]} : vector<8x256xf32> to vector<8x128xf32>
    %214 = vector.extract_strided_slice %212 {offsets = [0, 128], sizes = [8, 128], strides = [1, 1]} : vector<8x256xf32> to vector<8x128xf32>
    %215 = vector.extract_strided_slice %203 {offsets = [0, 256], sizes = [8, 128], strides = [1, 1]} : vector<8x384xf32> to vector<8x128xf32>
    %216 = vector.extract_strided_slice %204 {offsets = [0, 256], sizes = [8, 128], strides = [1, 1]} : vector<8x384xf32> to vector<8x128xf32>
    %217 = vector.broadcast %195 : vector<1x128xf32> to vector<8x128xf32>
    %218 = arith.addf %216, %217 : vector<8x128xf32>
    %219 = arith.mulf %213, %218 : vector<8x128xf32>
    %220 = arith.addf %215, %219 : vector<8x128xf32>
    %221 = math.tanh %220 : vector<8x128xf32>
    %cst_80 = arith.constant 1.000000e+00 : f32
    %222 = vector.broadcast %cst_80 : f32 to vector<8x128xf32>
    %223 = arith.subf %222, %214 : vector<8x128xf32>
    %224 = arith.mulf %223, %221 : vector<8x128xf32>
    %225 = arith.mulf %214, %202 : vector<8x128xf32>
    %226 = arith.addf %224, %225 : vector<8x128xf32>
    %c8_81 = arith.constant 8 : index
    %c0_82 = arith.constant 0 : index
    %227 = vector.load %arg13[%c8_81, %c0_82] : memref<56x384xf32, #tpu.memory_space<vmem>>, vector<8x384xf32>
    %cst_83 = arith.constant dense<0.000000e+00> : vector<8x384xf32>
    %228 = tpu.matmul %226, %193, %cst_83 {dimension_numbers = #tpu.dot_dimension_numbers<[1], [0], [0], [1], [0, 0, 1, 1], [], []>} : vector<8x128xf32>, vector<128x384xf32>, vector<8x384xf32> -> vector<8x384xf32>
    %229 = vector.extract_strided_slice %227 {offsets = [0, 0], sizes = [8, 256], strides = [1, 1]} : vector<8x384xf32> to vector<8x256xf32>
    %230 = vector.extract_strided_slice %228 {offsets = [0, 0], sizes = [8, 256], strides = [1, 1]} : vector<8x384xf32> to vector<8x256xf32>
    %231 = arith.addf %229, %230 : vector<8x256xf32>
    %232 = arith.negf %231 : vector<8x256xf32>
    %233 = math.exp %232 : vector<8x256xf32>
    %cst_84 = arith.constant 1.000000e+00 : f32
    %234 = vector.broadcast %cst_84 : f32 to vector<8x256xf32>
    %235 = arith.addf %234, %233 : vector<8x256xf32>
    %236 = arith.divf %234, %235 : vector<8x256xf32>
    %237 = vector.extract_strided_slice %236 {offsets = [0, 0], sizes = [8, 128], strides = [1, 1]} : vector<8x256xf32> to vector<8x128xf32>
    %238 = vector.extract_strided_slice %236 {offsets = [0, 128], sizes = [8, 128], strides = [1, 1]} : vector<8x256xf32> to vector<8x128xf32>
    %239 = vector.extract_strided_slice %227 {offsets = [0, 256], sizes = [8, 128], strides = [1, 1]} : vector<8x384xf32> to vector<8x128xf32>
    %240 = vector.extract_strided_slice %228 {offsets = [0, 256], sizes = [8, 128], strides = [1, 1]} : vector<8x384xf32> to vector<8x128xf32>
    %241 = vector.broadcast %195 : vector<1x128xf32> to vector<8x128xf32>
    %242 = arith.addf %240, %241 : vector<8x128xf32>
    %243 = arith.mulf %237, %242 : vector<8x128xf32>
    %244 = arith.addf %239, %243 : vector<8x128xf32>
    %245 = math.tanh %244 : vector<8x128xf32>
    %cst_85 = arith.constant 1.000000e+00 : f32
    %246 = vector.broadcast %cst_85 : f32 to vector<8x128xf32>
    %247 = arith.subf %246, %238 : vector<8x128xf32>
    %248 = arith.mulf %247, %245 : vector<8x128xf32>
    %249 = arith.mulf %238, %226 : vector<8x128xf32>
    %250 = arith.addf %248, %249 : vector<8x128xf32>
    %c16_86 = arith.constant 16 : index
    %c0_87 = arith.constant 0 : index
    %251 = vector.load %arg13[%c16_86, %c0_87] : memref<56x384xf32, #tpu.memory_space<vmem>>, vector<8x384xf32>
    %cst_88 = arith.constant dense<0.000000e+00> : vector<8x384xf32>
    %252 = tpu.matmul %250, %193, %cst_88 {dimension_numbers = #tpu.dot_dimension_numbers<[1], [0], [0], [1], [0, 0, 1, 1], [], []>} : vector<8x128xf32>, vector<128x384xf32>, vector<8x384xf32> -> vector<8x384xf32>
    %253 = vector.extract_strided_slice %251 {offsets = [0, 0], sizes = [8, 256], strides = [1, 1]} : vector<8x384xf32> to vector<8x256xf32>
    %254 = vector.extract_strided_slice %252 {offsets = [0, 0], sizes = [8, 256], strides = [1, 1]} : vector<8x384xf32> to vector<8x256xf32>
    %255 = arith.addf %253, %254 : vector<8x256xf32>
    %256 = arith.negf %255 : vector<8x256xf32>
    %257 = math.exp %256 : vector<8x256xf32>
    %cst_89 = arith.constant 1.000000e+00 : f32
    %258 = vector.broadcast %cst_89 : f32 to vector<8x256xf32>
    %259 = arith.addf %258, %257 : vector<8x256xf32>
    %260 = arith.divf %258, %259 : vector<8x256xf32>
    %261 = vector.extract_strided_slice %260 {offsets = [0, 0], sizes = [8, 128], strides = [1, 1]} : vector<8x256xf32> to vector<8x128xf32>
    %262 = vector.extract_strided_slice %260 {offsets = [0, 128], sizes = [8, 128], strides = [1, 1]} : vector<8x256xf32> to vector<8x128xf32>
    %263 = vector.extract_strided_slice %251 {offsets = [0, 256], sizes = [8, 128], strides = [1, 1]} : vector<8x384xf32> to vector<8x128xf32>
    %264 = vector.extract_strided_slice %252 {offsets = [0, 256], sizes = [8, 128], strides = [1, 1]} : vector<8x384xf32> to vector<8x128xf32>
    %265 = vector.broadcast %195 : vector<1x128xf32> to vector<8x128xf32>
    %266 = arith.addf %264, %265 : vector<8x128xf32>
    %267 = arith.mulf %261, %266 : vector<8x128xf32>
    %268 = arith.addf %263, %267 : vector<8x128xf32>
    %269 = math.tanh %268 : vector<8x128xf32>
    %cst_90 = arith.constant 1.000000e+00 : f32
    %270 = vector.broadcast %cst_90 : f32 to vector<8x128xf32>
    %271 = arith.subf %270, %262 : vector<8x128xf32>
    %272 = arith.mulf %271, %269 : vector<8x128xf32>
    %273 = arith.mulf %262, %250 : vector<8x128xf32>
    %274 = arith.addf %272, %273 : vector<8x128xf32>
    %c24_91 = arith.constant 24 : index
    %c0_92 = arith.constant 0 : index
    %275 = vector.load %arg13[%c24_91, %c0_92] : memref<56x384xf32, #tpu.memory_space<vmem>>, vector<8x384xf32>
    %cst_93 = arith.constant dense<0.000000e+00> : vector<8x384xf32>
    %276 = tpu.matmul %274, %193, %cst_93 {dimension_numbers = #tpu.dot_dimension_numbers<[1], [0], [0], [1], [0, 0, 1, 1], [], []>} : vector<8x128xf32>, vector<128x384xf32>, vector<8x384xf32> -> vector<8x384xf32>
    %277 = vector.extract_strided_slice %275 {offsets = [0, 0], sizes = [8, 256], strides = [1, 1]} : vector<8x384xf32> to vector<8x256xf32>
    %278 = vector.extract_strided_slice %276 {offsets = [0, 0], sizes = [8, 256], strides = [1, 1]} : vector<8x384xf32> to vector<8x256xf32>
    %279 = arith.addf %277, %278 : vector<8x256xf32>
    %280 = arith.negf %279 : vector<8x256xf32>
    %281 = math.exp %280 : vector<8x256xf32>
    %cst_94 = arith.constant 1.000000e+00 : f32
    %282 = vector.broadcast %cst_94 : f32 to vector<8x256xf32>
    %283 = arith.addf %282, %281 : vector<8x256xf32>
    %284 = arith.divf %282, %283 : vector<8x256xf32>
    %285 = vector.extract_strided_slice %284 {offsets = [0, 0], sizes = [8, 128], strides = [1, 1]} : vector<8x256xf32> to vector<8x128xf32>
    %286 = vector.extract_strided_slice %284 {offsets = [0, 128], sizes = [8, 128], strides = [1, 1]} : vector<8x256xf32> to vector<8x128xf32>
    %287 = vector.extract_strided_slice %275 {offsets = [0, 256], sizes = [8, 128], strides = [1, 1]} : vector<8x384xf32> to vector<8x128xf32>
    %288 = vector.extract_strided_slice %276 {offsets = [0, 256], sizes = [8, 128], strides = [1, 1]} : vector<8x384xf32> to vector<8x128xf32>
    %289 = vector.broadcast %195 : vector<1x128xf32> to vector<8x128xf32>
    %290 = arith.addf %288, %289 : vector<8x128xf32>
    %291 = arith.mulf %285, %290 : vector<8x128xf32>
    %292 = arith.addf %287, %291 : vector<8x128xf32>
    %293 = math.tanh %292 : vector<8x128xf32>
    %cst_95 = arith.constant 1.000000e+00 : f32
    %294 = vector.broadcast %cst_95 : f32 to vector<8x128xf32>
    %295 = arith.subf %294, %286 : vector<8x128xf32>
    %296 = arith.mulf %295, %293 : vector<8x128xf32>
    %297 = arith.mulf %286, %274 : vector<8x128xf32>
    %298 = arith.addf %296, %297 : vector<8x128xf32>
    %c32_96 = arith.constant 32 : index
    %c0_97 = arith.constant 0 : index
    %299 = vector.load %arg13[%c32_96, %c0_97] : memref<56x384xf32, #tpu.memory_space<vmem>>, vector<8x384xf32>
    %cst_98 = arith.constant dense<0.000000e+00> : vector<8x384xf32>
    %300 = tpu.matmul %298, %193, %cst_98 {dimension_numbers = #tpu.dot_dimension_numbers<[1], [0], [0], [1], [0, 0, 1, 1], [], []>} : vector<8x128xf32>, vector<128x384xf32>, vector<8x384xf32> -> vector<8x384xf32>
    %301 = vector.extract_strided_slice %299 {offsets = [0, 0], sizes = [8, 256], strides = [1, 1]} : vector<8x384xf32> to vector<8x256xf32>
    %302 = vector.extract_strided_slice %300 {offsets = [0, 0], sizes = [8, 256], strides = [1, 1]} : vector<8x384xf32> to vector<8x256xf32>
    %303 = arith.addf %301, %302 : vector<8x256xf32>
    %304 = arith.negf %303 : vector<8x256xf32>
    %305 = math.exp %304 : vector<8x256xf32>
    %cst_99 = arith.constant 1.000000e+00 : f32
    %306 = vector.broadcast %cst_99 : f32 to vector<8x256xf32>
    %307 = arith.addf %306, %305 : vector<8x256xf32>
    %308 = arith.divf %306, %307 : vector<8x256xf32>
    %309 = vector.extract_strided_slice %308 {offsets = [0, 0], sizes = [8, 128], strides = [1, 1]} : vector<8x256xf32> to vector<8x128xf32>
    %310 = vector.extract_strided_slice %308 {offsets = [0, 128], sizes = [8, 128], strides = [1, 1]} : vector<8x256xf32> to vector<8x128xf32>
    %311 = vector.extract_strided_slice %299 {offsets = [0, 256], sizes = [8, 128], strides = [1, 1]} : vector<8x384xf32> to vector<8x128xf32>
    %312 = vector.extract_strided_slice %300 {offsets = [0, 256], sizes = [8, 128], strides = [1, 1]} : vector<8x384xf32> to vector<8x128xf32>
    %313 = vector.broadcast %195 : vector<1x128xf32> to vector<8x128xf32>
    %314 = arith.addf %312, %313 : vector<8x128xf32>
    %315 = arith.mulf %309, %314 : vector<8x128xf32>
    %316 = arith.addf %311, %315 : vector<8x128xf32>
    %317 = math.tanh %316 : vector<8x128xf32>
    %cst_100 = arith.constant 1.000000e+00 : f32
    %318 = vector.broadcast %cst_100 : f32 to vector<8x128xf32>
    %319 = arith.subf %318, %310 : vector<8x128xf32>
    %320 = arith.mulf %319, %317 : vector<8x128xf32>
    %321 = arith.mulf %310, %298 : vector<8x128xf32>
    %322 = arith.addf %320, %321 : vector<8x128xf32>
    %c40_101 = arith.constant 40 : index
    %c0_102 = arith.constant 0 : index
    %323 = vector.load %arg13[%c40_101, %c0_102] : memref<56x384xf32, #tpu.memory_space<vmem>>, vector<8x384xf32>
    %cst_103 = arith.constant dense<0.000000e+00> : vector<8x384xf32>
    %324 = tpu.matmul %322, %193, %cst_103 {dimension_numbers = #tpu.dot_dimension_numbers<[1], [0], [0], [1], [0, 0, 1, 1], [], []>} : vector<8x128xf32>, vector<128x384xf32>, vector<8x384xf32> -> vector<8x384xf32>
    %325 = vector.extract_strided_slice %323 {offsets = [0, 0], sizes = [8, 256], strides = [1, 1]} : vector<8x384xf32> to vector<8x256xf32>
    %326 = vector.extract_strided_slice %324 {offsets = [0, 0], sizes = [8, 256], strides = [1, 1]} : vector<8x384xf32> to vector<8x256xf32>
    %327 = arith.addf %325, %326 : vector<8x256xf32>
    %328 = arith.negf %327 : vector<8x256xf32>
    %329 = math.exp %328 : vector<8x256xf32>
    %cst_104 = arith.constant 1.000000e+00 : f32
    %330 = vector.broadcast %cst_104 : f32 to vector<8x256xf32>
    %331 = arith.addf %330, %329 : vector<8x256xf32>
    %332 = arith.divf %330, %331 : vector<8x256xf32>
    %333 = vector.extract_strided_slice %332 {offsets = [0, 0], sizes = [8, 128], strides = [1, 1]} : vector<8x256xf32> to vector<8x128xf32>
    %334 = vector.extract_strided_slice %332 {offsets = [0, 128], sizes = [8, 128], strides = [1, 1]} : vector<8x256xf32> to vector<8x128xf32>
    %335 = vector.extract_strided_slice %323 {offsets = [0, 256], sizes = [8, 128], strides = [1, 1]} : vector<8x384xf32> to vector<8x128xf32>
    %336 = vector.extract_strided_slice %324 {offsets = [0, 256], sizes = [8, 128], strides = [1, 1]} : vector<8x384xf32> to vector<8x128xf32>
    %337 = vector.broadcast %195 : vector<1x128xf32> to vector<8x128xf32>
    %338 = arith.addf %336, %337 : vector<8x128xf32>
    %339 = arith.mulf %333, %338 : vector<8x128xf32>
    %340 = arith.addf %335, %339 : vector<8x128xf32>
    %341 = math.tanh %340 : vector<8x128xf32>
    %cst_105 = arith.constant 1.000000e+00 : f32
    %342 = vector.broadcast %cst_105 : f32 to vector<8x128xf32>
    %343 = arith.subf %342, %334 : vector<8x128xf32>
    %344 = arith.mulf %343, %341 : vector<8x128xf32>
    %345 = arith.mulf %334, %322 : vector<8x128xf32>
    %346 = arith.addf %344, %345 : vector<8x128xf32>
    %c48_106 = arith.constant 48 : index
    %c0_107 = arith.constant 0 : index
    %347 = vector.load %arg13[%c48_106, %c0_107] : memref<56x384xf32, #tpu.memory_space<vmem>>, vector<8x384xf32>
    %cst_108 = arith.constant dense<0.000000e+00> : vector<8x384xf32>
    %348 = tpu.matmul %346, %193, %cst_108 {dimension_numbers = #tpu.dot_dimension_numbers<[1], [0], [0], [1], [0, 0, 1, 1], [], []>} : vector<8x128xf32>, vector<128x384xf32>, vector<8x384xf32> -> vector<8x384xf32>
    %349 = vector.extract_strided_slice %347 {offsets = [0, 0], sizes = [8, 256], strides = [1, 1]} : vector<8x384xf32> to vector<8x256xf32>
    %350 = vector.extract_strided_slice %348 {offsets = [0, 0], sizes = [8, 256], strides = [1, 1]} : vector<8x384xf32> to vector<8x256xf32>
    %351 = arith.addf %349, %350 : vector<8x256xf32>
    %352 = arith.negf %351 : vector<8x256xf32>
    %353 = math.exp %352 : vector<8x256xf32>
    %cst_109 = arith.constant 1.000000e+00 : f32
    %354 = vector.broadcast %cst_109 : f32 to vector<8x256xf32>
    %355 = arith.addf %354, %353 : vector<8x256xf32>
    %356 = arith.divf %354, %355 : vector<8x256xf32>
    %357 = vector.extract_strided_slice %356 {offsets = [0, 0], sizes = [8, 128], strides = [1, 1]} : vector<8x256xf32> to vector<8x128xf32>
    %358 = vector.extract_strided_slice %356 {offsets = [0, 128], sizes = [8, 128], strides = [1, 1]} : vector<8x256xf32> to vector<8x128xf32>
    %359 = vector.extract_strided_slice %347 {offsets = [0, 256], sizes = [8, 128], strides = [1, 1]} : vector<8x384xf32> to vector<8x128xf32>
    %360 = vector.extract_strided_slice %348 {offsets = [0, 256], sizes = [8, 128], strides = [1, 1]} : vector<8x384xf32> to vector<8x128xf32>
    %361 = vector.broadcast %195 : vector<1x128xf32> to vector<8x128xf32>
    %362 = arith.addf %360, %361 : vector<8x128xf32>
    %363 = arith.mulf %357, %362 : vector<8x128xf32>
    %364 = arith.addf %359, %363 : vector<8x128xf32>
    %365 = math.tanh %364 : vector<8x128xf32>
    %cst_110 = arith.constant 1.000000e+00 : f32
    %366 = vector.broadcast %cst_110 : f32 to vector<8x128xf32>
    %367 = arith.subf %366, %358 : vector<8x128xf32>
    %368 = arith.mulf %367, %365 : vector<8x128xf32>
    %369 = arith.mulf %358, %346 : vector<8x128xf32>
    %370 = arith.addf %368, %369 : vector<8x128xf32>
    %c1_111 = arith.constant 1 : index
    %c0_112 = arith.constant 0 : index
    %c0_113 = arith.constant 0 : index
    %371 = vector.load %arg15[%c1_111, %c0_112, %c0_113] : memref<2x8x128xf32, #tpu.memory_space<vmem>>, vector<1x8x128xf32>
    %372 = vector.shape_cast %371 : vector<1x8x128xf32> to vector<8x128xf32>
    %373 = vector.shape_cast %370 : vector<8x128xf32> to vector<1x8x128xf32>
    tpu.vector_store %arg15[%c1_111, %c0_112, %c0_113], %373 {strides = array<i32>} : memref<2x8x128xf32, #tpu.memory_space<vmem>>, vector<1x8x128xf32>,
    %c0_i32_114 = arith.constant 0 : i32
    %374 = arith.cmpi eq, %arg0, %c0_i32_114 : i32
    %375 = arith.extui %374 : i1 to i32
    %c0_i32_115 = arith.constant 0 : i32
    %376 = arith.cmpi ne, %375, %c0_i32_115 : i32
    scf.if %376 {
      %c1_116 = arith.constant 1 : index
      %c0_117 = arith.constant 0 : index
      %c0_118 = arith.constant 0 : index
      %377 = vector.load %arg15[%c1_116, %c0_117, %c0_118] : memref<2x8x128xf32, #tpu.memory_space<vmem>>, vector<1x8x128xf32>
      %378 = vector.shape_cast %377 : vector<1x8x128xf32> to vector<8x128xf32>
      %c0_119 = arith.constant 0 : index
      %c0_120 = arith.constant 0 : index
      %379 = vector.load %arg10[%c0_119, %c0_120] : memref<128x128xf32, #tpu.memory_space<vmem>>, vector<128x128xf32>
      %cst_121 = arith.constant dense<0.000000e+00> : vector<8x128xf32>
      %380 = tpu.matmul %378, %379, %cst_121 {dimension_numbers = #tpu.dot_dimension_numbers<[1], [0], [0], [1], [0, 0, 1, 1], [], []>} : vector<8x128xf32>, vector<128x128xf32>, vector<8x128xf32> -> vector<8x128xf32>
      %c0_122 = arith.constant 0 : index
      %c0_123 = arith.constant 0 : index
      %381 = vector.load %arg11[%c0_122, %c0_123] : memref<1x128xf32, #tpu.memory_space<vmem>>, vector<1x128xf32>
      %382 = vector.broadcast %381 : vector<1x128xf32> to vector<8x128xf32>
      %383 = arith.addf %380, %382 : vector<8x128xf32>
      %c0_124 = arith.constant 0 : index
      %c0_125 = arith.constant 0 : index
      %384 = vector.load %arg12[%c0_124, %c0_125] : memref<8x128xf32, #tpu.memory_space<vmem>>, vector<8x128xf32>
      tpu.vector_store %arg12[%c0_124, %c0_125], %383 {strides = array<i32>} : memref<8x128xf32, #tpu.memory_space<vmem>>, vector<8x128xf32>,
    } else {
    }
    return
  }
  func.func @transform_0(%arg0: i32) -> (i32, i32) {
    %c0_i32 = arith.constant 0 : i32
    %c0_i32_0 = arith.constant 0 : i32
    return %arg0, %c0_i32 : i32, i32
  }
  func.func @transform_1(%arg0: i32) -> (i32, i32) {
    %c0_i32 = arith.constant 0 : i32
    %c0_i32_0 = arith.constant 0 : i32
    %c0_i32_1 = arith.constant 0 : i32
    return %c0_i32, %c0_i32_0 : i32, i32
  }
  func.func @transform_2(%arg0: i32) -> (i32, i32) {
    %c0_i32 = arith.constant 0 : i32
    %c0_i32_0 = arith.constant 0 : i32
    %c0_i32_1 = arith.constant 0 : i32
    return %c0_i32, %c0_i32_0 : i32, i32
  }
  func.func @transform_3(%arg0: i32) -> (i32, i32) {
    %c0_i32 = arith.constant 0 : i32
    %c0_i32_0 = arith.constant 0 : i32
    %c0_i32_1 = arith.constant 0 : i32
    return %c0_i32, %c0_i32_0 : i32, i32
  }
  func.func @transform_4(%arg0: i32) -> (i32, i32) {
    %c0_i32 = arith.constant 0 : i32
    %c0_i32_0 = arith.constant 0 : i32
    %c0_i32_1 = arith.constant 0 : i32
    return %c0_i32, %c0_i32_0 : i32, i32
  }
  func.func @transform_5(%arg0: i32) -> (i32, i32) {
    %c0_i32 = arith.constant 0 : i32
    %c0_i32_0 = arith.constant 0 : i32
    %c0_i32_1 = arith.constant 0 : i32
    return %c0_i32, %c0_i32_0 : i32, i32
  }
  func.func @transform_6(%arg0: i32) -> (i32, i32) {
    %c0_i32 = arith.constant 0 : i32
    %c0_i32_0 = arith.constant 0 : i32
    %c0_i32_1 = arith.constant 0 : i32
    return %c0_i32, %c0_i32_0 : i32, i32
  }
  func.func @transform_7(%arg0: i32) -> (i32, i32) {
    %c0_i32 = arith.constant 0 : i32
    %c0_i32_0 = arith.constant 0 : i32
    %c0_i32_1 = arith.constant 0 : i32
    return %c0_i32, %c0_i32_0 : i32, i32
  }
  func.func @transform_8(%arg0: i32) -> (i32, i32) {
    %c0_i32 = arith.constant 0 : i32
    %c0_i32_0 = arith.constant 0 : i32
    %c0_i32_1 = arith.constant 0 : i32
    return %c0_i32, %c0_i32_0 : i32, i32
  }
  func.func @transform_9(%arg0: i32) -> (i32, i32) {
    %c0_i32 = arith.constant 0 : i32
    %c0_i32_0 = arith.constant 0 : i32
    %c0_i32_1 = arith.constant 0 : i32
    return %c0_i32, %c0_i32_0 : i32, i32
  }
  func.func @transform_10(%arg0: i32) -> (i32, i32) {
    %c0_i32 = arith.constant 0 : i32
    %c0_i32_0 = arith.constant 0 : i32
    %c0_i32_1 = arith.constant 0 : i32
    return %c0_i32, %c0_i32_0 : i32, i32
  }
  func.func @transform_11(%arg0: i32) -> (i32, i32) {
    %c0_i32 = arith.constant 0 : i32
    %c0_i32_0 = arith.constant 0 : i32
    %c0_i32_1 = arith.constant 0 : i32
    return %c0_i32, %c0_i32_0 : i32, i32
  }
}

</mosaic_0001>

<bundles_post_ra>
// kernel: gru_model_forward.1
= control target key start
LH: loop header
LB: loop body
LE: loop exit
PB: predicated region body
PF: predicated region fallthrough
CT: control target
= control target key end

     0   :  { %16 = vsyncpa [#allocation6], 0  ;;  %s6427_s0 = inlined_call_operand.vmem [shape: f32[56,4], index: 0, kind: input, shape index: {}]   ;;  %s6428_s1 = inlined_call_operand.vmem [shape: f32[4,384], index: 1, kind: input, shape index: {}]   ;;  %s6429_s2 = inlined_call_operand.hbm [shape: f32[128,384], index: 2, kind: input, shape index: {}]   ;;  %s6430_s3 = inlined_call_operand.vmem [shape: f32[1,384], index: 3, kind: input, shape index: {}]   ;;  %s6431_s4 = inlined_call_operand.vmem [shape: f32[1,128], index: 4, kind: input, shape index: {}]   ;;  %s6432_s5 = inlined_call_operand.hbm [shape: f32[128,384], index: 5, kind: input, shape index: {}]   ;;  %s6433_s6 = inlined_call_operand.hbm [shape: f32[128,384], index: 6, kind: input, shape index: {}]   ;;  %s6434_s7 = inlined_call_operand.vmem [shape: f32[1,384], index: 7, kind: input, shape index: {}]   ;;  %s6435_s8 = inlined_call_operand.vmem [shape: f32[1,128], index: 8, kind: input, shape index: {}]   ;;  %s6436_s9 = inlined_call_operand.hbm [shape: f32[128,128], index: 9, kind: input, shape index: {}]   ;;  %s6437_s10 = inlined_call_operand.vmem [shape: f32[1,128], index: 10, kind: input, shape index: {}]   ;;  %s6438_s11 = inlined_call_operand.vmem [shape: f32[8,128], index: 11, kind: output, shape index: {}]  }
   0x1   :  { %17 = vsyncpa [#allocation8], 0 }
   0x2   :  { %18 = vsyncpa [#allocation11], 0  ;;  %s5338_s17 = smov [#allocation7]   ;;  %s5339_s19 = smov [#allocation5]  }
   0x3   :  { %s44_s18 = sshll.u32 %s5338_s17, 4  ;;  %s28_s20 = sshll.u32 %s5339_s19, 4  ;;  %s45_s18 = int_to_ptr.vmem [resolvable:$true] %s44_s18  ;;  %s5409_s20 = int_to_ptr.vmem [resolvable:$true] %s28_s20 }
   0x4   :  { %s5244_s23 = scalar_lea.hbm %s6432_s5, 6144 }
   0x5   :  { %p5245_p0 = scmp.ne.s32.totalorder %s6432_s5, %s5244_s23  ;;  %p5248_p1 = scmp.lt.u32.totalorder %s5244_s23, %s6432_s5 }
   0x7   :  { %p5250_p2 = pnand %p5248_p1, %p5245_p0 }
   0x9   :  { %5253 = shalt.err (!%p5250_p2)
}
   0xa   :  { %s5254_s28 = scalar_lea.vmem %s45_s18, 6144  ;;  %p5259_p4 = scmp.lt.s32.totalorder %s45_s18, %s45_s18 }
   0xb   :  { %p5255_p3 = scmp.ne.s32.totalorder %s45_s18, %s5254_s28  ;;  %p5260_p5 = scmp.lt.s32.totalorder %s5254_s28, %s5254_s28 }
   0xd   :  { %p5261_p6 = por %p5260_p5, %p5259_p4 }
   0xf   :  { %p5262_p7 = pnand %p5261_p6, %p5255_p3 }
  0x11   :  { %5265 = shalt.err (!%p5262_p7)
}
  0x12   :  { %s5340_s29 = smov 384   ;;  %s5341_s30 = smov 24  }
  0x13   :  { %50 = dma.hbm_to_vmem [thread:$0]  %s6432_s5, 6144, %s45_s18, [#allocation8], %s5340_s29, %s5340_s29, %s5341_s30  }
  0x14   :  { %s5266_s16 = scalar_lea.hbm %s6429_s2, 6144 }
  0x15   :  { %p5267_p8 = scmp.ne.s32.totalorder %s6429_s2, %s5266_s16  ;;  %p5270_p9 = scmp.lt.u32.totalorder %s5266_s16, %s6429_s2 }
  0x17   :  { %p5272_p10 = pnand %p5270_p9, %p5267_p8 }
  0x19   :  { %5275 = shalt.err (!%p5272_p10)
}
  0x1a   :  { %s5276_s23 = scalar_lea.vmem %s5409_s20, 6144  ;;  %p5281_p12 = scmp.lt.s32.totalorder %s5409_s20, %s5409_s20 }
  0x1b   :  { %p5277_p11 = scmp.ne.s32.totalorder %s5409_s20, %s5276_s23  ;;  %p5282_p13 = scmp.lt.s32.totalorder %s5276_s23, %s5276_s23 }
  0x1d   :  { %p5283_p0 = por %p5282_p13, %p5281_p12 }
  0x1f   :  { %p5284_p1 = pnand %p5283_p0, %p5277_p11 }
  0x21   :  { %5287 = shalt.err (!%p5284_p1)
}
  0x22   :  { %34 = dma.hbm_to_vmem [thread:$0]  %s6429_s2, 6144, %s5409_s20, [#allocation6], %s5340_s29, %s5340_s29, %s5341_s30  }
  0x23   :  { %s5342_s24 = smov [#allocation9]   ;;  %s5343_s26 = smov [#allocation10]  }
  0x24   :  { %s56_s25 = sshll.u32 %s5342_s24, 4  ;;  %s72_s27 = sshll.u32 %s5343_s26, 4  ;;  %s57_s25 = int_to_ptr.vmem [resolvable:$true] %s56_s25  ;;  %s5446_s27 = int_to_ptr.vmem [resolvable:$true] %s72_s27 }
  0x25   :  { %s5288_s13 = scalar_lea.hbm %s6433_s6, 6144 }
  0x26   :  { %p5289_p2 = scmp.ne.s32.totalorder %s6433_s6, %s5288_s13  ;;  %p5292_p3 = scmp.lt.u32.totalorder %s5288_s13, %s6433_s6 }
  0x28   :  { %p5294_p4 = pnand %p5292_p3, %p5289_p2 }
  0x2a   :  { %5297 = shalt.err (!%p5294_p4)
}
  0x2b   :  { %s5298_s2 = scalar_lea.vmem %s57_s25, 6144  ;;  %p5303_p6 = scmp.lt.s32.totalorder %s57_s25, %s57_s25 }
  0x2c   :  { %p5299_p5 = scmp.ne.s32.totalorder %s57_s25, %s5298_s2  ;;  %p5304_p7 = scmp.lt.s32.totalorder %s5298_s2, %s5298_s2 }
  0x2e   :  { %p5305_p8 = por %p5304_p7, %p5303_p6 }
  0x30   :  { %p5306_p9 = pnand %p5305_p8, %p5299_p5 }
  0x32   :  { %5309 = shalt.err (!%p5306_p9)
}
  0x33   :  { %62 = dma.hbm_to_vmem [thread:$0]  %s6433_s6, 6144, %s57_s25, [#allocation8], %s5340_s29, %s5340_s29, %s5341_s30  }
  0x34   :  { %s5310_s23 = scalar_lea.hbm %s6436_s9, 2048 }
  0x35   :  { %p5311_p10 = scmp.ne.s32.totalorder %s6436_s9, %s5310_s23  ;;  %p5314_p11 = scmp.lt.u32.totalorder %s5310_s23, %s6436_s9 }
  0x37   :  { %p5316_p12 = pnand %p5314_p11, %p5311_p10 }
  0x39   :  { %5319 = shalt.err (!%p5316_p12)
}
  0x3a   :  { %s5320_s28 = scalar_lea.vmem %s5446_s27, 2048  ;;  %p5325_p0 = scmp.lt.s32.totalorder %s5446_s27, %s5446_s27 }
  0x3b   :  { %p5321_p13 = scmp.ne.s32.totalorder %s5446_s27, %s5320_s28  ;;  %p5326_p1 = scmp.lt.s32.totalorder %s5320_s28, %s5320_s28 }
  0x3d   :  { %p5327_p2 = por %p5326_p1, %p5325_p0 }
  0x3f   :  { %p5328_p3 = pnand %p5327_p2, %p5321_p13 }
  0x41   :  { %5331 = shalt.err (!%p5328_p3)
}
  0x42   :  { %s5344_s6 = smov 128   ;;  %s5345_s29 = smov 8  }
  0x43   :  { %78 = dma.hbm_to_vmem [thread:$0]  %s6436_s9, 2048, %s5446_s27, [#allocation11], %s5344_s6, %s5344_s6, %s5345_s29  }
  0x44   :  { %5332 = dma.done.wait [#allocation6], 6144  }
  0x45   :  { %5333 = vsyncadd [#allocation6], 4294961152 }
  0x46   :  { %5334 = dma.done.wait [#allocation8], 12288  }
  0x47   :  { %5335 = vsyncadd [#allocation8], 4294955008 }
  0x48   :  { %5336 = dma.done.wait [#allocation11], 2048  }
  0x49   :  { %5337 = vsyncadd [#allocation11], 4294965248  ;;  %v5346_v0 = vmov 0.0   ;;  %v99_v1 = vld [vmem:[%s6428_s1] sm:$0xff]  ;;  %vm199_vm0 = vcmask 1043456   ;;  %v102_v2 = vld [vmem:[#allocation5 + $0x8] sm:$0xff] }
  0x4a   :  { %270 = vmatprep.mubr.f32.mxu1 %v5346_v0  ;;  %502 = vmatprep.mubr.f32.mxu0 %v5346_v0  ;;  %v105_v3 = vld [vmem:[#allocation5 + $0x20] sm:$0xff]  ;;  %v176_v4 = vcombine.high %v99_v1, %v99_v1  ;;  %v104_v7 = vld [vmem:[#allocation5 + $0x18] sm:$0xff]  ;;  %vm177_vm1 = vcmask 31744   ;;  %v111_v11 = vld [vmem:[#allocation5 + $0x50] sm:$0xff]  ;;  %v5347_v25 = vmov 0.0|0.0   ;;  %vm5348_vm2 = vmmov 0  }
  0x4b   :  { %v5485_v5 = vpack.c.bf16 %v105_v3, %v102_v2  ;;  %v101_v6 = vld [vmem:[#allocation5] sm:$0xff]  ;;  %v108_v10 = vld [vmem:[#allocation5 + $0x38] sm:$0xff]  ;;  %v100_v12 = vld [vmem:[%s6428_s1 + $0x8] sm:$0xf] }
  0x4c   :  { %v5487_v8 = vpack.c.bf16 %v104_v7, %v101_v6  ;;  %v5492_v9 = vld [vmem:[%s6427_s0] sm:$0xff]  ;;  %3236 = vmatprep.subr.msk.mxu1 %vm199_vm0, %v176_v4  ;;  %v5499_v13 = vpack.c.bf16 %v111_v11, %v108_v10  ;;  %v107_v14 = vld [vmem:[#allocation5 + $0x30] sm:$0xff]  ;;  %v110_v15 = vld [vmem:[#allocation5 + $0x48] sm:$0xff] }
  0x4d   :  { %4172 = vmatprep.subr.bf16.mxu0 %v5485_v5  ;;  %3237 = vmatpush1.msk.msra.mxu1 %vm199_vm0, %v99_v1  ;;  %v5503_v16 = vpack.c.bf16 %v110_v15, %v107_v14  ;;  %v114_v17 = vld [vmem:[#allocation5 + $0x68] sm:$0xff]  ;;  %v117_v18 = vld [vmem:[#allocation5 + $0x80] sm:$0xff]  ;;  %v116_v21 = vld [vmem:[#allocation5 + $0x78] sm:$0xff] }
  0x4e   :  { %4174 = vmatpush1.bf16.msra.mxu0 %v5487_v8  ;;  %3238 = vmatmul.mubr.msk.f32.vlgmr.msra.gmra.mrb[0].mxu1 %vm177_vm1, %v5492_v9  ;;  %v5508_v19 = vpack.c.bf16 %v117_v18, %v114_v17  ;;  %v113_v20 = vld [vmem:[#allocation5 + $0x60] sm:$0xff]  ;;  %v5515_v22 = vld [vmem:[%s6427_s0 + $0x8] sm:$0xff]  ;;  %v120_v23 = vld [vmem:[#allocation5 + $0x98] sm:$0xff] }
  0x4f   :  { %3570 = vmatprep.subr.mxu1 %v5346_v0  ;;  %4176 = vmatprep.subr.bf16.mxu0 %v5499_v13  ;;  %v123_v24 = vld [vmem:[#allocation5 + $0xb0] sm:$0xff]  ;;  %v5520_v26 = vpack.c.bf16 %v116_v21, %v113_v20  ;;  %v122_v29 = vld [vmem:[#allocation5 + $0xa8] sm:$0xff]  ;;  %v129_v32 = vld [vmem:[#allocation5 + $0xe0] sm:$0xff] }
  0x50   :  { %3571 = vmatpush3.msk.msra.mxu1 %vm199_vm0, %v100_v12  ;;  %276 = vmatprep.mubr.f32.mxu1 %v5346_v0  ;;  %v5525_v27 = vpack.c.bf16 %v123_v24, %v120_v23  ;;  %v119_v28 = vld [vmem:[#allocation5 + $0x90] sm:$0xff]  ;;  %v126_v31 = vld [vmem:[#allocation5 + $0xc8] sm:$0xff]  ;;  %v125_v35 = vld [vmem:[#allocation5 + $0xc0] sm:$0xff] }
  0x51   :  { %4203 = vmatprep.subr.bf16.mxu1 %v5347_v25  ;;  %v5531_v30 = vld [vmem:[%s6427_s0 + $0x10] sm:$0xff]  ;;  %v5534_v33 = vpack.c.bf16 %v122_v29, %v119_v28  ;;  %v5539_v34 = vpack.c.bf16 %v129_v32, %v126_v31  ;;  %v128_v36 = vld [vmem:[#allocation5 + $0xd8] sm:$0xff]  ;;  %v134_v43 = vld [vmem:[#allocation5 + $0x108] sm:$0xff]  ;;  %v159_v29 = vlaneseq }
  0x52   :  { %4178 = vmatpush1.bf16.msra.mxu0 %v5503_v16  ;;  %3239 = vmatmul.mubr.msk.f32.gmra.mrb[2].mxu1 %vm177_vm1, %v5515_v22  ;;  %v5545_v37 = vld [vmem:[%s6427_s0 + $0x18] sm:$0xff]  ;;  %v135_v39 = vld [vmem:[#allocation5 + $0x110] sm:$0xff]  ;;  %v5548_v40 = vpack.c.bf16 %v128_v36, %v125_v35  ;;  %v5559_v44 = vld [vmem:[%s6427_s0 + $0x20] sm:$0xff] }
  0x53   :  { %4180 = vmatprep.subr.bf16.mxu0 %v5508_v19  ;;  %282 = vmatprep.mubr.f32.mxu1 %v5346_v0  ;;  %v132_v38 = vld [vmem:[#allocation5 + $0xf8] sm:$0xff]  ;;  %v131_v42 = vld [vmem:[#allocation5 + $0xf0] sm:$0xff]  ;;  %v138_v45 = vld [vmem:[#allocation5 + $0x128] sm:$0xff] }
  0x54   :  { %v5553_v41 = vpack.c.bf16 %v135_v39, %v132_v38  ;;  %v141_v46 = vld [vmem:[#allocation5 + $0x140] sm:$0xff]  ;;  %v5562_v47 = vpack.c.bf16 %v134_v43, %v131_v42  ;;  %v140_v50 = vld [vmem:[#allocation5 + $0x138] sm:$0xff]  ;;  %v5573_v51 = vld [vmem:[%s6427_s0 + $0x28] sm:$0xff] }
  0x55   :  { %v5567_v48 = vpack.c.bf16 %v141_v46, %v138_v45  ;;  %v137_v49 = vld [vmem:[#allocation5 + $0x120] sm:$0xff]  ;;  %v144_v52 = vld [vmem:[#allocation5 + $0x158] sm:$0xff]  ;;  %v147_v53 = vld [vmem:[#allocation5 + $0x170] sm:$0xff] }
  0x56   :  { %4182 = vmatpush1.bf16.msra.mxu0 %v5520_v26  ;;  %3240 = vmatmul.mubr.msk.f32.gmra.mrb[4].mxu1 %vm177_vm1, %v5531_v30  ;;  %v5576_v54 = vpack.c.bf16 %v140_v50, %v137_v49  ;;  %v5581_v55 = vpack.c.bf16 %v147_v53, %v144_v52  ;;  %v143_v56 = vld [vmem:[#allocation5 + $0x150] sm:$0xff]  ;;  %v146_v57 = vld [vmem:[#allocation5 + $0x168] sm:$0xff]  ;;  %v109_v63 = vld [vmem:[#allocation5 + $0x40] sm:$0xff] }
  0x57   :  { %4184 = vmatprep.subr.bf16.mxu0 %v5525_v27  ;;  %288 = vmatprep.mubr.f32.mxu1 %v5346_v0  ;;  %v5587_v58 = vld [vmem:[%s6427_s0 + $0x30] sm:$0xff]  ;;  %v106_v60 = vld [vmem:[#allocation5 + $0x28] sm:$0xff]  ;;  %v5590_v61 = vpack.c.bf16 %v146_v57, %v143_v56  ;;  %v112_v1 = vld [vmem:[#allocation5 + $0x58] sm:$0xff] }
  0x58   :  { %v103_v59 = vld [vmem:[#allocation5 + $0x10] sm:$0xff]  ;;  %v5604_v2 = vpack.c.bf16 %v112_v1, %v109_v63  ;;  %v118_v4 = vld [vmem:[#allocation5 + $0x88] sm:$0xff]  ;;  %v121_v7 = vld [vmem:[#allocation5 + $0xa0] sm:$0xff] }
  0x59   :  { %v5597_v62 = vpack.c.bf16 %v106_v60, %v103_v59  ;;  %v115_v3 = vld [vmem:[#allocation5 + $0x70] sm:$0xff]  ;;  %v130_v12 = vld [vmem:[#allocation5 + $0xe8] sm:$0xff]  ;;  %v133_v15 = vld [vmem:[#allocation5 + $0x100] sm:$0xff] }
  0x5a   :  { %4186 = vmatpush1.bf16.msra.mxu0 %v5534_v33  ;;  %3241 = vmatmul.mubr.msk.f32.gmra.mrb[6].mxu1 %vm177_vm1, %v5545_v37  ;;  %v5616_v6 = vpack.c.bf16 %v118_v4, %v115_v3  ;;  %v127_v11 = vld [vmem:[#allocation5 + $0xd0] sm:$0xff]  ;;  %v136_v17 = vld [vmem:[#allocation5 + $0x118] sm:$0xff]  ;;  %v142_v21 = vld [vmem:[#allocation5 + $0x148] sm:$0xff] }
  0x5b   :  { %4188 = vmatprep.subr.bf16.mxu0 %v5539_v34  ;;  %294 = vmatprep.mubr.f32.mxu1 %v5346_v0  ;;  %v5636_v14 = vpack.c.bf16 %v130_v12, %v127_v11  ;;  %v5646_v18 = vpack.c.bf16 %v136_v17, %v133_v15  ;;  %v139_v20 = vld [vmem:[#allocation5 + $0x130] sm:$0xff]  ;;  %v145_v23 = vld [vmem:[#allocation5 + $0x160] sm:$0xff]  ;;  %v148_v24 = vld [vmem:[#allocation5 + $0x178] sm:$0xff] }
  0x5c   :  { %v5666_v28 = vpack.c.bf16 %v148_v24, %v145_v23  ;;  %v149_v32 = vld [vmem:[%s6430_s3] sm:$0x7] }
  0x5e   :  { %4190 = vmatpush1.bf16.msra.mxu0 %v5548_v40  ;;  %3242 = vmatmul.mubr.msk.f32.gmra.mrb[8].mxu1 %vm177_vm1, %v5559_v44 }
  0x5f   :  { %4192 = vmatprep.subr.bf16.mxu0 %v5553_v41  ;;  %300 = vmatprep.mubr.f32.mxu1 %v5346_v0 }
  0x62   :  { %4194 = vmatpush1.bf16.msra.mxu0 %v5562_v47  ;;  %3243 = vmatmul.mubr.msk.f32.gmra.mrb[10].mxu1 %vm177_vm1, %v5573_v51 }
  0x63   :  { %4196 = vmatprep.subr.bf16.mxu0 %v5567_v48  ;;  %306 = vmatprep.mubr.f32.mxu1 %v5346_v0 }
  0x66   :  { %4198 = vmatpush1.bf16.msra.mxu0 %v5576_v54  ;;  %3244 = vmatmul.mubr.msk.f32.gmra.mrb[12].mxu1 %vm177_vm1, %v5587_v58 }
  0x67   :  { %4200 = vmatprep.subr.bf16.mxu0 %v5581_v55  ;;  %3572 = vmatprep.mubr.msk.f32.mxu1 %vm5348_vm2, %v5346_v0 }
  0x6a   :  { %4202 = vmatpush1.bf16.msra.mxu0 %v5590_v61  ;;  %3573 = vmatmul.mubr.msk.f32.vlgmr.msra.gmra.mrb[14].mxu1 %vm177_vm1, %v5492_v9  ;;  %v124_v9 = vld [vmem:[#allocation5 + $0xb8] sm:$0xff] }
  0x6b   :  { %4228 = vmatprep.subr.bf16.mxu0 %v5485_v5  ;;  %4205 = vmatpush3.bf16.msra.mxu1 %v5597_v62  ;;  %v5626_v10 = vpack.c.bf16 %v124_v9, %v121_v7 }
  0x6c   :  { %3575 = vmatprep.mubr.msk.f32.mxu1 %vm5348_vm2, %v5346_v0  ;;  %4206 = vmatprep.subr.bf16.mxu1 %v5347_v25 }
  0x6d   :  { %503 = vmatmul.mubr.f32.vlgmr.msra.gmra.mrb[0].mxu0 %v5346_v0 }
  0x6e   :  { %4230 = vmatpush1.bf16.msra.mxu0 %v5487_v8  ;;  %675 = vmatprep.mubr.f32.mxu0 %v5346_v0 }
  0x6f   :  { %3576 = vmatmul.mubr.msk.f32.gmra.mrb[16].mxu1 %vm177_vm1, %v5515_v22  ;;  %4232 = vmatprep.subr.bf16.mxu0 %v5499_v13  ;;  %v5656_v22 = vpack.c.bf16 %v142_v21, %v139_v20 }
  0x70   :  { %4208 = vmatpush3.bf16.msra.mxu1 %v5604_v2  ;;  %3578 = vmatprep.mubr.msk.f32.mxu1 %vm5348_vm2, %v5346_v0 }
  0x71   :  { %4209 = vmatprep.subr.bf16.mxu1 %v5347_v25 }
  0x72   :  { %4234 = vmatpush1.bf16.msra.mxu0 %v5503_v16 }
  0x73   :  { %3579 = vmatmul.mubr.msk.f32.gmra.mrb[18].mxu1 %vm177_vm1, %v5531_v30  ;;  %4236 = vmatprep.subr.bf16.mxu0 %v5508_v19  ;;  %v5696_v30 = vshrl.u32 %v159_v29, 7 }
  0x74   :  { %4211 = vmatpush3.bf16.msra.mxu1 %v5616_v6  ;;  %3581 = vmatprep.mubr.msk.f32.mxu1 %vm5348_vm2, %v5346_v0 }
  0x75   :  { %4212 = vmatprep.subr.bf16.mxu1 %v5347_v25  ;;  %v161_v31 = vsub.s32 0, %v5696_v30  ;;  %v6440_v36 = vsub.s32 1, %v5696_v30  ;;  %v6439_v17 = vsub.s32 2, %v5696_v30 }
  0x76   :  { %4238 = vmatpush1.bf16.msra.mxu0 %v5520_v26 }
  0x77   :  { %3582 = vmatmul.mubr.msk.f32.gmra.mrb[20].mxu1 %vm177_vm1, %v5545_v37  ;;  %4240 = vmatprep.subr.bf16.mxu0 %v5525_v27  ;;  %v162_v38 = vrot.slane %v149_v32, %v161_v31  ;;  %v166_v39 = vrot.slane %v149_v32, %v6440_v36 }
  0x78   :  { %4214 = vmatpush3.bf16.msra.mxu1 %v5626_v10  ;;  %3584 = vmatprep.mubr.msk.f32.mxu1 %vm5348_vm2, %v5346_v0 }
  0x79   :  { %4215 = vmatprep.subr.bf16.mxu1 %v5347_v25 }
  0x7a   :  { %4242 = vmatpush1.bf16.msra.mxu0 %v5534_v33 }
  0x7b   :  { %3585 = vmatmul.mubr.msk.f32.gmra.mrb[22].mxu1 %vm177_vm1, %v5559_v44  ;;  %4244 = vmatprep.subr.bf16.mxu0 %v5539_v34 }
  0x7c   :  { %4217 = vmatpush3.bf16.msra.mxu1 %v5636_v14  ;;  %3587 = vmatprep.mubr.msk.f32.mxu1 %vm5348_vm2, %v5346_v0 }
  0x7d   :  { %4218 = vmatprep.subr.bf16.mxu1 %v5347_v25 }
  0x7e   :  { %4246 = vmatpush1.bf16.msra.mxu0 %v5548_v40 }
  0x7f   :  { %3588 = vmatmul.mubr.msk.f32.gmra.mrb[24].mxu1 %vm177_vm1, %v5573_v51  ;;  %4248 = vmatprep.subr.bf16.mxu0 %v5553_v41 }
  0x80   :  { %4220 = vmatpush3.bf16.msra.mxu1 %v5646_v18  ;;  %3590 = vmatprep.mubr.msk.f32.mxu1 %vm5348_vm2, %v5346_v0 }
  0x81   :  { %4221 = vmatprep.subr.bf16.mxu1 %v5347_v25 }
  0x82   :  { %4250 = vmatpush1.bf16.msra.mxu0 %v5562_v47 }
  0x83   :  { %3591 = vmatmul.mubr.msk.f32.gmra.mrb[26].mxu1 %vm177_vm1, %v5587_v58  ;;  %4252 = vmatprep.subr.bf16.mxu0 %v5567_v48 }
  0x84   :  { %4223 = vmatpush3.bf16.msra.mxu1 %v5656_v22  ;;  %3625 = vmatprep.mubr.msk.f32.mxu1 %vm5348_vm2, %v5346_v0 }
  0x85   :  { %4224 = vmatprep.subr.bf16.mxu1 %v5347_v25 }
  0x86   :  { %4254 = vmatpush1.bf16.msra.mxu0 %v5576_v54 }
  0x87   :  { %4256 = vmatprep.subr.bf16.mxu0 %v5581_v55 }
  0x88   :  { %4226 = vmatpush3.bf16.msra.mxu1 %v5666_v28 }
  0x89   :  { %4259 = vmatprep.subr.bf16.mxu1 %v5347_v25 }
  0x8a   :  { %4258 = vmatpush1.bf16.msra.mxu0 %v5590_v61 }
  0x8b   :  { %3626 = vmatmul.mubr.f32.vlgmr.msra.gmra.mrb[28].mxu1 %v5346_v0  ;;  %4284 = vmatprep.subr.bf16.mxu0 %v5485_v5 }
  0x8c   :  { %4261 = vmatpush3.bf16.msra.mxu1 %v5597_v62  ;;  %3660 = vmatprep.mubr.msk.f32.mxu1 %vm5348_vm2, %v5346_v0 }
  0x8d   :  { %4262 = vmatprep.subr.bf16.mxu1 %v5347_v25 }
  0x90   :  { %4264 = vmatpush3.bf16.msra.mxu1 %v5604_v2 }
  0x91   :  { %4265 = vmatprep.subr.bf16.mxu1 %v5347_v25 }
  0x94   :  { %4267 = vmatpush3.bf16.msra.mxu1 %v5616_v6 }
  0x95   :  { %4268 = vmatprep.subr.bf16.mxu1 %v5347_v25 }
  0x98   :  { %4270 = vmatpush3.bf16.msra.mxu1 %v5626_v10 }
  0x99   :  { %4271 = vmatprep.subr.bf16.mxu1 %v5347_v25 }
  0x9c   :  { %4273 = vmatpush3.bf16.msra.mxu1 %v5636_v14 }
  0x9d   :  { %4274 = vmatprep.subr.bf16.mxu1 %v5347_v25 }
  0xa0   :  { %4276 = vmatpush3.bf16.msra.mxu1 %v5646_v18 }
  0xa1   :  { %4277 = vmatprep.subr.bf16.mxu1 %v5347_v25 }
  0xa4   :  { %4279 = vmatpush3.bf16.msra.mxu1 %v5656_v22 }
  0xa5   :  { %4280 = vmatprep.subr.bf16.mxu1 %v5347_v25 }
  0xa8   :  { %4282 = vmatpush3.bf16.msra.mxu1 %v5666_v28 }
  0xa9   :  { %4315 = vmatprep.subr.bf16.mxu1 %v5347_v25 }
 0x121   :  { %v272_v35 = vpop.f32.mrb[0].mxu1 }
 0x122   :  { %v274_v37 = vpop.f32.mrb[1].mxu1  ;;  %v273_v21 = vadd.f32 %v272_v35, %v162_v38 }
 0x123   :  { %v275_v24 = vadd.f32 %v274_v37, %v166_v39 }
 0x125   :  { %v278_v42 = vpop.f32.mrb[2].mxu1 }
 0x126   :  { %v5707_v43 = vadd.f32 %v278_v42, %v162_v38  ;;  %v280_v44 = vpop.f32.mrb[3].mxu1  ;;  %v170_v42 = vrot.slane %v149_v32, %v6439_v17 }
 0x127   :  { %v5709_v45 = vadd.f32 %v280_v44, %v166_v39 }
 0x129   :  { %v284_v46 = vpop.f32.mrb[4].mxu1 }
 0x12a   :  { %v5711_v49 = vadd.f32 %v284_v46, %v162_v38  ;;  %v286_v50 = vpop.f32.mrb[5].mxu1 }
 0x12b   :  { %v5713_v51 = vadd.f32 %v286_v50, %v166_v39 }
 0x12d   :  { %v290_v52 = vpop.f32.mrb[6].mxu1 }
 0x12e   :  { %v5715_v53 = vadd.f32 %v290_v52, %v162_v38  ;;  %v292_v56 = vpop.f32.mrb[7].mxu1 }
 0x12f   :  { %v5717_v57 = vadd.f32 %v292_v56, %v166_v39 }
 0x131   :  { %v296_v58 = vpop.f32.mrb[8].mxu1 }
 0x132   :  { %v5719_v59 = vadd.f32 %v296_v58, %v162_v38  ;;  %v298_v60 = vpop.f32.mrb[9].mxu1 }
 0x133   :  { %v5721_v63 = vadd.f32 %v298_v60, %v166_v39 }
 0x135   :  { %v302_v1 = vpop.f32.mrb[10].mxu1 }
 0x136   :  { %v5723_v3 = vadd.f32 %v302_v1, %v162_v38  ;;  %v304_v4 = vpop.f32.mrb[11].mxu1 }
 0x137   :  { %v5725_v7 = vadd.f32 %v304_v4, %v166_v39 }
 0x139   :  { %v308_v9 = vpop.f32.mrb[12].mxu1 }
 0x13a   :  { %v5727_v11 = vadd.f32 %v308_v9, %v162_v38  ;;  %v310_v12 = vpop.f32.mrb[13].mxu1 }
 0x13b   :  { %v5729_v15 = vadd.f32 %v310_v12, %v166_v39 }
 0x13d   :  { %v379_v20 = vpop.f32.mrb[14].mxu1 }
 0x13e   :  { %v3574_v23 = vpop.f32.mrb[15].mxu1 }
 0x140   :  { %v504_v29 = vpop.f32.mrb[0].mxu0 }
 0x141   :  { %v579_v44 = vadd.f32 %v504_v29, %v273_v21  ;;  %v506_v46 = vpop.f32.mrb[1].mxu0 }
 0x142   :  { %v580_v50 = vadd.f32 %v506_v46, %v275_v24  ;;  %v384_v52 = vpop.f32.mrb[16].mxu1 }
 0x143   :  { %v3253_v56 = vmul.f32 -1.442695, %v579_v44  ;;  %v5734_v58 = vadd.f32 %v384_v52, %v170_v42  ;;  %v3577_v60 = vpop.f32.mrb[17].mxu1 }
 0x144   :  { %v3254_v39 = vmul.f32 -1.442695, %v580_v50  ;;  %v5749_v50 = vld [vmem:[%s6431_s4] ss:$0 sm:$0xff] }
 0x145   :  { %5103 = vpow2.f32 %v3253_v56 }
 0x146   :  { %v389_v1 = vpop.f32.mrb[18].mxu1  ;;  %5105 = vpow2.f32 %v3254_v39 }
 0x147   :  { %v5736_v4 = vadd.f32 %v389_v1, %v170_v42  ;;  %v3580_v9 = vpop.f32.mrb[19].mxu1 }
 0x14a   :  { %v394_v35 = vpop.f32.mrb[20].mxu1 }
 0x14b   :  { %v5738_v38 = vadd.f32 %v394_v35, %v170_v42  ;;  %v3583_v37 = vpop.f32.mrb[21].mxu1 }
 0x14e   :  { %v399_v12 = vpop.f32.mrb[22].mxu1 }
 0x14f   :  { %v5104_v32 = vpop.eup %5103  ;;  %v5740_v21 = vadd.f32 %v399_v12, %v170_v42  ;;  %v3586_v23 = vpop.f32.mrb[23].mxu1 }
 0x150   :  { %v587_v24 = vadd.f32 1.0, %v5104_v32  ;;  %v5106_v1 = vpop.eup %5105  ;;  %v380_v32 = vadd.f32 %v379_v20, %v170_v42 }
 0x151   :  { %v588_v9 = vadd.f32 1.0, %v5106_v1 }
 0x152   :  { %v404_v29 = vpop.f32.mrb[24].mxu1  ;;  %5107 = vrcp.f32 %v587_v24 }
 0x153   :  { %v5742_v44 = vadd.f32 %v404_v29, %v170_v42  ;;  %v3589_v46 = vpop.f32.mrb[25].mxu1  ;;  %5109 = vrcp.f32 %v588_v9 }
 0x156   :  { %v409_v52 = vpop.f32.mrb[26].mxu1 }
 0x157   :  { %v5744_v56 = vadd.f32 %v409_v52, %v170_v42  ;;  %v3592_v60 = vpop.f32.mrb[27].mxu1 }
 0x15c   :  { %v5108_v12 = vpop.eup %5107 }
 0x15d   :  { %v5110_v29 = vpop.eup %5109 }
 0x15e   :  { %v575_v35 = vpop.f32.mrb[28].mxu1  ;;  %v603_v46 = vsub.f32 1.0, %v5110_v29  ;;  %v605_v17 = vmul.f32 0.0, %v5110_v29 }
 0x15f   :  { %v599_v37 = vadd.f32 %v5749_v50, %v575_v35  ;;  %v3627_v39 = vpop.f32.mrb[29].mxu1 }
 0x161   :  { %v600_v23 = vmul.f32 %v5108_v12, %v599_v37 }
 0x163   :  { %v601_v24 = vadd.f32 %v600_v23, %v380_v32 }
 0x165   :  { %5111 = vtanh.f32 %v601_v24 }
 0x16f   :  { %v5112_v52 = vpop.eup %5111 }
 0x170   :  { %v604_v60 = vmul.f32 %v5112_v52, %v603_v46 }
 0x172   :  { %v5752_v36 = vadd.f32 %v605_v17, %v604_v60 }
 0x174   :  { %676 = vmatmul.mubr.f32.vlgmr.msra.gmra.mrb[2].mxu0 %v5752_v36  ;;  %3661 = vmatmul.mubr.f32.vlgmr.msra.gmra.mrb[30].mxu1 %v5752_v36 }
 0x175   :  { %4286 = vmatpush1.bf16.msra.mxu0 %v5487_v8  ;;  %4317 = vmatpush3.bf16.msra.mxu1 %v5597_v62 }
 0x176   :  { %4288 = vmatprep.subr.bf16.mxu0 %v5499_v13  ;;  %4318 = vmatprep.subr.bf16.mxu1 %v5347_v25 }
 0x177   :  { %842 = vmatprep.mubr.f32.mxu0 %v5346_v0  ;;  %3695 = vmatprep.mubr.msk.f32.mxu1 %vm5348_vm2, %v5346_v0 }
 0x179   :  { %4290 = vmatpush1.bf16.msra.mxu0 %v5503_v16  ;;  %4320 = vmatpush3.bf16.msra.mxu1 %v5604_v2 }
 0x17a   :  { %4292 = vmatprep.subr.bf16.mxu0 %v5508_v19  ;;  %4321 = vmatprep.subr.bf16.mxu1 %v5347_v25 }
 0x17d   :  { %4294 = vmatpush1.bf16.msra.mxu0 %v5520_v26  ;;  %4323 = vmatpush3.bf16.msra.mxu1 %v5616_v6 }
 0x17e   :  { %4296 = vmatprep.subr.bf16.mxu0 %v5525_v27  ;;  %4324 = vmatprep.subr.bf16.mxu1 %v5347_v25 }
 0x181   :  { %4298 = vmatpush1.bf16.msra.mxu0 %v5534_v33  ;;  %4326 = vmatpush3.bf16.msra.mxu1 %v5626_v10 }
 0x182   :  { %4300 = vmatprep.subr.bf16.mxu0 %v5539_v34  ;;  %4327 = vmatprep.subr.bf16.mxu1 %v5347_v25 }
 0x185   :  { %4302 = vmatpush1.bf16.msra.mxu0 %v5548_v40  ;;  %4329 = vmatpush3.bf16.msra.mxu1 %v5636_v14 }
 0x186   :  { %4304 = vmatprep.subr.bf16.mxu0 %v5553_v41  ;;  %4330 = vmatprep.subr.bf16.mxu1 %v5347_v25 }
 0x189   :  { %4306 = vmatpush1.bf16.msra.mxu0 %v5562_v47  ;;  %4332 = vmatpush3.bf16.msra.mxu1 %v5646_v18 }
 0x18a   :  { %4308 = vmatprep.subr.bf16.mxu0 %v5567_v48  ;;  %4333 = vmatprep.subr.bf16.mxu1 %v5347_v25 }
 0x18d   :  { %4310 = vmatpush1.bf16.msra.mxu0 %v5576_v54  ;;  %4335 = vmatpush3.bf16.msra.mxu1 %v5656_v22 }
 0x18e   :  { %4312 = vmatprep.subr.bf16.mxu0 %v5581_v55  ;;  %4336 = vmatprep.subr.bf16.mxu1 %v5347_v25 }
 0x191   :  { %4314 = vmatpush1.bf16.msra.mxu0 %v5590_v61  ;;  %4338 = vmatpush3.bf16.msra.mxu1 %v5666_v28 }
 0x192   :  { %4340 = vmatprep.subr.bf16.mxu0 %v5485_v5  ;;  %4371 = vmatprep.subr.bf16.mxu1 %v5347_v25 }
 0x247   :  { %v677_v17 = vpop.f32.mrb[2].mxu0  ;;  %v748_v20 = vpop.f32.mrb[30].mxu1 }
 0x248   :  { %v752_v42 = vadd.f32 %v677_v17, %v5707_v43  ;;  %v679_v1 = vpop.f32.mrb[3].mxu0  ;;  %v3662_v9 = vpop.f32.mrb[31].mxu1  ;;  %v766_v29 = vadd.f32 %v5749_v50, %v748_v20 }
 0x249   :  { %v753_v35 = vadd.f32 %v679_v1, %v5709_v45 }
 0x24a   :  { %v3256_v37 = vmul.f32 -1.442695, %v752_v42 }
 0x24b   :  { %v3257_v39 = vmul.f32 -1.442695, %v753_v35 }
 0x24c   :  { %5113 = vpow2.f32 %v3256_v37 }
 0x24d   :  { %5115 = vpow2.f32 %v3257_v39 }
 0x256   :  { %v5114_v12 = vpop.eup %5113 }
 0x257   :  { %v760_v32 = vadd.f32 1.0, %v5114_v12  ;;  %v5116_v23 = vpop.eup %5115 }
 0x258   :  { %v761_v24 = vadd.f32 1.0, %v5116_v23 }
 0x259   :  { %5117 = vrcp.f32 %v760_v32 }
 0x25a   :  { %5119 = vrcp.f32 %v761_v24 }
 0x263   :  { %v5118_v46 = vpop.eup %5117 }
 0x264   :  { %v767_v52 = vmul.f32 %v5118_v46, %v766_v29  ;;  %v5120_v60 = vpop.eup %5119 }
 0x265   :  { %v770_v17 = vsub.f32 1.0, %v5120_v60  ;;  %v772_v1 = vmul.f32 %v5120_v60, %v5752_v36 }
 0x266   :  { %v768_v43 = vadd.f32 %v767_v52, %v5734_v58 }
 0x268   :  { %5121 = vtanh.f32 %v768_v43 }
 0x272   :  { %v5122_v45 = vpop.eup %5121 }
 0x273   :  { %v771_v42 = vmul.f32 %v5122_v45, %v770_v17 }
 0x275   :  { %v5796_v9 = vadd.f32 %v772_v1, %v771_v42 }
 0x277   :  { %843 = vmatmul.mubr.f32.vlgmr.msra.gmra.mrb[4].mxu0 %v5796_v9  ;;  %3696 = vmatmul.mubr.f32.vlgmr.msra.gmra.mrb[32].mxu1 %v5796_v9 }
 0x278   :  { %4342 = vmatpush1.bf16.msra.mxu0 %v5487_v8  ;;  %4373 = vmatpush3.bf16.msra.mxu1 %v5597_v62 }
 0x279   :  { %4344 = vmatprep.subr.bf16.mxu0 %v5499_v13  ;;  %4374 = vmatprep.subr.bf16.mxu1 %v5347_v25 }
 0x27a   :  { %1009 = vmatprep.mubr.f32.mxu0 %v5346_v0  ;;  %3730 = vmatprep.mubr.msk.f32.mxu1 %vm5348_vm2, %v5346_v0 }
 0x27c   :  { %4346 = vmatpush1.bf16.msra.mxu0 %v5503_v16  ;;  %4376 = vmatpush3.bf16.msra.mxu1 %v5604_v2 }
 0x27d   :  { %4348 = vmatprep.subr.bf16.mxu0 %v5508_v19  ;;  %4377 = vmatprep.subr.bf16.mxu1 %v5347_v25 }
 0x280   :  { %4350 = vmatpush1.bf16.msra.mxu0 %v5520_v26  ;;  %4379 = vmatpush3.bf16.msra.mxu1 %v5616_v6 }
 0x281   :  { %4352 = vmatprep.subr.bf16.mxu0 %v5525_v27  ;;  %4380 = vmatprep.subr.bf16.mxu1 %v5347_v25 }
 0x284   :  { %4354 = vmatpush1.bf16.msra.mxu0 %v5534_v33  ;;  %4382 = vmatpush3.bf16.msra.mxu1 %v5626_v10 }
 0x285   :  { %4356 = vmatprep.subr.bf16.mxu0 %v5539_v34  ;;  %4383 = vmatprep.subr.bf16.mxu1 %v5347_v25 }
 0x288   :  { %4358 = vmatpush1.bf16.msra.mxu0 %v5548_v40  ;;  %4385 = vmatpush3.bf16.msra.mxu1 %v5636_v14 }
 0x289   :  { %4360 = vmatprep.subr.bf16.mxu0 %v5553_v41  ;;  %4386 = vmatprep.subr.bf16.mxu1 %v5347_v25 }
 0x28c   :  { %4362 = vmatpush1.bf16.msra.mxu0 %v5562_v47  ;;  %4388 = vmatpush3.bf16.msra.mxu1 %v5646_v18 }
 0x28d   :  { %4364 = vmatprep.subr.bf16.mxu0 %v5567_v48  ;;  %4389 = vmatprep.subr.bf16.mxu1 %v5347_v25 }
 0x290   :  { %4366 = vmatpush1.bf16.msra.mxu0 %v5576_v54  ;;  %4391 = vmatpush3.bf16.msra.mxu1 %v5656_v22 }
 0x291   :  { %4368 = vmatprep.subr.bf16.mxu0 %v5581_v55  ;;  %4392 = vmatprep.subr.bf16.mxu1 %v5347_v25 }
 0x294   :  { %4370 = vmatpush1.bf16.msra.mxu0 %v5590_v61  ;;  %4394 = vmatpush3.bf16.msra.mxu1 %v5666_v28 }
 0x295   :  { %4396 = vmatprep.subr.bf16.mxu0 %v5485_v5  ;;  %4427 = vmatprep.subr.bf16.mxu1 %v5347_v25 }
 0x34a   :  { %v844_v58 = vpop.f32.mrb[4].mxu0  ;;  %v915_v20 = vpop.f32.mrb[32].mxu1 }
 0x34b   :  { %v919_v35 = vadd.f32 %v844_v58, %v5711_v49  ;;  %v846_v37 = vpop.f32.mrb[5].mxu0  ;;  %v3697_v39 = vpop.f32.mrb[33].mxu1  ;;  %v933_v43 = vadd.f32 %v5749_v50, %v915_v20 }
 0x34c   :  { %v920_v12 = vadd.f32 %v846_v37, %v5713_v51 }
 0x34d   :  { %v3258_v32 = vmul.f32 -1.442695, %v919_v35 }
 0x34e   :  { %v3259_v23 = vmul.f32 -1.442695, %v920_v12 }
 0x34f   :  { %5123 = vpow2.f32 %v3258_v32 }
 0x350   :  { %5125 = vpow2.f32 %v3259_v23 }
 0x359   :  { %v5124_v24 = vpop.eup %5123 }
 0x35a   :  { %v927_v29 = vadd.f32 1.0, %v5124_v24  ;;  %v5126_v46 = vpop.eup %5125 }
 0x35b   :  { %v928_v52 = vadd.f32 1.0, %v5126_v46 }
 0x35c   :  { %5127 = vrcp.f32 %v927_v29 }
 0x35d   :  { %5129 = vrcp.f32 %v928_v52 }
 0x366   :  { %v5128_v60 = vpop.eup %5127 }
 0x367   :  { %v934_v17 = vmul.f32 %v5128_v60, %v933_v43  ;;  %v5130_v45 = vpop.eup %5129 }
 0x368   :  { %v937_v42 = vsub.f32 1.0, %v5130_v45  ;;  %v939_v58 = vmul.f32 %v5130_v45, %v5796_v9 }
 0x369   :  { %v935_v49 = vadd.f32 %v934_v17, %v5736_v4 }
 0x36b   :  { %5131 = vtanh.f32 %v935_v49 }
 0x375   :  { %v5132_v51 = vpop.eup %5131 }
 0x376   :  { %v938_v1 = vmul.f32 %v5132_v51, %v937_v42 }
 0x378   :  { %v5840_v35 = vadd.f32 %v939_v58, %v938_v1 }
 0x37a   :  { %1010 = vmatmul.mubr.f32.vlgmr.msra.gmra.mrb[6].mxu0 %v5840_v35  ;;  %3731 = vmatmul.mubr.f32.vlgmr.msra.gmra.mrb[34].mxu1 %v5840_v35 }
 0x37b   :  { %4398 = vmatpush1.bf16.msra.mxu0 %v5487_v8  ;;  %4429 = vmatpush3.bf16.msra.mxu1 %v5597_v62 }
 0x37c   :  { %4400 = vmatprep.subr.bf16.mxu0 %v5499_v13  ;;  %4430 = vmatprep.subr.bf16.mxu1 %v5347_v25 }
 0x37d   :  { %1176 = vmatprep.mubr.f32.mxu0 %v5346_v0  ;;  %3765 = vmatprep.mubr.msk.f32.mxu1 %vm5348_vm2, %v5346_v0 }
 0x37f   :  { %4402 = vmatpush1.bf16.msra.mxu0 %v5503_v16  ;;  %4432 = vmatpush3.bf16.msra.mxu1 %v5604_v2 }
 0x380   :  { %4404 = vmatprep.subr.bf16.mxu0 %v5508_v19  ;;  %4433 = vmatprep.subr.bf16.mxu1 %v5347_v25 }
 0x383   :  { %4406 = vmatpush1.bf16.msra.mxu0 %v5520_v26  ;;  %4435 = vmatpush3.bf16.msra.mxu1 %v5616_v6 }
 0x384   :  { %4408 = vmatprep.subr.bf16.mxu0 %v5525_v27  ;;  %4436 = vmatprep.subr.bf16.mxu1 %v5347_v25 }
 0x387   :  { %4410 = vmatpush1.bf16.msra.mxu0 %v5534_v33  ;;  %4438 = vmatpush3.bf16.msra.mxu1 %v5626_v10 }
 0x388   :  { %4412 = vmatprep.subr.bf16.mxu0 %v5539_v34  ;;  %4439 = vmatprep.subr.bf16.mxu1 %v5347_v25 }
 0x38b   :  { %4414 = vmatpush1.bf16.msra.mxu0 %v5548_v40  ;;  %4441 = vmatpush3.bf16.msra.mxu1 %v5636_v14 }
 0x38c   :  { %4416 = vmatprep.subr.bf16.mxu0 %v5553_v41  ;;  %4442 = vmatprep.subr.bf16.mxu1 %v5347_v25 }
 0x38f   :  { %4418 = vmatpush1.bf16.msra.mxu0 %v5562_v47  ;;  %4444 = vmatpush3.bf16.msra.mxu1 %v5646_v18 }
 0x390   :  { %4420 = vmatprep.subr.bf16.mxu0 %v5567_v48  ;;  %4445 = vmatprep.subr.bf16.mxu1 %v5347_v25 }
 0x393   :  { %4422 = vmatpush1.bf16.msra.mxu0 %v5576_v54  ;;  %4447 = vmatpush3.bf16.msra.mxu1 %v5656_v22 }
 0x394   :  { %4424 = vmatprep.subr.bf16.mxu0 %v5581_v55  ;;  %4448 = vmatprep.subr.bf16.mxu1 %v5347_v25 }
 0x397   :  { %4426 = vmatpush1.bf16.msra.mxu0 %v5590_v61  ;;  %4450 = vmatpush3.bf16.msra.mxu1 %v5666_v28 }
 0x398   :  { %4452 = vmatprep.subr.bf16.mxu0 %v5485_v5  ;;  %4483 = vmatprep.subr.bf16.mxu1 %v5347_v25 }
 0x44d   :  { %v1011_v4 = vpop.f32.mrb[6].mxu0  ;;  %v1082_v20 = vpop.f32.mrb[34].mxu1 }
 0x44e   :  { %v1086_v37 = vadd.f32 %v1011_v4, %v5715_v53  ;;  %v1013_v39 = vpop.f32.mrb[7].mxu0  ;;  %v3732_v12 = vpop.f32.mrb[35].mxu1  ;;  %v1100_v60 = vadd.f32 %v5749_v50, %v1082_v20 }
 0x44f   :  { %v1087_v32 = vadd.f32 %v1013_v39, %v5717_v57 }
 0x450   :  { %v3260_v23 = vmul.f32 -1.442695, %v1086_v37 }
 0x451   :  { %v3261_v24 = vmul.f32 -1.442695, %v1087_v32 }
 0x452   :  { %5133 = vpow2.f32 %v3260_v23 }
 0x453   :  { %5135 = vpow2.f32 %v3261_v24 }
 0x45c   :  { %v5134_v29 = vpop.eup %5133 }
 0x45d   :  { %v1094_v46 = vadd.f32 1.0, %v5134_v29  ;;  %v5136_v52 = vpop.eup %5135 }
 0x45e   :  { %v1095_v43 = vadd.f32 1.0, %v5136_v52 }
 0x45f   :  { %5137 = vrcp.f32 %v1094_v46 }
 0x460   :  { %5139 = vrcp.f32 %v1095_v43 }
 0x469   :  { %v5138_v17 = vpop.eup %5137 }
 0x46a   :  { %v1101_v49 = vmul.f32 %v5138_v17, %v1100_v60  ;;  %v5140_v45 = vpop.eup %5139 }
 0x46b   :  { %v1104_v42 = vsub.f32 1.0, %v5140_v45  ;;  %v1106_v1 = vmul.f32 %v5140_v45, %v5840_v35 }
 0x46c   :  { %v1102_v53 = vadd.f32 %v1101_v49, %v5738_v38 }
 0x46e   :  { %5141 = vtanh.f32 %v1102_v53 }
 0x478   :  { %v5142_v57 = vpop.eup %5141 }
 0x479   :  { %v1105_v51 = vmul.f32 %v5142_v57, %v1104_v42  ;;  %v1618_v57 = vld [vmem:[#allocation7 + $0x38] sm:$0xff] }
 0x47b   :  { %v5884_v58 = vadd.f32 %v1106_v1, %v1105_v51  ;;  %v1621_v51 = vld [vmem:[#allocation7 + $0x50] sm:$0xff] }
 0x47d   :  { %1177 = vmatmul.mubr.f32.vlgmr.msra.gmra.mrb[8].mxu0 %v5884_v58  ;;  %3766 = vmatmul.mubr.f32.vlgmr.msra.gmra.mrb[36].mxu1 %v5884_v58 }
 0x47e   :  { %4454 = vmatpush1.bf16.msra.mxu0 %v5487_v8  ;;  %4485 = vmatpush3.bf16.msra.mxu1 %v5597_v62 }
 0x47f   :  { %4456 = vmatprep.subr.bf16.mxu0 %v5499_v13  ;;  %4486 = vmatprep.subr.bf16.mxu1 %v5347_v25 }
 0x480   :  { %1343 = vmatprep.mubr.f32.mxu0 %v5346_v0  ;;  %3800 = vmatprep.mubr.msk.f32.mxu1 %vm5348_vm2, %v5346_v0 }
 0x482   :  { %4458 = vmatpush1.bf16.msra.mxu0 %v5503_v16  ;;  %4488 = vmatpush3.bf16.msra.mxu1 %v5604_v2 }
 0x483   :  { %4460 = vmatprep.subr.bf16.mxu0 %v5508_v19  ;;  %4489 = vmatprep.subr.bf16.mxu1 %v5347_v25 }
 0x486   :  { %4462 = vmatpush1.bf16.msra.mxu0 %v5520_v26  ;;  %4491 = vmatpush3.bf16.msra.mxu1 %v5616_v6 }
 0x487   :  { %4464 = vmatprep.subr.bf16.mxu0 %v5525_v27  ;;  %4492 = vmatprep.subr.bf16.mxu1 %v5347_v25 }
 0x48a   :  { %4466 = vmatpush1.bf16.msra.mxu0 %v5534_v33  ;;  %4494 = vmatpush3.bf16.msra.mxu1 %v5626_v10 }
 0x48b   :  { %4468 = vmatprep.subr.bf16.mxu0 %v5539_v34  ;;  %4495 = vmatprep.subr.bf16.mxu1 %v5347_v25 }
 0x48e   :  { %4470 = vmatpush1.bf16.msra.mxu0 %v5548_v40  ;;  %4497 = vmatpush3.bf16.msra.mxu1 %v5636_v14 }
 0x48f   :  { %4472 = vmatprep.subr.bf16.mxu0 %v5553_v41  ;;  %4498 = vmatprep.subr.bf16.mxu1 %v5347_v25 }
 0x492   :  { %4474 = vmatpush1.bf16.msra.mxu0 %v5562_v47  ;;  %4500 = vmatpush3.bf16.msra.mxu1 %v5646_v18 }
 0x493   :  { %4476 = vmatprep.subr.bf16.mxu0 %v5567_v48  ;;  %4501 = vmatprep.subr.bf16.mxu1 %v5347_v25 }
 0x496   :  { %4478 = vmatpush1.bf16.msra.mxu0 %v5576_v54  ;;  %4503 = vmatpush3.bf16.msra.mxu1 %v5656_v22 }
 0x497   :  { %4480 = vmatprep.subr.bf16.mxu0 %v5581_v55  ;;  %4504 = vmatprep.subr.bf16.mxu1 %v5347_v25 }
 0x49a   :  { %4482 = vmatpush1.bf16.msra.mxu0 %v5590_v61  ;;  %4506 = vmatpush3.bf16.msra.mxu1 %v5666_v28 }
 0x49b   :  { %4508 = vmatprep.subr.bf16.mxu0 %v5485_v5  ;;  %4539 = vmatprep.subr.bf16.mxu1 %v5347_v25 }
 0x550   :  { %v1178_v38 = vpop.f32.mrb[8].mxu0  ;;  %v1249_v4 = vpop.f32.mrb[36].mxu1 }
 0x551   :  { %v1253_v20 = vadd.f32 %v1178_v38, %v5719_v59  ;;  %v1180_v37 = vpop.f32.mrb[9].mxu0  ;;  %v3767_v39 = vpop.f32.mrb[37].mxu1  ;;  %v1267_v5 = vadd.f32 %v5749_v50, %v1249_v4 }
 0x552   :  { %v1254_v12 = vadd.f32 %v1180_v37, %v5721_v63  ;;  %v4567_v39 = vpack.c.bf16 %v1621_v51, %v1618_v57  ;;  %v1647_v57 = vld [vmem:[#allocation7 + $0x120] sm:$0xff] }
 0x553   :  { %v3262_v32 = vmul.f32 -1.442695, %v1253_v20  ;;  %v1617_v20 = vld [vmem:[#allocation7 + $0x30] sm:$0xff] }
 0x554   :  { %v3263_v23 = vmul.f32 -1.442695, %v1254_v12  ;;  %v1619_v12 = vld [vmem:[#allocation7 + $0x40] sm:$0xff] }
 0x555   :  { %5143 = vpow2.f32 %v3262_v32  ;;  %v1622_v32 = vld [vmem:[#allocation7 + $0x58] sm:$0xff] }
 0x556   :  { %5145 = vpow2.f32 %v3263_v23  ;;  %v1624_v23 = vld [vmem:[#allocation7 + $0x68] sm:$0xff] }
 0x55f   :  { %v5144_v24 = vpop.eup %5143 }
 0x560   :  { %v1261_v29 = vadd.f32 1.0, %v5144_v24  ;;  %v5146_v46 = vpop.eup %5145  ;;  %v1627_v24 = vld [vmem:[#allocation7 + $0x80] sm:$0xff] }
 0x561   :  { %v1262_v52 = vadd.f32 1.0, %v5146_v46  ;;  %v4599_v46 = vpack.c.bf16 %v1622_v32, %v1619_v12  ;;  %v1653_v12 = vld [vmem:[#allocation7 + $0x150] sm:$0xff] }
 0x562   :  { %5147 = vrcp.f32 %v1261_v29 }
 0x563   :  { %5149 = vrcp.f32 %v1262_v52  ;;  %v1623_v52 = vld [vmem:[#allocation7 + $0x60] sm:$0xff] }
 0x56c   :  { %v5148_v43 = vpop.eup %5147 }
 0x56d   :  { %v1268_v60 = vmul.f32 %v5148_v43, %v1267_v5  ;;  %v5150_v17 = vpop.eup %5149  ;;  %v4571_v5 = vpack.c.bf16 %v1627_v24, %v1624_v23  ;;  %v1626_v43 = vld [vmem:[#allocation7 + $0x78] sm:$0xff]  ;;  %v1656_v23 = vld [vmem:[#allocation7 + $0x168] sm:$0xff]  ;;  %v1655_v24 = vld [vmem:[#allocation7 + $0x160] sm:$0xff] }
 0x56e   :  { %v1271_v49 = vsub.f32 1.0, %v5150_v17  ;;  %v1273_v45 = vmul.f32 %v5150_v17, %v5884_v58  ;;  %v1630_v17 = vld [vmem:[#allocation7 + $0x98] sm:$0xff] }
 0x56f   :  { %v1269_v59 = vadd.f32 %v1268_v60, %v5740_v21  ;;  %v1625_v60 = vld [vmem:[#allocation7 + $0x70] sm:$0xff] }
 0x571   :  { %5151 = vtanh.f32 %v1269_v59  ;;  %v1628_v59 = vld [vmem:[#allocation7 + $0x88] sm:$0xff] }
 0x57b   :  { %v5152_v63 = vpop.eup %5151 }
 0x57c   :  { %v1272_v53 = vmul.f32 %v5152_v63, %v1271_v49  ;;  %v1633_v49 = vld [vmem:[#allocation7 + $0xb0] sm:$0xff]  ;;  %v4573_v63 = vpack.c.bf16 %v1626_v43, %v1623_v52  ;;  %v1666_v43 = vld [vmem:[#allocation9 + $0x38] sm:$0xff] }
 0x57e   :  { %v5928_v42 = vadd.f32 %v1273_v45, %v1272_v53  ;;  %v4602_v53 = vpack.c.bf16 %v1628_v59, %v1625_v60  ;;  %v1629_v45 = vld [vmem:[#allocation7 + $0x90] sm:$0xff] }
 0x57f   :  { %v1669_v60 = vld [vmem:[#allocation9 + $0x50] sm:$0xff] }
 0x580   :  { %1344 = vmatmul.mubr.f32.vlgmr.msra.gmra.mrb[10].mxu0 %v5928_v42  ;;  %3801 = vmatmul.mubr.f32.vlgmr.msra.gmra.mrb[38].mxu1 %v5928_v42  ;;  %v6022_v59 = vpack.c.bf16 %v1669_v60, %v1666_v43  ;;  %v1685_v43 = vld [vmem:[#allocation9 + $0xd0] sm:$0xff]  ;;  %v1688_v60 = vld [vmem:[#allocation9 + $0xe8] sm:$0xff] }
 0x581   :  { %4510 = vmatpush1.bf16.msra.mxu0 %v5487_v8  ;;  %4541 = vmatpush3.bf16.msra.mxu1 %v5597_v62  ;;  %v1612_v8 = vld [vmem:[#allocation7 + $0x8] sm:$0xff] }
 0x582   :  { %4512 = vmatprep.subr.bf16.mxu0 %v5499_v13  ;;  %4542 = vmatprep.subr.bf16.mxu1 %v5347_v25  ;;  %v1615_v13 = vld [vmem:[#allocation7 + $0x20] sm:$0xff] }
 0x583   :  { %1510 = vmatprep.mubr.f32.mxu0 %v5346_v0  ;;  %3835 = vmatprep.mubr.msk.f32.mxu1 %vm5348_vm2, %v5346_v0 }
 0x585   :  { %4514 = vmatpush1.bf16.msra.mxu0 %v5503_v16  ;;  %4544 = vmatpush3.bf16.msra.mxu1 %v5604_v2  ;;  %v4563_v16 = vpack.c.bf16 %v1615_v13, %v1612_v8  ;;  %v4575_v8 = vpack.c.bf16 %v1633_v49, %v1630_v17  ;;  %v1632_v13 = vld [vmem:[#allocation7 + $0xa8] sm:$0xff]  ;;  %v1665_v17 = vld [vmem:[#allocation9 + $0x30] sm:$0xff] }
 0x586   :  { %4516 = vmatprep.subr.bf16.mxu0 %v5508_v19  ;;  %4545 = vmatprep.subr.bf16.mxu1 %v5347_v25  ;;  %v1668_v49 = vld [vmem:[#allocation9 + $0x48] sm:$0xff] }
 0x589   :  { %4518 = vmatpush1.bf16.msra.mxu0 %v5520_v26  ;;  %4547 = vmatpush3.bf16.msra.mxu1 %v5616_v6 }
 0x58a   :  { %4520 = vmatprep.subr.bf16.mxu0 %v5525_v27  ;;  %4548 = vmatprep.subr.bf16.mxu1 %v5347_v25 }
 0x58d   :  { %4522 = vmatpush1.bf16.msra.mxu0 %v5534_v33  ;;  %4550 = vmatpush3.bf16.msra.mxu1 %v5626_v10 }
 0x58e   :  { %4524 = vmatprep.subr.bf16.mxu0 %v5539_v34  ;;  %4551 = vmatprep.subr.bf16.mxu1 %v5347_v25 }
 0x591   :  { %4526 = vmatpush1.bf16.msra.mxu0 %v5548_v40  ;;  %4553 = vmatpush3.bf16.msra.mxu1 %v5636_v14 }
 0x592   :  { %4528 = vmatprep.subr.bf16.mxu0 %v5553_v41  ;;  %4554 = vmatprep.subr.bf16.mxu1 %v5347_v25 }
 0x595   :  { %4530 = vmatpush1.bf16.msra.mxu0 %v5562_v47  ;;  %4556 = vmatpush3.bf16.msra.mxu1 %v5646_v18  ;;  %v1611_v18 = vld [vmem:[#allocation7] sm:$0xff] }
 0x596   :  { %4532 = vmatprep.subr.bf16.mxu0 %v5567_v48  ;;  %4557 = vmatprep.subr.bf16.mxu1 %v5347_v25 }
 0x599   :  { %4534 = vmatpush1.bf16.msra.mxu0 %v5576_v54  ;;  %4559 = vmatpush3.bf16.msra.mxu1 %v5656_v22 }
 0x59a   :  { %4536 = vmatprep.subr.bf16.mxu0 %v5581_v55  ;;  %4560 = vmatprep.subr.bf16.mxu1 %v5347_v25 }
 0x59d   :  { %4538 = vmatpush1.bf16.msra.mxu0 %v5590_v61  ;;  %4562 = vmatpush3.bf16.msra.mxu1 %v5666_v28  ;;  %v1614_v28 = vld [vmem:[#allocation7 + $0x18] sm:$0xff] }
 0x59e   :  { %4595 = vmatprep.subr.bf16.mxu1 %v5347_v25  ;;  %4564 = vmatprep.subr.bf16.mxu0 %v4563_v16  ;;  %v4565_v4 = vpack.c.bf16 %v1614_v28, %v1611_v18  ;;  %v1631_v16 = vld [vmem:[#allocation7 + $0xa0] sm:$0xff]  ;;  %v1648_v28 = vld [vmem:[#allocation7 + $0x128] sm:$0xff] }
 0x59f   :  { %v1643_v18 = vld [vmem:[#allocation7 + $0x100] sm:$0xff] }
 0x653   :  { %v1345_v19 = vpop.f32.mrb[10].mxu0  ;;  %v1416_v26 = vpop.f32.mrb[38].mxu1 }
 0x654   :  { %v1420_v27 = vadd.f32 %v1345_v19, %v5723_v3  ;;  %v1347_v33 = vpop.f32.mrb[11].mxu0  ;;  %v3802_v34 = vpop.f32.mrb[39].mxu1  ;;  %v1434_v62 = vadd.f32 %v5749_v50, %v1416_v26  ;;  %v1613_v3 = vld [vmem:[#allocation7 + $0x10] sm:$0xff]  ;;  %v1634_v19 = vld [vmem:[#allocation7 + $0xb8] sm:$0xff]  ;;  %v1636_v26 = vld [vmem:[#allocation7 + $0xc8] sm:$0xff] }
 0x655   :  { %v1421_v40 = vadd.f32 %v1347_v33, %v5725_v7  ;;  %v1616_v7 = vld [vmem:[#allocation7 + $0x28] sm:$0xff]  ;;  %v4577_v33 = vpack.c.bf16 %v1632_v13, %v1629_v45  ;;  %v4605_v34 = vpack.c.bf16 %v1634_v19, %v1631_v16  ;;  %v1675_v45 = vld [vmem:[#allocation9 + $0x80] sm:$0xff]  ;;  %v1674_v16 = vld [vmem:[#allocation9 + $0x78] sm:$0xff] }
 0x656   :  { %v3264_v41 = vmul.f32 -1.442695, %v1420_v27  ;;  %v4596_v50 = vpack.c.bf16 %v1616_v7, %v1613_v3  ;;  %v1639_v27 = vld [vmem:[#allocation7 + $0xe0] sm:$0xff] }
 0x657   :  { %v3265_v47 = vmul.f32 -1.442695, %v1421_v40  ;;  %v1635_v40 = vld [vmem:[#allocation7 + $0xc0] sm:$0xff] }
 0x658   :  { %5153 = vpow2.f32 %v3264_v41  ;;  %v4579_v41 = vpack.c.bf16 %v1639_v27, %v1636_v26  ;;  %v1651_v3 = vld [vmem:[#allocation7 + $0x140] sm:$0xff]  ;;  %v1678_v26 = vld [vmem:[#allocation9 + $0x98] sm:$0xff]  ;;  %v1681_v27 = vld [vmem:[#allocation9 + $0xb0] sm:$0xff] }
 0x659   :  { %5155 = vpow2.f32 %v3265_v47  ;;  %v1638_v47 = vld [vmem:[#allocation7 + $0xd8] sm:$0xff]  ;;  %v4587_v51 = vpack.c.bf16 %v1651_v3, %v1648_v28  ;;  %v1671_v13 = vld [vmem:[#allocation9 + $0x60] sm:$0xff]  ;;  %v1696_v28 = vld [vmem:[#allocation9 + $0x128] sm:$0xff] }
 0x65a   :  { %v6030_v19 = vpack.c.bf16 %v1674_v16, %v1671_v13  ;;  %v1699_v3 = vld [vmem:[#allocation9 + $0x140] sm:$0xff]  ;;  %v1697_v13 = vld [vmem:[#allocation9 + $0x130] sm:$0xff]  ;;  %v1700_v16 = vld [vmem:[#allocation9 + $0x148] sm:$0xff] }
 0x662   :  { %v5154_v48 = vpop.eup %5153 }
 0x663   :  { %v1428_v54 = vadd.f32 1.0, %v5154_v48  ;;  %v5156_v55 = vpop.eup %5155  ;;  %v1637_v48 = vld [vmem:[#allocation7 + $0xd0] sm:$0xff] }
 0x664   :  { %v1429_v61 = vadd.f32 1.0, %v5156_v55  ;;  %v1642_v55 = vld [vmem:[#allocation7 + $0xf8] sm:$0xff] }
 0x665   :  { %5157 = vrcp.f32 %v1428_v54  ;;  %v1640_v54 = vld [vmem:[#allocation7 + $0xe8] sm:$0xff] }
 0x666   :  { %5159 = vrcp.f32 %v1429_v61  ;;  %v1645_v61 = vld [vmem:[#allocation7 + $0x110] sm:$0xff] }
 0x66f   :  { %v5158_v2 = vpop.eup %5157 }
 0x670   :  { %v1435_v6 = vmul.f32 %v5158_v2, %v1434_v62  ;;  %v5160_v14 = vpop.eup %5159  ;;  %v4581_v62 = vpack.c.bf16 %v1638_v47, %v1635_v40  ;;  %v4608_v2 = vpack.c.bf16 %v1640_v54, %v1637_v48  ;;  %v1680_v40 = vld [vmem:[#allocation9 + $0xa8] sm:$0xff]  ;;  %v1687_v48 = vld [vmem:[#allocation9 + $0xe0] sm:$0xff] }
 0x671   :  { %v1438_v22 = vsub.f32 1.0, %v5160_v14  ;;  %v1440_v38 = vmul.f32 %v5160_v14, %v5928_v42  ;;  %v1644_v14 = vld [vmem:[#allocation7 + $0x108] sm:$0xff] }
 0x672   :  { %v1436_v10 = vadd.f32 %v1435_v6, %v5742_v44  ;;  %v1620_v44 = vld [vmem:[#allocation7 + $0x48] sm:$0xff]  ;;  %v1641_v6 = vld [vmem:[#allocation7 + $0xf0] sm:$0xff] }
 0x673   :  { %v4569_v29 = vpack.c.bf16 %v1620_v44, %v1617_v20  ;;  %v4585_v7 = vpack.c.bf16 %v1644_v14, %v1641_v6  ;;  %v1657_v20 = vld [vmem:[#allocation7 + $0x170] sm:$0xff]  ;;  %v1684_v47 = vld [vmem:[#allocation9 + $0xc8] sm:$0xff] }
 0x674   :  { %5161 = vtanh.f32 %v1436_v10  ;;  %v4583_v10 = vpack.c.bf16 %v1645_v61, %v1642_v55  ;;  %v6040_v54 = vpack.c.bf16 %v1687_v48, %v1684_v47  ;;  %v1683_v55 = vld [vmem:[#allocation9 + $0xc0] sm:$0xff]  ;;  %v1686_v61 = vld [vmem:[#allocation9 + $0xd8] sm:$0xff]  ;;  %v1693_v6 = vld [vmem:[#allocation9 + $0x110] sm:$0xff] }
 0x675   :  { %v1689_v14 = vld [vmem:[#allocation9 + $0xf0] sm:$0xff] }
 0x67e   :  { %v5162_v21 = vpop.eup %5161 }
 0x67f   :  { %v1439_v1 = vmul.f32 %v5162_v21, %v1438_v22  ;;  %v1646_v22 = vld [vmem:[#allocation7 + $0x118] sm:$0xff] }
 0x680   :  { %v4611_v21 = vpack.c.bf16 %v1646_v22, %v1643_v18  ;;  %v1692_v18 = vld [vmem:[#allocation9 + $0x108] sm:$0xff] }
 0x681   :  { %v5971_v37 = vadd.f32 %v1440_v38, %v1439_v1  ;;  %v1650_v1 = vld [vmem:[#allocation7 + $0x138] sm:$0xff]  ;;  %v1649_v38 = vld [vmem:[#allocation7 + $0x130] sm:$0xff]  ;;  %v6048_v22 = vpack.c.bf16 %v1692_v18, %v1689_v14 }
 0x683   :  { %1511 = vmatmul.mubr.f32.vlgmr.msra.gmra.mrb[12].mxu0 %v5971_v37  ;;  %3836 = vmatmul.mubr.f32.vlgmr.msra.gmra.mrb[40].mxu1 %v5971_v37 }
 0x684   :  { %4566 = vmatpush1.bf16.msra.mxu0 %v4565_v4  ;;  %4597 = vmatpush3.bf16.msra.mxu1 %v4596_v50  ;;  %v1652_v4 = vld [vmem:[#allocation7 + $0x148] sm:$0xff]  ;;  %v1654_v50 = vld [vmem:[#allocation7 + $0x158] sm:$0xff] }
 0x685   :  { %4568 = vmatprep.subr.bf16.mxu0 %v4567_v39  ;;  %4598 = vmatprep.subr.bf16.mxu1 %v5347_v25  ;;  %v4589_v39 = vpack.c.bf16 %v1650_v1, %v1647_v57  ;;  %v4614_v44 = vpack.c.bf16 %v1652_v4, %v1649_v38  ;;  %v4591_v32 = vpack.c.bf16 %v1657_v20, %v1654_v50  ;;  %v1698_v57 = vld [vmem:[#allocation9 + $0x138] sm:$0xff]  ;;  %v1661_v1 = vld [vmem:[#allocation9 + $0x10] sm:$0xff]  ;;  %v1664_v38 = vld [vmem:[#allocation9 + $0x28] sm:$0xff] }
 0x686   :  { %1796 = vmatprep.mubr.f32.mxu0 %v5346_v0  ;;  %3870 = vmatprep.mubr.msk.f32.mxu1 %vm5348_vm2, %v5346_v0  ;;  %v6057_v4 = vpack.c.bf16 %v1664_v38, %v1661_v1  ;;  %v1702_v50 = vld [vmem:[#allocation9 + $0x158] sm:$0xff]  ;;  %v1705_v20 = vld [vmem:[#allocation9 + $0x170] sm:$0xff]  ;;  %v5243_v1 = vld [vmem:[%s6431_s4] ss:$0 sm:$0xff] }
 0x688   :  { %4570 = vmatpush1.bf16.msra.mxu0 %v4569_v29  ;;  %4600 = vmatpush3.bf16.msra.mxu1 %v4599_v46  ;;  %v1658_v29 = vld [vmem:[#allocation7 + $0x178] sm:$0xff]  ;;  %v4593_v46 = vpack.c.bf16 %v1656_v23, %v1653_v12  ;;  %v1704_v12 = vld [vmem:[#allocation9 + $0x168] sm:$0xff]  ;;  %v1667_v23 = vld [vmem:[#allocation9 + $0x40] sm:$0xff] }
 0x689   :  { %4572 = vmatprep.subr.bf16.mxu0 %v4571_v5  ;;  %4601 = vmatprep.subr.bf16.mxu1 %v5347_v25  ;;  %v4617_v52 = vpack.c.bf16 %v1658_v29, %v1655_v24  ;;  %v1670_v24 = vld [vmem:[#allocation9 + $0x58] sm:$0xff] }
 0x68a   :  { %v6067_v29 = vpack.c.bf16 %v1670_v24, %v1667_v23 }
 0x68c   :  { %4574 = vmatpush1.bf16.msra.mxu0 %v4573_v63  ;;  %4603 = vmatpush3.bf16.msra.mxu1 %v4602_v53  ;;  %v6024_v63 = vpack.c.bf16 %v1668_v49, %v1665_v17  ;;  %v1672_v53 = vld [vmem:[#allocation9 + $0x68] sm:$0xff]  ;;  %v6080_v17 = vpack.c.bf16 %v1688_v60, %v1685_v43  ;;  %v1691_v49 = vld [vmem:[#allocation9 + $0x100] sm:$0xff] }
 0x68d   :  { %4576 = vmatprep.subr.bf16.mxu0 %v4575_v8  ;;  %4604 = vmatprep.subr.bf16.mxu1 %v5347_v25  ;;  %v6028_v8 = vpack.c.bf16 %v1675_v45, %v1672_v53  ;;  %v1694_v53 = vld [vmem:[#allocation9 + $0x118] sm:$0xff] }
 0x68e   :  { %v6084_v45 = vpack.c.bf16 %v1694_v53, %v1691_v49 }
 0x690   :  { %4578 = vmatpush1.bf16.msra.mxu0 %v4577_v33  ;;  %4606 = vmatpush3.bf16.msra.mxu1 %v4605_v34  ;;  %v6034_v33 = vpack.c.bf16 %v1681_v27, %v1678_v26  ;;  %v1677_v34 = vld [vmem:[#allocation9 + $0x90] sm:$0xff]  ;;  %v6088_v26 = vpack.c.bf16 %v1700_v16, %v1697_v13  ;;  %v1703_v27 = vld [vmem:[#allocation9 + $0x160] sm:$0xff] }
 0x691   :  { %4580 = vmatprep.subr.bf16.mxu0 %v4579_v41  ;;  %4607 = vmatprep.subr.bf16.mxu1 %v5347_v25  ;;  %v6036_v41 = vpack.c.bf16 %v1680_v40, %v1677_v34  ;;  %v1706_v34 = vld [vmem:[#allocation9 + $0x178] sm:$0xff] }
 0x692   :  { %v6092_v40 = vpack.c.bf16 %v1706_v34, %v1703_v27 }
 0x694   :  { %4582 = vmatpush1.bf16.msra.mxu0 %v4581_v62  ;;  %4609 = vmatpush3.bf16.msra.mxu1 %v4608_v2  ;;  %v6042_v62 = vpack.c.bf16 %v1686_v61, %v1683_v55  ;;  %v1690_v2 = vld [vmem:[#allocation9 + $0xf8] sm:$0xff] }
 0x695   :  { %4584 = vmatprep.subr.bf16.mxu0 %v4583_v10  ;;  %4610 = vmatprep.subr.bf16.mxu1 %v5347_v25  ;;  %v6046_v10 = vpack.c.bf16 %v1693_v6, %v1690_v2 }
 0x698   :  { %4586 = vmatpush1.bf16.msra.mxu0 %v4585_v7  ;;  %4612 = vmatpush3.bf16.msra.mxu1 %v4611_v21  ;;  %v6052_v7 = vpack.c.bf16 %v1699_v3, %v1696_v28  ;;  %v1695_v21 = vld [vmem:[#allocation9 + $0x120] sm:$0xff] }
 0x699   :  { %4588 = vmatprep.subr.bf16.mxu0 %v4587_v51  ;;  %4613 = vmatprep.subr.bf16.mxu1 %v5347_v25  ;;  %v6054_v51 = vpack.c.bf16 %v1698_v57, %v1695_v21 }
 0x69c   :  { %4590 = vmatpush1.bf16.msra.mxu0 %v4589_v39  ;;  %4615 = vmatpush3.bf16.msra.mxu1 %v4614_v44  ;;  %v6061_v39 = vpack.c.bf16 %v1705_v20, %v1702_v50  ;;  %v1701_v44 = vld [vmem:[#allocation9 + $0x150] sm:$0xff] }
 0x69d   :  { %4592 = vmatprep.subr.bf16.mxu0 %v4591_v32  ;;  %4616 = vmatprep.subr.bf16.mxu1 %v5347_v25  ;;  %v6063_v32 = vpack.c.bf16 %v1704_v12, %v1701_v44 }
 0x6a0   :  { %4594 = vmatpush1.bf16.msra.mxu0 %v4593_v46  ;;  %4618 = vmatpush3.bf16.msra.mxu1 %v4617_v52  ;;  %v1673_v46 = vld [vmem:[#allocation9 + $0x70] sm:$0xff]  ;;  %v1676_v52 = vld [vmem:[#allocation9 + $0x88] sm:$0xff] }
 0x6a1   :  { %4651 = vmatprep.subr.bf16.mxu1 %v5347_v25 }
 0x6a3   :  { %1797 = vmatmul.mubr.f32.vlgmr.msra.gmra.mrb[14].mxu0 %v5752_v36  ;;  %3871 = vmatmul.mubr.f32.vlgmr.msra.gmra.mrb[42].mxu1 %v5752_v36  ;;  %v1660_v36 = vld [vmem:[#allocation9 + $0x8] sm:$0xff] }
 0x6a4   :  { %1802 = vmatprep.mubr.f32.mxu0 %v5346_v0  ;;  %3873 = vmatprep.mubr.msk.f32.mxu1 %vm5348_vm2, %v5346_v0 }
 0x6a5   :  { %4653 = vmatpush3.bf16.msra.mxu1 %v6057_v4 }
 0x6a6   :  { %4654 = vmatprep.subr.bf16.mxu1 %v5347_v25 }
 0x6a7   :  { %1803 = vmatmul.mubr.f32.gmra.mrb[16].mxu0 %v5796_v9  ;;  %3874 = vmatmul.mubr.f32.gmra.mrb[44].mxu1 %v5796_v9  ;;  %v1663_v9 = vld [vmem:[#allocation9 + $0x20] sm:$0xff] }
 0x6a8   :  { %1808 = vmatprep.mubr.f32.mxu0 %v5346_v0  ;;  %3876 = vmatprep.mubr.msk.f32.mxu1 %vm5348_vm2, %v5346_v0 }
 0x6a9   :  { %4656 = vmatpush3.bf16.msra.mxu1 %v6067_v29 }
 0x6aa   :  { %4657 = vmatprep.subr.bf16.mxu1 %v5347_v25 }
 0x6ab   :  { %1809 = vmatmul.mubr.f32.gmra.mrb[18].mxu0 %v5840_v35  ;;  %3877 = vmatmul.mubr.f32.gmra.mrb[46].mxu1 %v5840_v35  ;;  %v6016_v35 = vpack.c.bf16 %v1663_v9, %v1660_v36  ;;  %v6073_v36 = vpack.c.bf16 %v1676_v52, %v1673_v46  ;;  %v1679_v9 = vld [vmem:[#allocation9 + $0xa0] sm:$0xff] }
 0x6ac   :  { %1814 = vmatprep.mubr.f32.mxu0 %v5346_v0  ;;  %3879 = vmatprep.mubr.msk.f32.mxu1 %vm5348_vm2, %v5346_v0 }
 0x6ad   :  { %4620 = vmatprep.subr.bf16.mxu0 %v6016_v35  ;;  %4659 = vmatpush3.bf16.msra.mxu1 %v6073_v36 }
 0x6ae   :  { %4660 = vmatprep.subr.bf16.mxu1 %v5347_v25 }
 0x6af   :  { %1815 = vmatmul.mubr.f32.gmra.mrb[20].mxu0 %v5884_v58  ;;  %3880 = vmatmul.mubr.f32.gmra.mrb[48].mxu1 %v5884_v58  ;;  %v1659_v58 = vld [vmem:[#allocation9] sm:$0xff] }
 0x6b0   :  { %1820 = vmatprep.mubr.f32.mxu0 %v5346_v0  ;;  %3882 = vmatprep.mubr.msk.f32.mxu1 %vm5348_vm2, %v5346_v0 }
 0x6b3   :  { %1821 = vmatmul.mubr.f32.gmra.mrb[22].mxu0 %v5928_v42  ;;  %3883 = vmatmul.mubr.f32.gmra.mrb[50].mxu1 %v5928_v42  ;;  %v1662_v42 = vld [vmem:[#allocation9 + $0x18] sm:$0xff] }
 0x6b4   :  { %1826 = vmatprep.mubr.f32.mxu0 %v5346_v0  ;;  %3885 = vmatprep.mubr.msk.f32.mxu1 %vm5348_vm2, %v5346_v0  ;;  %v6018_v5 = vpack.c.bf16 %v1662_v42, %v1659_v58  ;;  %v1682_v58 = vld [vmem:[#allocation9 + $0xb8] sm:$0xff] }
 0x6b5   :  { %v6076_v42 = vpack.c.bf16 %v1682_v58, %v1679_v9 }
 0x6b6   :  { %4622 = vmatpush1.bf16.msra.mxu0 %v6018_v5 }
 0x6b7   :  { %1827 = vmatmul.mubr.f32.gmra.mrb[24].mxu0 %v5971_v37  ;;  %3886 = vmatmul.mubr.f32.gmra.mrb[52].mxu1 %v5971_v37 }
 0x6b8   :  { %1832 = vmatprep.mubr.f32.mxu0 %v5346_v0  ;;  %3888 = vmatprep.mubr.msk.f32.mxu1 %vm5348_vm2, %v5346_v0 }
 0x6b9   :  { %4624 = vmatprep.subr.bf16.mxu0 %v6022_v59  ;;  %4662 = vmatpush3.bf16.msra.mxu1 %v6076_v42 }
 0x6ba   :  { %4626 = vmatpush1.bf16.msra.mxu0 %v6024_v63  ;;  %4663 = vmatprep.subr.bf16.mxu1 %v5347_v25 }
 0x6bb   :  { %4628 = vmatprep.subr.bf16.mxu0 %v6028_v8 }
 0x6bd   :  { %4665 = vmatpush3.bf16.msra.mxu1 %v6080_v17 }
 0x6be   :  { %4630 = vmatpush1.bf16.msra.mxu0 %v6030_v19  ;;  %4666 = vmatprep.subr.bf16.mxu1 %v5347_v25 }
 0x6bf   :  { %4632 = vmatprep.subr.bf16.mxu0 %v6034_v33 }
 0x6c1   :  { %4668 = vmatpush3.bf16.msra.mxu1 %v6084_v45 }
 0x6c2   :  { %4634 = vmatpush1.bf16.msra.mxu0 %v6036_v41  ;;  %4669 = vmatprep.subr.bf16.mxu1 %v5347_v25 }
 0x6c3   :  { %4636 = vmatprep.subr.bf16.mxu0 %v6040_v54 }
 0x6c5   :  { %4671 = vmatpush3.bf16.msra.mxu1 %v6088_v26 }
 0x6c6   :  { %4638 = vmatpush1.bf16.msra.mxu0 %v6042_v62  ;;  %4672 = vmatprep.subr.bf16.mxu1 %v5347_v25 }
 0x6c7   :  { %4640 = vmatprep.subr.bf16.mxu0 %v6046_v10 }
 0x6c9   :  { %4674 = vmatpush3.bf16.msra.mxu1 %v6092_v40 }
 0x6ca   :  { %4642 = vmatpush1.bf16.msra.mxu0 %v6048_v22  ;;  %4707 = vmatprep.subr.bf16.mxu1 %v5347_v25 }
 0x6cb   :  { %4644 = vmatprep.subr.bf16.mxu0 %v6052_v7 }
 0x6ce   :  { %4646 = vmatpush1.bf16.msra.mxu0 %v6054_v51 }
 0x6cf   :  { %4648 = vmatprep.subr.bf16.mxu0 %v6061_v39 }
 0x6d2   :  { %4650 = vmatpush1.bf16.msra.mxu0 %v6063_v32 }
 0x6d3   :  { %4676 = vmatprep.subr.bf16.mxu0 %v6016_v35 }
 0x756   :  { %v1512_v47 = vpop.f32.mrb[12].mxu0  ;;  %v1583_v48 = vpop.f32.mrb[40].mxu1 }
 0x757   :  { %v1587_v55 = vadd.f32 %v1512_v47, %v5727_v11  ;;  %v1514_v61 = vpop.f32.mrb[13].mxu0  ;;  %v3837_v2 = vpop.f32.mrb[41].mxu1  ;;  %v1601_v38 = vadd.f32 %v5243_v1, %v1583_v48 }
 0x758   :  { %v1588_v6 = vadd.f32 %v1514_v61, %v5729_v15  ;;  %v6441_v2 = vsub.s32 1, %v5696_v30 }
 0x759   :  { %v3266_v14 = vmul.f32 -1.442695, %v1587_v55 }
 0x75a   :  { %v3267_v18 = vmul.f32 -1.442695, %v1588_v6 }
 0x75b   :  { %5163 = vpow2.f32 %v3266_v14 }
 0x75c   :  { %5165 = vpow2.f32 %v3267_v18 }
 0x765   :  { %v5164_v28 = vpop.eup %5163 }
 0x766   :  { %v1595_v3 = vadd.f32 1.0, %v5164_v28  ;;  %v5166_v21 = vpop.eup %5165 }
 0x767   :  { %v1596_v57 = vadd.f32 1.0, %v5166_v21 }
 0x768   :  { %5167 = vrcp.f32 %v1595_v3 }
 0x769   :  { %5169 = vrcp.f32 %v1596_v57 }
 0x772   :  { %v5168_v50 = vpop.eup %5167 }
 0x773   :  { %v1602_v11 = vmul.f32 %v5168_v50, %v1601_v38  ;;  %v5170_v24 = vpop.eup %5169 }
 0x774   :  { %v1605_v9 = vsub.f32 1.0, %v5170_v24  ;;  %v1607_v49 = vmul.f32 %v5170_v24, %v5971_v37  ;;  %v1707_v37 = vld [vmem:[%s6434_s7] sm:$0x7] }
 0x775   :  { %v1603_v20 = vadd.f32 %v1602_v11, %v5744_v56  ;;  %v6163_v55 = vrot.slane %v1707_v37, %v161_v31  ;;  %v6167_v6 = vrot.slane %v1707_v37, %v6441_v2  ;;  %v6174_v11 = vld [vmem:[%s6435_s8] ss:$0 sm:$0xff] }
 0x776   :  { %v6103_v15 = vpop.f32.mrb[42].mxu1 }
 0x777   :  { %5171 = vtanh.f32 %v1603_v20  ;;  %v3872_v44 = vpop.f32.mrb[43].mxu1  ;;  %v6442_v20 = vsub.s32 2, %v5696_v30 }
 0x779   :  { %v6178_v44 = vrot.slane %v1707_v37, %v6442_v20 }
 0x77a   :  { %v6105_v12 = vpop.f32.mrb[44].mxu1 }
 0x77b   :  { %v3875_v23 = vpop.f32.mrb[45].mxu1 }
 0x77e   :  { %v6107_v46 = vpop.f32.mrb[46].mxu1 }
 0x77f   :  { %v3878_v52 = vpop.f32.mrb[47].mxu1 }
 0x781   :  { %v5172_v58 = vpop.eup %5171 }
 0x782   :  { %v6109_v43 = vpop.f32.mrb[48].mxu1  ;;  %v1606_v60 = vmul.f32 %v5172_v58, %v1605_v9  ;;  %v1906_v9 = vadd.f32 %v6103_v15, %v6178_v44 }
 0x783   :  { %v3881_v53 = vpop.f32.mrb[49].mxu1 }
 0x784   :  { %v1608_v56 = vadd.f32 %v1607_v49, %v1606_v60 }
 0x786   :  { %v6112_v13 = vpop.f32.mrb[50].mxu1  ;;  %1833 = vmatmul.mubr.f32.gmra.mrb[26].mxu0 %v1608_v56  ;;  %3889 = vmatmul.mubr.f32.gmra.mrb[54].mxu1 %v1608_v56 }
 0x787   :  { %v3884_v16 = vpop.f32.mrb[51].mxu1  ;;  %2029 = vmatprep.mubr.f32.mxu0 %v5346_v0  ;;  %3923 = vmatprep.mubr.msk.f32.mxu1 %vm5348_vm2, %v5346_v0 }
 0x78a   :  { %v6117_v27 = vpop.f32.mrb[52].mxu1  ;;  %2030 = vmatmul.mubr.f32.vlgmr.msra.gmra.mrb[14].mxu0 %v5346_v0  ;;  %3924 = vmatmul.mubr.f32.vlgmr.msra.gmra.mrb[56].mxu1 %v5346_v0 }
 0x78b   :  { %v3887_v34 = vpop.f32.mrb[53].mxu1  ;;  %4678 = vmatpush1.bf16.msra.mxu0 %v6018_v5  ;;  %4709 = vmatpush3.bf16.msra.mxu1 %v6057_v4 }
 0x78c   :  { %4680 = vmatprep.subr.bf16.mxu0 %v6022_v59  ;;  %4710 = vmatprep.subr.bf16.mxu1 %v5347_v25 }
 0x78d   :  { %2201 = vmatprep.mubr.f32.mxu0 %v5346_v0  ;;  %3958 = vmatprep.mubr.msk.f32.mxu1 %vm5348_vm2, %v5346_v0 }
 0x78f   :  { %4682 = vmatpush1.bf16.msra.mxu0 %v6024_v63  ;;  %4712 = vmatpush3.bf16.msra.mxu1 %v6067_v29 }
 0x790   :  { %4684 = vmatprep.subr.bf16.mxu0 %v6028_v8  ;;  %4713 = vmatprep.subr.bf16.mxu1 %v5347_v25 }
 0x793   :  { %4686 = vmatpush1.bf16.msra.mxu0 %v6030_v19  ;;  %4715 = vmatpush3.bf16.msra.mxu1 %v6073_v36 }
 0x794   :  { %4688 = vmatprep.subr.bf16.mxu0 %v6034_v33  ;;  %4716 = vmatprep.subr.bf16.mxu1 %v5347_v25 }
 0x797   :  { %4690 = vmatpush1.bf16.msra.mxu0 %v6036_v41  ;;  %4718 = vmatpush3.bf16.msra.mxu1 %v6076_v42 }
 0x798   :  { %4692 = vmatprep.subr.bf16.mxu0 %v6040_v54  ;;  %4719 = vmatprep.subr.bf16.mxu1 %v5347_v25 }
 0x79b   :  { %4694 = vmatpush1.bf16.msra.mxu0 %v6042_v62  ;;  %4721 = vmatpush3.bf16.msra.mxu1 %v6080_v17 }
 0x79c   :  { %4696 = vmatprep.subr.bf16.mxu0 %v6046_v10  ;;  %4722 = vmatprep.subr.bf16.mxu1 %v5347_v25 }
 0x79f   :  { %4698 = vmatpush1.bf16.msra.mxu0 %v6048_v22  ;;  %4724 = vmatpush3.bf16.msra.mxu1 %v6084_v45 }
 0x7a0   :  { %4700 = vmatprep.subr.bf16.mxu0 %v6052_v7  ;;  %4725 = vmatprep.subr.bf16.mxu1 %v5347_v25 }
 0x7a3   :  { %4702 = vmatpush1.bf16.msra.mxu0 %v6054_v51  ;;  %4727 = vmatpush3.bf16.msra.mxu1 %v6088_v26 }
 0x7a4   :  { %4704 = vmatprep.subr.bf16.mxu0 %v6061_v39  ;;  %4728 = vmatprep.subr.bf16.mxu1 %v5347_v25 }
 0x7a7   :  { %4706 = vmatpush1.bf16.msra.mxu0 %v6063_v32  ;;  %4730 = vmatpush3.bf16.msra.mxu1 %v6092_v40 }
 0x7a8   :  { %4732 = vmatprep.subr.bf16.mxu0 %v6016_v35  ;;  %4763 = vmatprep.subr.bf16.mxu1 %v5347_v25 }
 0x859   :  { %v6159_v47 = vpop.f32.mrb[54].mxu1 }
 0x85a   :  { %v3890_v48 = vpop.f32.mrb[55].mxu1 }
 0x85d   :  { %v2031_v61 = vpop.f32.mrb[14].mxu0  ;;  %v2102_v14 = vpop.f32.mrb[56].mxu1 }
 0x85e   :  { %v5063_v18 = vadd.f32 %v2031_v61, %v6163_v55  ;;  %v2033_v28 = vpop.f32.mrb[15].mxu0  ;;  %v3925_v3 = vpop.f32.mrb[57].mxu1  ;;  %v2126_v24 = vadd.f32 %v6174_v11, %v2102_v14 }
 0x85f   :  { %v5064_v57 = vadd.f32 %v2033_v28, %v6167_v6 }
 0x860   :  { %v3268_v21 = vmul.f32 -1.442695, %v5063_v18 }
 0x861   :  { %v3269_v1 = vmul.f32 -1.442695, %v5064_v57 }
 0x862   :  { %5173 = vpow2.f32 %v3268_v21 }
 0x863   :  { %5175 = vpow2.f32 %v3269_v1 }
 0x86c   :  { %v5174_v38 = vpop.eup %5173 }
 0x86d   :  { %v2114_v50 = vadd.f32 1.0, %v5174_v38  ;;  %v5176_v31 = vpop.eup %5175 }
 0x86e   :  { %v2115_v23 = vadd.f32 1.0, %v5176_v31  ;;  %v1911_v31 = vadd.f32 %v6105_v12, %v6178_v44 }
 0x86f   :  { %5177 = vrcp.f32 %v2114_v50 }
 0x870   :  { %5179 = vrcp.f32 %v2115_v23 }
 0x879   :  { %v5178_v52 = vpop.eup %5177 }
 0x87a   :  { %v2127_v58 = vmul.f32 %v5178_v52, %v2126_v24  ;;  %v5180_v49 = vpop.eup %5179 }
 0x87b   :  { %v2130_v53 = vsub.f32 1.0, %v5180_v49  ;;  %v2132_v34 = vmul.f32 0.0, %v5180_v49 }
 0x87c   :  { %v2128_v60 = vadd.f32 %v2127_v58, %v1906_v9 }
 0x87e   :  { %5181 = vtanh.f32 %v2128_v60 }
 0x888   :  { %v5182_v56 = vpop.eup %5181 }
 0x889   :  { %v2131_v16 = vmul.f32 %v5182_v56, %v2130_v53 }
 0x88b   :  { %v6183_v48 = vadd.f32 %v2132_v34, %v2131_v16 }
 0x88d   :  { %2202 = vmatmul.mubr.f32.vlgmr.msra.gmra.mrb[16].mxu0 %v6183_v48  ;;  %3959 = vmatmul.mubr.f32.vlgmr.msra.gmra.mrb[58].mxu1 %v6183_v48 }
 0x88e   :  { %4734 = vmatpush1.bf16.msra.mxu0 %v6018_v5  ;;  %4765 = vmatpush3.bf16.msra.mxu1 %v6057_v4 }
 0x88f   :  { %4736 = vmatprep.subr.bf16.mxu0 %v6022_v59  ;;  %4766 = vmatprep.subr.bf16.mxu1 %v5347_v25 }
 0x890   :  { %2367 = vmatprep.mubr.f32.mxu0 %v5346_v0  ;;  %3993 = vmatprep.mubr.msk.f32.mxu1 %vm5348_vm2, %v5346_v0 }
 0x892   :  { %4738 = vmatpush1.bf16.msra.mxu0 %v6024_v63  ;;  %4768 = vmatpush3.bf16.msra.mxu1 %v6067_v29 }
 0x893   :  { %4740 = vmatprep.subr.bf16.mxu0 %v6028_v8  ;;  %4769 = vmatprep.subr.bf16.mxu1 %v5347_v25 }
 0x896   :  { %4742 = vmatpush1.bf16.msra.mxu0 %v6030_v19  ;;  %4771 = vmatpush3.bf16.msra.mxu1 %v6073_v36 }
 0x897   :  { %4744 = vmatprep.subr.bf16.mxu0 %v6034_v33  ;;  %4772 = vmatprep.subr.bf16.mxu1 %v5347_v25 }
 0x89a   :  { %4746 = vmatpush1.bf16.msra.mxu0 %v6036_v41  ;;  %4774 = vmatpush3.bf16.msra.mxu1 %v6076_v42 }
 0x89b   :  { %4748 = vmatprep.subr.bf16.mxu0 %v6040_v54  ;;  %4775 = vmatprep.subr.bf16.mxu1 %v5347_v25 }
 0x89e   :  { %4750 = vmatpush1.bf16.msra.mxu0 %v6042_v62  ;;  %4777 = vmatpush3.bf16.msra.mxu1 %v6080_v17 }
 0x89f   :  { %4752 = vmatprep.subr.bf16.mxu0 %v6046_v10  ;;  %4778 = vmatprep.subr.bf16.mxu1 %v5347_v25 }
 0x8a2   :  { %4754 = vmatpush1.bf16.msra.mxu0 %v6048_v22  ;;  %4780 = vmatpush3.bf16.msra.mxu1 %v6084_v45 }
 0x8a3   :  { %4756 = vmatprep.subr.bf16.mxu0 %v6052_v7  ;;  %4781 = vmatprep.subr.bf16.mxu1 %v5347_v25 }
 0x8a6   :  { %4758 = vmatpush1.bf16.msra.mxu0 %v6054_v51  ;;  %4783 = vmatpush3.bf16.msra.mxu1 %v6088_v26 }
 0x8a7   :  { %4760 = vmatprep.subr.bf16.mxu0 %v6061_v39  ;;  %4784 = vmatprep.subr.bf16.mxu1 %v5347_v25 }
 0x8aa   :  { %4762 = vmatpush1.bf16.msra.mxu0 %v6063_v32  ;;  %4786 = vmatpush3.bf16.msra.mxu1 %v6092_v40 }
 0x8ab   :  { %4788 = vmatprep.subr.bf16.mxu0 %v6016_v35  ;;  %4819 = vmatprep.subr.bf16.mxu1 %v5347_v25 }
 0x960   :  { %v2203_v30 = vpop.f32.mrb[16].mxu0  ;;  %v2274_v15 = vpop.f32.mrb[58].mxu1 }
 0x961   :  { %v5065_v37 = vadd.f32 %v2203_v30, %v6163_v55  ;;  %v2205_v61 = vpop.f32.mrb[17].mxu0  ;;  %v3960_v2 = vpop.f32.mrb[59].mxu1  ;;  %v2292_v38 = vadd.f32 %v6174_v11, %v2274_v15 }
 0x962   :  { %v5066_v18 = vadd.f32 %v2205_v61, %v6167_v6 }
 0x963   :  { %v3271_v14 = vmul.f32 -1.442695, %v5065_v37 }
 0x964   :  { %v3272_v28 = vmul.f32 -1.442695, %v5066_v18 }
 0x965   :  { %5183 = vpow2.f32 %v3271_v14 }
 0x966   :  { %5185 = vpow2.f32 %v3272_v28 }
 0x96f   :  { %v5184_v3 = vpop.eup %5183 }
 0x970   :  { %v2286_v21 = vadd.f32 1.0, %v5184_v3  ;;  %v5186_v57 = vpop.eup %5185  ;;  %v1916_v3 = vadd.f32 %v6107_v46, %v6178_v44 }
 0x971   :  { %v2287_v1 = vadd.f32 1.0, %v5186_v57 }
 0x972   :  { %5187 = vrcp.f32 %v2286_v21 }
 0x973   :  { %5189 = vrcp.f32 %v2287_v1 }
 0x97c   :  { %v5188_v50 = vpop.eup %5187 }
 0x97d   :  { %v2293_v20 = vmul.f32 %v5188_v50, %v2292_v38  ;;  %v5190_v24 = vpop.eup %5189 }
 0x97e   :  { %v2296_v52 = vsub.f32 1.0, %v5190_v24  ;;  %v2298_v60 = vmul.f32 %v5190_v24, %v6183_v48 }
 0x97f   :  { %v2294_v23 = vadd.f32 %v2293_v20, %v1911_v31 }
 0x981   :  { %5191 = vtanh.f32 %v2294_v23 }
 0x98b   :  { %v5192_v9 = vpop.eup %5191 }
 0x98c   :  { %v2297_v58 = vmul.f32 %v5192_v9, %v2296_v52 }
 0x98e   :  { %v6228_v49 = vadd.f32 %v2298_v60, %v2297_v58 }
 0x990   :  { %2368 = vmatmul.mubr.f32.vlgmr.msra.gmra.mrb[18].mxu0 %v6228_v49  ;;  %3994 = vmatmul.mubr.f32.vlgmr.msra.gmra.mrb[60].mxu1 %v6228_v49 }
 0x991   :  { %4790 = vmatpush1.bf16.msra.mxu0 %v6018_v5  ;;  %4821 = vmatpush3.bf16.msra.mxu1 %v6057_v4 }
 0x992   :  { %4792 = vmatprep.subr.bf16.mxu0 %v6022_v59  ;;  %4822 = vmatprep.subr.bf16.mxu1 %v5347_v25 }
 0x993   :  { %2533 = vmatprep.mubr.f32.mxu0 %v5346_v0  ;;  %4028 = vmatprep.mubr.msk.f32.mxu1 %vm5348_vm2, %v5346_v0 }
 0x995   :  { %4794 = vmatpush1.bf16.msra.mxu0 %v6024_v63  ;;  %4824 = vmatpush3.bf16.msra.mxu1 %v6067_v29 }
 0x996   :  { %4796 = vmatprep.subr.bf16.mxu0 %v6028_v8  ;;  %4825 = vmatprep.subr.bf16.mxu1 %v5347_v25 }
 0x999   :  { %4798 = vmatpush1.bf16.msra.mxu0 %v6030_v19  ;;  %4827 = vmatpush3.bf16.msra.mxu1 %v6073_v36 }
 0x99a   :  { %4800 = vmatprep.subr.bf16.mxu0 %v6034_v33  ;;  %4828 = vmatprep.subr.bf16.mxu1 %v5347_v25 }
 0x99d   :  { %4802 = vmatpush1.bf16.msra.mxu0 %v6036_v41  ;;  %4830 = vmatpush3.bf16.msra.mxu1 %v6076_v42 }
 0x99e   :  { %4804 = vmatprep.subr.bf16.mxu0 %v6040_v54  ;;  %4831 = vmatprep.subr.bf16.mxu1 %v5347_v25 }
 0x9a1   :  { %4806 = vmatpush1.bf16.msra.mxu0 %v6042_v62  ;;  %4833 = vmatpush3.bf16.msra.mxu1 %v6080_v17 }
 0x9a2   :  { %4808 = vmatprep.subr.bf16.mxu0 %v6046_v10  ;;  %4834 = vmatprep.subr.bf16.mxu1 %v5347_v25 }
 0x9a5   :  { %4810 = vmatpush1.bf16.msra.mxu0 %v6048_v22  ;;  %4836 = vmatpush3.bf16.msra.mxu1 %v6084_v45 }
 0x9a6   :  { %4812 = vmatprep.subr.bf16.mxu0 %v6052_v7  ;;  %4837 = vmatprep.subr.bf16.mxu1 %v5347_v25 }
 0x9a9   :  { %4814 = vmatpush1.bf16.msra.mxu0 %v6054_v51  ;;  %4839 = vmatpush3.bf16.msra.mxu1 %v6088_v26 }
 0x9aa   :  { %4816 = vmatprep.subr.bf16.mxu0 %v6061_v39  ;;  %4840 = vmatprep.subr.bf16.mxu1 %v5347_v25 }
 0x9ad   :  { %4818 = vmatpush1.bf16.msra.mxu0 %v6063_v32  ;;  %4842 = vmatpush3.bf16.msra.mxu1 %v6092_v40 }
 0x9ae   :  { %4844 = vmatprep.subr.bf16.mxu0 %v6016_v35  ;;  %4875 = vmatprep.subr.bf16.mxu1 %v5347_v25 }
 0xa63   :  { %v2369_v12 = vpop.f32.mrb[18].mxu0  ;;  %v2440_v53 = vpop.f32.mrb[60].mxu1 }
 0xa64   :  { %v5067_v56 = vadd.f32 %v2369_v12, %v6163_v55  ;;  %v2371_v16 = vpop.f32.mrb[19].mxu0  ;;  %v3995_v34 = vpop.f32.mrb[61].mxu1  ;;  %v2458_v18 = vadd.f32 %v6174_v11, %v2440_v53 }
 0xa65   :  { %v5068_v30 = vadd.f32 %v2371_v16, %v6167_v6 }
 0xa66   :  { %v3273_v48 = vmul.f32 -1.442695, %v5067_v56 }
 0xa67   :  { %v3274_v15 = vmul.f32 -1.442695, %v5068_v30 }
 0xa68   :  { %5193 = vpow2.f32 %v3273_v48 }
 0xa69   :  { %5195 = vpow2.f32 %v3274_v15  ;;  %v1921_v15 = vadd.f32 %v6109_v43, %v6178_v44 }
 0xa72   :  { %v5194_v37 = vpop.eup %5193 }
 0xa73   :  { %v2452_v61 = vadd.f32 1.0, %v5194_v37  ;;  %v5196_v2 = vpop.eup %5195 }
 0xa74   :  { %v2453_v14 = vadd.f32 1.0, %v5196_v2 }
 0xa75   :  { %5197 = vrcp.f32 %v2452_v61 }
 0xa76   :  { %5199 = vrcp.f32 %v2453_v14 }
 0xa7f   :  { %v5198_v28 = vpop.eup %5197 }
 0xa80   :  { %v2459_v21 = vmul.f32 %v5198_v28, %v2458_v18  ;;  %v5200_v1 = vpop.eup %5199 }
 0xa81   :  { %v2462_v38 = vsub.f32 1.0, %v5200_v1  ;;  %v2464_v20 = vmul.f32 %v5200_v1, %v6228_v49 }
 0xa82   :  { %v2460_v57 = vadd.f32 %v2459_v21, %v1916_v3 }
 0xa84   :  { %5201 = vtanh.f32 %v2460_v57 }
 0xa8e   :  { %v5202_v50 = vpop.eup %5201 }
 0xa8f   :  { %v2463_v31 = vmul.f32 %v5202_v50, %v2462_v38 }
 0xa91   :  { %v6273_v23 = vadd.f32 %v2464_v20, %v2463_v31 }
 0xa93   :  { %2534 = vmatmul.mubr.f32.vlgmr.msra.gmra.mrb[20].mxu0 %v6273_v23  ;;  %4029 = vmatmul.mubr.f32.vlgmr.msra.gmra.mrb[62].mxu1 %v6273_v23 }
 0xa94   :  { %4846 = vmatpush1.bf16.msra.mxu0 %v6018_v5  ;;  %4877 = vmatpush3.bf16.msra.mxu1 %v6057_v4 }
 0xa95   :  { %4848 = vmatprep.subr.bf16.mxu0 %v6022_v59  ;;  %4878 = vmatprep.subr.bf16.mxu1 %v5347_v25 }
 0xa96   :  { %2699 = vmatprep.mubr.f32.mxu0 %v5346_v0  ;;  %4063 = vmatprep.mubr.msk.f32.mxu1 %vm5348_vm2, %v5346_v0 }
 0xa98   :  { %4850 = vmatpush1.bf16.msra.mxu0 %v6024_v63  ;;  %4880 = vmatpush3.bf16.msra.mxu1 %v6067_v29 }
 0xa99   :  { %4852 = vmatprep.subr.bf16.mxu0 %v6028_v8  ;;  %4881 = vmatprep.subr.bf16.mxu1 %v5347_v25 }
 0xa9c   :  { %4854 = vmatpush1.bf16.msra.mxu0 %v6030_v19  ;;  %4883 = vmatpush3.bf16.msra.mxu1 %v6073_v36 }
 0xa9d   :  { %4856 = vmatprep.subr.bf16.mxu0 %v6034_v33  ;;  %4884 = vmatprep.subr.bf16.mxu1 %v5347_v25 }
 0xaa0   :  { %4858 = vmatpush1.bf16.msra.mxu0 %v6036_v41  ;;  %4886 = vmatpush3.bf16.msra.mxu1 %v6076_v42 }
 0xaa1   :  { %4860 = vmatprep.subr.bf16.mxu0 %v6040_v54  ;;  %4887 = vmatprep.subr.bf16.mxu1 %v5347_v25 }
 0xaa4   :  { %4862 = vmatpush1.bf16.msra.mxu0 %v6042_v62  ;;  %4889 = vmatpush3.bf16.msra.mxu1 %v6080_v17 }
 0xaa5   :  { %4864 = vmatprep.subr.bf16.mxu0 %v6046_v10  ;;  %4890 = vmatprep.subr.bf16.mxu1 %v5347_v25 }
 0xaa8   :  { %4866 = vmatpush1.bf16.msra.mxu0 %v6048_v22  ;;  %4892 = vmatpush3.bf16.msra.mxu1 %v6084_v45 }
 0xaa9   :  { %4868 = vmatprep.subr.bf16.mxu0 %v6052_v7  ;;  %4893 = vmatprep.subr.bf16.mxu1 %v5347_v25 }
 0xaac   :  { %4870 = vmatpush1.bf16.msra.mxu0 %v6054_v51  ;;  %4895 = vmatpush3.bf16.msra.mxu1 %v6088_v26 }
 0xaad   :  { %4872 = vmatprep.subr.bf16.mxu0 %v6061_v39  ;;  %4896 = vmatprep.subr.bf16.mxu1 %v5347_v25 }
 0xab0   :  { %4874 = vmatpush1.bf16.msra.mxu0 %v6063_v32  ;;  %4898 = vmatpush3.bf16.msra.mxu1 %v6092_v40 }
 0xab1   :  { %4900 = vmatprep.subr.bf16.mxu0 %v6016_v35  ;;  %4931 = vmatprep.subr.bf16.mxu1 %v5347_v25 }
 0xb66   :  { %v2535_v46 = vpop.f32.mrb[20].mxu0  ;;  %v2606_v24 = vpop.f32.mrb[62].mxu1 }
 0xb67   :  { %v5069_v52 = vadd.f32 %v2535_v46, %v6163_v55  ;;  %v2537_v9 = vpop.f32.mrb[21].mxu0  ;;  %v4030_v58 = vpop.f32.mrb[63].mxu1  ;;  %v2624_v48 = vadd.f32 %v6174_v11, %v2606_v24 }
 0xb68   :  { %v5070_v49 = vadd.f32 %v2537_v9, %v6167_v6 }
 0xb69   :  { %v3275_v60 = vmul.f32 -1.442695, %v5069_v52 }
 0xb6a   :  { %v3276_v12 = vmul.f32 -1.442695, %v5070_v49 }
 0xb6b   :  { %5203 = vpow2.f32 %v3275_v60  ;;  %v1926_v60 = vadd.f32 %v6112_v13, %v6178_v44  ;;  %v3135_v13 = vld [vmem:[#allocation10] sm:$0xff] }
 0xb6c   :  { %5205 = vpow2.f32 %v3276_v12 }
 0xb75   :  { %v5204_v53 = vpop.eup %5203 }
 0xb76   :  { %v2618_v56 = vadd.f32 1.0, %v5204_v53  ;;  %v5206_v16 = vpop.eup %5205 }
 0xb77   :  { %v2619_v34 = vadd.f32 1.0, %v5206_v16 }
 0xb78   :  { %5207 = vrcp.f32 %v2618_v56 }
 0xb79   :  { %5209 = vrcp.f32 %v2619_v34 }
 0xb82   :  { %v5208_v30 = vpop.eup %5207 }
 0xb83   :  { %v2625_v37 = vmul.f32 %v5208_v30, %v2624_v48  ;;  %v5210_v2 = vpop.eup %5209 }
 0xb84   :  { %v2628_v14 = vsub.f32 1.0, %v5210_v2  ;;  %v2630_v3 = vmul.f32 %v5210_v2, %v6273_v23 }
 0xb85   :  { %v2626_v61 = vadd.f32 %v2625_v37, %v1921_v15  ;;  %v3137_v37 = vld [vmem:[#allocation10 + $0x10] sm:$0xff] }
 0xb87   :  { %5211 = vtanh.f32 %v2626_v61  ;;  %v3138_v61 = vld [vmem:[#allocation10 + $0x18] sm:$0xff] }
 0xb88   :  { %v5015_v2 = vpack.c.bf16 %v3138_v61, %v3137_v37 }
 0xb91   :  { %v5212_v18 = vpop.eup %5211 }
 0xb92   :  { %v2629_v28 = vmul.f32 %v5212_v18, %v2628_v14  ;;  %v3139_v14 = vld [vmem:[#allocation10 + $0x20] sm:$0xff]  ;;  %v3140_v18 = vld [vmem:[#allocation10 + $0x28] sm:$0xff] }
 0xb94   :  { %v6318_v21 = vadd.f32 %v2630_v3, %v2629_v28  ;;  %v5018_v28 = vpack.c.bf16 %v3140_v18, %v3139_v14  ;;  %v3141_v3 = vld [vmem:[#allocation10 + $0x30] sm:$0xff] }
 0xb96   :  { %2700 = vmatmul.mubr.f32.vlgmr.msra.gmra.mrb[22].mxu0 %v6318_v21  ;;  %4064 = vmatmul.mubr.f32.vlgmr.msra.gmra.mrb[64].mxu1 %v6318_v21 }
 0xb97   :  { %4902 = vmatpush1.bf16.msra.mxu0 %v6018_v5  ;;  %4933 = vmatpush3.bf16.msra.mxu1 %v6057_v4 }
 0xb98   :  { %4904 = vmatprep.subr.bf16.mxu0 %v6022_v59  ;;  %4934 = vmatprep.subr.bf16.mxu1 %v5347_v25 }
 0xb99   :  { %2865 = vmatprep.mubr.f32.mxu0 %v5346_v0  ;;  %4098 = vmatprep.mubr.msk.f32.mxu1 %vm5348_vm2, %v5346_v0 }
 0xb9b   :  { %4906 = vmatpush1.bf16.msra.mxu0 %v6024_v63  ;;  %4936 = vmatpush3.bf16.msra.mxu1 %v6067_v29 }
 0xb9c   :  { %4908 = vmatprep.subr.bf16.mxu0 %v6028_v8  ;;  %4937 = vmatprep.subr.bf16.mxu1 %v5347_v25 }
 0xb9f   :  { %4910 = vmatpush1.bf16.msra.mxu0 %v6030_v19  ;;  %4939 = vmatpush3.bf16.msra.mxu1 %v6073_v36 }
 0xba0   :  { %4912 = vmatprep.subr.bf16.mxu0 %v6034_v33  ;;  %4940 = vmatprep.subr.bf16.mxu1 %v5347_v25 }
 0xba3   :  { %4914 = vmatpush1.bf16.msra.mxu0 %v6036_v41  ;;  %4942 = vmatpush3.bf16.msra.mxu1 %v6076_v42 }
 0xba4   :  { %4916 = vmatprep.subr.bf16.mxu0 %v6040_v54  ;;  %4943 = vmatprep.subr.bf16.mxu1 %v5347_v25 }
 0xba7   :  { %4918 = vmatpush1.bf16.msra.mxu0 %v6042_v62  ;;  %4945 = vmatpush3.bf16.msra.mxu1 %v6080_v17 }
 0xba8   :  { %4920 = vmatprep.subr.bf16.mxu0 %v6046_v10  ;;  %4946 = vmatprep.subr.bf16.mxu1 %v5347_v25 }
 0xbab   :  { %4922 = vmatpush1.bf16.msra.mxu0 %v6048_v22  ;;  %4948 = vmatpush3.bf16.msra.mxu1 %v6084_v45 }
 0xbac   :  { %4924 = vmatprep.subr.bf16.mxu0 %v6052_v7  ;;  %4949 = vmatprep.subr.bf16.mxu1 %v5347_v25 }
 0xbaf   :  { %4926 = vmatpush1.bf16.msra.mxu0 %v6054_v51  ;;  %4951 = vmatpush3.bf16.msra.mxu1 %v6088_v26 }
 0xbb0   :  { %4928 = vmatprep.subr.bf16.mxu0 %v6061_v39  ;;  %4952 = vmatprep.subr.bf16.mxu1 %v5347_v25 }
 0xbb3   :  { %4930 = vmatpush1.bf16.msra.mxu0 %v6063_v32  ;;  %4954 = vmatpush3.bf16.msra.mxu1 %v6092_v40 }
 0xbb4   :  { %4956 = vmatprep.subr.bf16.mxu0 %v6016_v35  ;;  %4987 = vmatprep.subr.bf16.mxu1 %v5347_v25 }
 0xc69   :  { %v2701_v43 = vpop.f32.mrb[22].mxu0  ;;  %v2772_v57 = vpop.f32.mrb[64].mxu1 }
 0xc6a   :  { %v5071_v1 = vadd.f32 %v2701_v43, %v6163_v55  ;;  %v2703_v38 = vpop.f32.mrb[23].mxu0  ;;  %v4065_v50 = vpop.f32.mrb[65].mxu1  ;;  %v2790_v35 = vadd.f32 %v6174_v11, %v2772_v57  ;;  %v3143_v43 = vld [vmem:[#allocation10 + $0x40] sm:$0xff]  ;;  %v3144_v57 = vld [vmem:[#allocation10 + $0x48] sm:$0xff] }
 0xc6b   :  { %v5072_v20 = vadd.f32 %v2703_v38, %v6167_v6  ;;  %v3145_v38 = vld [vmem:[#allocation10 + $0x50] sm:$0xff]  ;;  %v3146_v50 = vld [vmem:[#allocation10 + $0x58] sm:$0xff] }
 0xc6c   :  { %v3277_v31 = vmul.f32 -1.442695, %v5071_v1  ;;  %v5024_v1 = vpack.c.bf16 %v3144_v57, %v3143_v43 }
 0xc6d   :  { %v3278_v23 = vmul.f32 -1.442695, %v5072_v20  ;;  %v3147_v20 = vld [vmem:[#allocation10 + $0x60] sm:$0xff] }
 0xc6e   :  { %5213 = vpow2.f32 %v3277_v31  ;;  %v5027_v31 = vpack.c.bf16 %v3146_v50, %v3145_v38 }
 0xc6f   :  { %5215 = vpow2.f32 %v3278_v23  ;;  %v3148_v23 = vld [vmem:[#allocation10 + $0x68] sm:$0xff] }
 0xc78   :  { %v5214_v46 = vpop.eup %5213 }
 0xc79   :  { %v2784_v24 = vadd.f32 1.0, %v5214_v46  ;;  %v5216_v52 = vpop.eup %5215  ;;  %v5030_v46 = vpack.c.bf16 %v3148_v23, %v3147_v20 }
 0xc7a   :  { %v2785_v9 = vadd.f32 1.0, %v5216_v52  ;;  %v3150_v52 = vld [vmem:[#allocation10 + $0x78] sm:$0xff] }
 0xc7b   :  { %5217 = vrcp.f32 %v2784_v24  ;;  %v3149_v24 = vld [vmem:[#allocation10 + $0x70] sm:$0xff] }
 0xc7c   :  { %5219 = vrcp.f32 %v2785_v9  ;;  %v5033_v9 = vpack.c.bf16 %v3150_v52, %v3149_v24 }
 0xc85   :  { %v5218_v58 = vpop.eup %5217 }
 0xc86   :  { %v2791_v49 = vmul.f32 %v5218_v58, %v2790_v35  ;;  %v5220_v53 = vpop.eup %5219 }
 0xc87   :  { %v2794_v56 = vsub.f32 1.0, %v5220_v53  ;;  %v2796_v48 = vmul.f32 %v5220_v53, %v6318_v21 }
 0xc88   :  { %v2792_v12 = vadd.f32 %v2791_v49, %v1926_v60 }
 0xc8a   :  { %5221 = vtanh.f32 %v2792_v12 }
 0xc94   :  { %v5222_v16 = vpop.eup %5221 }
 0xc95   :  { %v2795_v34 = vmul.f32 %v5222_v16, %v2794_v56 }
 0xc97   :  { %v2797_v30 = vadd.f32 %v2796_v48, %v2795_v34 }
 0xc99   :  { %2866 = vmatmul.mubr.f32.vlgmr.msra.gmra.mrb[24].mxu0 %v2797_v30  ;;  %4099 = vmatmul.mubr.f32.vlgmr.msra.gmra.mrb[66].mxu1 %v2797_v30 }
 0xc9a   :  { %4958 = vmatpush1.bf16.msra.mxu0 %v6018_v5  ;;  %4989 = vmatpush3.bf16.msra.mxu1 %v6057_v4 }
 0xc9b   :  { %4960 = vmatprep.subr.bf16.mxu0 %v6022_v59  ;;  %4990 = vmatprep.subr.bf16.mxu1 %v5347_v25 }
 0xc9c   :  { %3031 = vmatprep.mubr.f32.mxu0 %v5346_v0  ;;  %4133 = vmatprep.mubr.msk.f32.mxu1 %vm5348_vm2, %v5346_v0 }
 0xc9e   :  { %4962 = vmatpush1.bf16.msra.mxu0 %v6024_v63  ;;  %4992 = vmatpush3.bf16.msra.mxu1 %v6067_v29 }
 0xc9f   :  { %4964 = vmatprep.subr.bf16.mxu0 %v6028_v8  ;;  %4993 = vmatprep.subr.bf16.mxu1 %v5347_v25 }
 0xca2   :  { %4966 = vmatpush1.bf16.msra.mxu0 %v6030_v19  ;;  %4995 = vmatpush3.bf16.msra.mxu1 %v6073_v36 }
 0xca3   :  { %4968 = vmatprep.subr.bf16.mxu0 %v6034_v33  ;;  %4996 = vmatprep.subr.bf16.mxu1 %v5347_v25 }
 0xca6   :  { %4970 = vmatpush1.bf16.msra.mxu0 %v6036_v41  ;;  %4998 = vmatpush3.bf16.msra.mxu1 %v6076_v42 }
 0xca7   :  { %4972 = vmatprep.subr.bf16.mxu0 %v6040_v54  ;;  %4999 = vmatprep.subr.bf16.mxu1 %v5347_v25 }
 0xcaa   :  { %4974 = vmatpush1.bf16.msra.mxu0 %v6042_v62  ;;  %5001 = vmatpush3.bf16.msra.mxu1 %v6080_v17 }
 0xcab   :  { %4976 = vmatprep.subr.bf16.mxu0 %v6046_v10  ;;  %5002 = vmatprep.subr.bf16.mxu1 %v5347_v25 }
 0xcae   :  { %4978 = vmatpush1.bf16.msra.mxu0 %v6048_v22  ;;  %5004 = vmatpush3.bf16.msra.mxu1 %v6084_v45 }
 0xcaf   :  { %4980 = vmatprep.subr.bf16.mxu0 %v6052_v7  ;;  %5005 = vmatprep.subr.bf16.mxu1 %v5347_v25 }
 0xcb2   :  { %4982 = vmatpush1.bf16.msra.mxu0 %v6054_v51  ;;  %5007 = vmatpush3.bf16.msra.mxu1 %v6088_v26 }
 0xcb3   :  { %4984 = vmatprep.subr.bf16.mxu0 %v6061_v39  ;;  %5008 = vmatprep.subr.bf16.mxu1 %v5347_v25  ;;  %v1931_v39 = vadd.f32 %v6117_v27, %v6178_v44  ;;  %v3136_v27 = vld [vmem:[#allocation10 + $0x8] sm:$0xff] }
 0xcb4   :  { %v5012_v15 = vpack.c.bf16 %v3136_v27, %v3135_v13 }
 0xcb6   :  { %4986 = vmatpush1.bf16.msra.mxu0 %v6063_v32  ;;  %5010 = vmatpush3.bf16.msra.mxu1 %v6092_v40 }
 0xcb7   :  { %5011 = vmatprep.subr.bf16.mxu0 %v5347_v25 }
 0xd6c   :  { %v2867_v5 = vpop.f32.mrb[24].mxu0  ;;  %v2938_v59 = vpop.f32.mrb[66].mxu1 }
 0xd6d   :  { %v5073_v63 = vadd.f32 %v2867_v5, %v6163_v55  ;;  %v2869_v8 = vpop.f32.mrb[25].mxu0  ;;  %v4100_v19 = vpop.f32.mrb[67].mxu1  ;;  %v2956_v51 = vadd.f32 %v6174_v11, %v2938_v59 }
 0xd6e   :  { %v5074_v41 = vadd.f32 %v2869_v8, %v6167_v6 }
 0xd6f   :  { %v3279_v33 = vmul.f32 -1.442695, %v5073_v63  ;;  %v1936_v63 = vadd.f32 %v6159_v47, %v6178_v44 }
 0xd70   :  { %v3280_v54 = vmul.f32 -1.442695, %v5074_v41 }
 0xd71   :  { %5223 = vpow2.f32 %v3279_v33 }
 0xd72   :  { %5225 = vpow2.f32 %v3280_v54 }
 0xd7b   :  { %v5224_v62 = vpop.eup %5223 }
 0xd7c   :  { %v2950_v10 = vadd.f32 1.0, %v5224_v62  ;;  %v5226_v22 = vpop.eup %5225 }
 0xd7d   :  { %v2951_v7 = vadd.f32 1.0, %v5226_v22 }
 0xd7e   :  { %5227 = vrcp.f32 %v2950_v10 }
 0xd7f   :  { %5229 = vrcp.f32 %v2951_v7 }
 0xd88   :  { %v5228_v4 = vpop.eup %5227 }
 0xd89   :  { %v2957_v32 = vmul.f32 %v5228_v4, %v2956_v51  ;;  %v5230_v36 = vpop.eup %5229 }
 0xd8a   :  { %v2960_v42 = vsub.f32 1.0, %v5230_v36  ;;  %v2962_v26 = vmul.f32 %v5230_v36, %v2797_v30 }
 0xd8b   :  { %v2958_v29 = vadd.f32 %v2957_v32, %v1931_v39 }
 0xd8d   :  { %5231 = vtanh.f32 %v2958_v29 }
 0xd97   :  { %v5232_v17 = vpop.eup %5231 }
 0xd98   :  { %v2961_v45 = vmul.f32 %v5232_v17, %v2960_v42 }
 0xd9a   :  { %v6402_v40 = vadd.f32 %v2962_v26, %v2961_v45 }
 0xd9c   :  { %3032 = vmatmul.mubr.f32.vlgmr.msra.gmra.mrb[26].mxu0 %v6402_v40  ;;  %4134 = vmatmul.mubr.f32.vlgmr.msra.gmra.mrb[68].mxu1 %v6402_v40 }
 0xd9d   :  { %4168 = vmatprep.mubr.msk.f32.mxu0 %vm5348_vm2, %v5346_v0  ;;  %5013 = vmatpush3.bf16.msra.mxu0 %v5012_v15  ;;  %v3142_v0 = vld [vmem:[#allocation10 + $0x38] sm:$0xff] }
 0xd9e   :  { %5014 = vmatprep.subr.bf16.mxu0 %v5347_v25  ;;  %v5021_v21 = vpack.c.bf16 %v3142_v0, %v3141_v3 }
 0xda1   :  { %5016 = vmatpush3.bf16.msra.mxu0 %v5015_v2 }
 0xda2   :  { %5017 = vmatprep.subr.bf16.mxu0 %v5347_v25 }
 0xda5   :  { %5019 = vmatpush3.bf16.msra.mxu0 %v5018_v28 }
 0xda6   :  { %5020 = vmatprep.subr.bf16.mxu0 %v5347_v25 }
 0xda9   :  { %5022 = vmatpush3.bf16.msra.mxu0 %v5021_v21 }
 0xdaa   :  { %5023 = vmatprep.subr.bf16.mxu0 %v5347_v25 }
 0xdad   :  { %5025 = vmatpush3.bf16.msra.mxu0 %v5024_v1 }
 0xdae   :  { %5026 = vmatprep.subr.bf16.mxu0 %v5347_v25 }
 0xdb1   :  { %5028 = vmatpush3.bf16.msra.mxu0 %v5027_v31 }
 0xdb2   :  { %5029 = vmatprep.subr.bf16.mxu0 %v5347_v25 }
 0xdb5   :  { %5031 = vmatpush3.bf16.msra.mxu0 %v5030_v46 }
 0xdb6   :  { %5032 = vmatprep.subr.bf16.mxu0 %v5347_v25 }
 0xdb9   :  { %5034 = vmatpush3.bf16.msra.mxu0 %v5033_v9 }
 0xe6f   :  { %v3033_v35 = vpop.f32.mrb[26].mxu0  ;;  %v3104_v58 = vpop.f32.mrb[68].mxu1 }
 0xe70   :  { %v5075_v60 = vadd.f32 %v3033_v35, %v6163_v55  ;;  %v3035_v49 = vpop.f32.mrb[27].mxu0  ;;  %v4135_v12 = vpop.f32.mrb[69].mxu1  ;;  %v3122_v25 = vadd.f32 %v6174_v11, %v3104_v58  ;;  %v3283_v11 = vld [vmem:[%s6437_s10] ss:$0 sm:$0xff] }
 0xe71   :  { %v5076_v56 = vadd.f32 %v3035_v49, %v6167_v6 }
 0xe72   :  { %v3281_v53 = vmul.f32 -1.442695, %v5075_v60 }
 0xe73   :  { %v3282_v16 = vmul.f32 -1.442695, %v5076_v56 }
 0xe74   :  { %5233 = vpow2.f32 %v3281_v53 }
 0xe75   :  { %5235 = vpow2.f32 %v3282_v16 }
 0xe7e   :  { %v5234_v34 = vpop.eup %5233 }
 0xe7f   :  { %v3116_v48 = vadd.f32 1.0, %v5234_v34  ;;  %v5236_v30 = vpop.eup %5235 }
 0xe80   :  { %v3117_v5 = vadd.f32 1.0, %v5236_v30 }
 0xe81   :  { %5237 = vrcp.f32 %v3116_v48 }
 0xe82   :  { %5239 = vrcp.f32 %v3117_v5 }
 0xe8b   :  { %v5238_v59 = vpop.eup %5237 }
 0xe8c   :  { %v3123_v55 = vmul.f32 %v5238_v59, %v3122_v25  ;;  %v5240_v19 = vpop.eup %5239 }
 0xe8d   :  { %v3126_v6 = vsub.f32 1.0, %v5240_v19  ;;  %v3128_v54 = vmul.f32 %v5240_v19, %v6402_v40 }
 0xe8e   :  { %v3124_v8 = vadd.f32 %v3123_v55, %v1936_v63 }
 0xe90   :  { %5241 = vtanh.f32 %v3124_v8 }
 0xe9a   :  { %v5242_v33 = vpop.eup %5241 }
 0xe9b   :  { %v3127_v41 = vmul.f32 %v5242_v33, %v3126_v6 }
 0xe9d   :  { %v3129_v62 = vadd.f32 %v3128_v54, %v3127_v41 }
 0xe9f   :  { %4169 = vmatmul.mubr.f32.vlgmr.msra.gmra.mrb[28].mxu0 %v3129_v62 }
 0xf72   :  { %v3224_v10 = vpop.f32.mrb[28].mxu0 }
 0xf73   :  { %v3225_v22 = vadd.f32 %v3283_v11, %v3224_v10  ;;  %v4170_v7 = vpop.f32.mrb[29].mxu0 }
 0xf75   :  { %3228 = vst [vmem:[%s6438_s11] sm:$0xff] %v3225_v22 }
 0xf76   :  { %3233 = vsyncpa [#allocation6], 1 }
 0xf77   :  { %3234 = vsyncpa [#allocation8], 1 }
 0xf78   :  { %3235 = vsyncpa [#allocation11], 1 }

// kernel: gru_model_forward.1
= control target key start
LH: loop header
LB: loop body
LE: loop exit
PB: predicated region body
PF: predicated region fallthrough
CT: control target
= control target key end

     0   :  { %16 = vsyncpa [#allocation6], 0  ;;  %s6427_s0 = inlined_call_operand.vmem [shape: f32[56,4], index: 0, kind: input, shape index: {}]   ;;  %s6428_s1 = inlined_call_operand.vmem [shape: f32[4,384], index: 1, kind: input, shape index: {}]   ;;  %s6429_s2 = inlined_call_operand.hbm [shape: f32[128,384], index: 2, kind: input, shape index: {}]   ;;  %s6430_s3 = inlined_call_operand.vmem [shape: f32[1,384], index: 3, kind: input, shape index: {}]   ;;  %s6431_s4 = inlined_call_operand.vmem [shape: f32[1,128], index: 4, kind: input, shape index: {}]   ;;  %s6432_s5 = inlined_call_operand.hbm [shape: f32[128,384], index: 5, kind: input, shape index: {}]   ;;  %s6433_s6 = inlined_call_operand.hbm [shape: f32[128,384], index: 6, kind: input, shape index: {}]   ;;  %s6434_s7 = inlined_call_operand.vmem [shape: f32[1,384], index: 7, kind: input, shape index: {}]   ;;  %s6435_s8 = inlined_call_operand.vmem [shape: f32[1,128], index: 8, kind: input, shape index: {}]   ;;  %s6436_s9 = inlined_call_operand.hbm [shape: f32[128,128], index: 9, kind: input, shape index: {}]   ;;  %s6437_s10 = inlined_call_operand.vmem [shape: f32[1,128], index: 10, kind: input, shape index: {}]   ;;  %s6438_s11 = inlined_call_operand.vmem [shape: f32[8,128], index: 11, kind: output, shape index: {}]  }
   0x1   :  { %17 = vsyncpa [#allocation8], 0 }
   0x2   :  { %18 = vsyncpa [#allocation11], 0  ;;  %s5338_s17 = smov [#allocation7]   ;;  %s5339_s19 = smov [#allocation5]  }
   0x3   :  { %s44_s18 = sshll.u32 %s5338_s17, 4  ;;  %s28_s20 = sshll.u32 %s5339_s19, 4  ;;  %s45_s18 = int_to_ptr.vmem [resolvable:$true] %s44_s18  ;;  %s5409_s20 = int_to_ptr.vmem [resolvable:$true] %s28_s20 }
   0x4   :  { %s5244_s23 = scalar_lea.hbm %s6432_s5, 6144 }
   0x5   :  { %p5245_p0 = scmp.ne.s32.totalorder %s6432_s5, %s5244_s23  ;;  %p5248_p1 = scmp.lt.u32.totalorder %s5244_s23, %s6432_s5 }
   0x7   :  { %p5250_p2 = pnand %p5248_p1, %p5245_p0 }
   0x9   :  { %5253 = shalt.err (!%p5250_p2)
}
   0xa   :  { %s5254_s28 = scalar_lea.vmem %s45_s18, 6144  ;;  %p5259_p4 = scmp.lt.s32.totalorder %s45_s18, %s45_s18 }
   0xb   :  { %p5255_p3 = scmp.ne.s32.totalorder %s45_s18, %s5254_s28  ;;  %p5260_p5 = scmp.lt.s32.totalorder %s5254_s28, %s5254_s28 }
   0xd   :  { %p5261_p6 = por %p5260_p5, %p5259_p4 }
   0xf   :  { %p5262_p7 = pnand %p5261_p6, %p5255_p3 }
  0x11   :  { %5265 = shalt.err (!%p5262_p7)
}
  0x12   :  { %s5340_s29 = smov 384   ;;  %s5341_s30 = smov 24  }
  0x13   :  { %50 = dma.hbm_to_vmem [thread:$0]  %s6432_s5, 6144, %s45_s18, [#allocation8], %s5340_s29, %s5340_s29, %s5341_s30  }
  0x14   :  { %s5266_s16 = scalar_lea.hbm %s6429_s2, 6144 }
  0x15   :  { %p5267_p8 = scmp.ne.s32.totalorder %s6429_s2, %s5266_s16  ;;  %p5270_p9 = scmp.lt.u32.totalorder %s5266_s16, %s6429_s2 }
  0x17   :  { %p5272_p10 = pnand %p5270_p9, %p5267_p8 }
  0x19   :  { %5275 = shalt.err (!%p5272_p10)
}
  0x1a   :  { %s5276_s23 = scalar_lea.vmem %s5409_s20, 6144  ;;  %p5281_p12 = scmp.lt.s32.totalorder %s5409_s20, %s5409_s20 }
  0x1b   :  { %p5277_p11 = scmp.ne.s32.totalorder %s5409_s20, %s5276_s23  ;;  %p5282_p13 = scmp.lt.s32.totalorder %s5276_s23, %s5276_s23 }
  0x1d   :  { %p5283_p0 = por %p5282_p13, %p5281_p12 }
  0x1f   :  { %p5284_p1 = pnand %p5283_p0, %p5277_p11 }
  0x21   :  { %5287 = shalt.err (!%p5284_p1)
}
  0x22   :  { %34 = dma.hbm_to_vmem [thread:$0]  %s6429_s2, 6144, %s5409_s20, [#allocation6], %s5340_s29, %s5340_s29, %s5341_s30  }
  0x23   :  { %s5342_s24 = smov [#allocation9]   ;;  %s5343_s26 = smov [#allocation10]  }
  0x24   :  { %s56_s25 = sshll.u32 %s5342_s24, 4  ;;  %s72_s27 = sshll.u32 %s5343_s26, 4  ;;  %s57_s25 = int_to_ptr.vmem [resolvable:$true] %s56_s25  ;;  %s5446_s27 = int_to_ptr.vmem [resolvable:$true] %s72_s27 }
  0x25   :  { %s5288_s13 = scalar_lea.hbm %s6433_s6, 6144 }
  0x26   :  { %p5289_p2 = scmp.ne.s32.totalorder %s6433_s6, %s5288_s13  ;;  %p5292_p3 = scmp.lt.u32.totalorder %s5288_s13, %s6433_s6 }
  0x28   :  { %p5294_p4 = pnand %p5292_p3, %p5289_p2 }
  0x2a   :  { %5297 = shalt.err (!%p5294_p4)
}
  0x2b   :  { %s5298_s2 = scalar_lea.vmem %s57_s25, 6144  ;;  %p5303_p6 = scmp.lt.s32.totalorder %s57_s25, %s57_s25 }
  0x2c   :  { %p5299_p5 = scmp.ne.s32.totalorder %s57_s25, %s5298_s2  ;;  %p5304_p7 = scmp.lt.s32.totalorder %s5298_s2, %s5298_s2 }
  0x2e   :  { %p5305_p8 = por %p5304_p7, %p5303_p6 }
  0x30   :  { %p5306_p9 = pnand %p5305_p8, %p5299_p5 }
  0x32   :  { %5309 = shalt.err (!%p5306_p9)
}
  0x33   :  { %62 = dma.hbm_to_vmem [thread:$0]  %s6433_s6, 6144, %s57_s25, [#allocation8], %s5340_s29, %s5340_s29, %s5341_s30  }
  0x34   :  { %s5310_s23 = scalar_lea.hbm %s6436_s9, 2048 }
  0x35   :  { %p5311_p10 = scmp.ne.s32.totalorder %s6436_s9, %s5310_s23  ;;  %p5314_p11 = scmp.lt.u32.totalorder %s5310_s23, %s6436_s9 }
  0x37   :  { %p5316_p12 = pnand %p5314_p11, %p5311_p10 }
  0x39   :  { %5319 = shalt.err (!%p5316_p12)
}
  0x3a   :  { %s5320_s28 = scalar_lea.vmem %s5446_s27, 2048  ;;  %p5325_p0 = scmp.lt.s32.totalorder %s5446_s27, %s5446_s27 }
  0x3b   :  { %p5321_p13 = scmp.ne.s32.totalorder %s5446_s27, %s5320_s28  ;;  %p5326_p1 = scmp.lt.s32.totalorder %s5320_s28, %s5320_s28 }
  0x3d   :  { %p5327_p2 = por %p5326_p1, %p5325_p0 }
  0x3f   :  { %p5328_p3 = pnand %p5327_p2, %p5321_p13 }
  0x41   :  { %5331 = shalt.err (!%p5328_p3)
}
  0x42   :  { %s5344_s6 = smov 128   ;;  %s5345_s29 = smov 8  }
  0x43   :  { %78 = dma.hbm_to_vmem [thread:$0]  %s6436_s9, 2048, %s5446_s27, [#allocation11], %s5344_s6, %s5344_s6, %s5345_s29  }
  0x44   :  { %5332 = dma.done.wait [#allocation6], 6144  }
  0x45   :  { %5333 = vsyncadd [#allocation6], 4294961152 }
  0x46   :  { %5334 = dma.done.wait [#allocation8], 12288  }
  0x47   :  { %5335 = vsyncadd [#allocation8], 4294955008 }
  0x48   :  { %5336 = dma.done.wait [#allocation11], 2048  }
  0x49   :  { %5337 = vsyncadd [#allocation11], 4294965248  ;;  %v5346_v0 = vmov 0.0   ;;  %v99_v1 = vld [vmem:[%s6428_s1] sm:$0xff]  ;;  %vm199_vm0 = vcmask 1043456   ;;  %v102_v2 = vld [vmem:[#allocation5 + $0x8] sm:$0xff] }
  0x4a   :  { %270 = vmatprep.mubr.f32.mxu1 %v5346_v0  ;;  %502 = vmatprep.mubr.f32.mxu0 %v5346_v0  ;;  %v105_v3 = vld [vmem:[#allocation5 + $0x20] sm:$0xff]  ;;  %v176_v4 = vcombine.high %v99_v1, %v99_v1  ;;  %v104_v7 = vld [vmem:[#allocation5 + $0x18] sm:$0xff]  ;;  %vm177_vm1 = vcmask 31744   ;;  %v111_v11 = vld [vmem:[#allocation5 + $0x50] sm:$0xff]  ;;  %v5347_v25 = vmov 0.0|0.0   ;;  %vm5348_vm2 = vmmov 0  }
  0x4b   :  { %v5485_v5 = vpack.c.bf16 %v105_v3, %v102_v2  ;;  %v101_v6 = vld [vmem:[#allocation5] sm:$0xff]  ;;  %v108_v10 = vld [vmem:[#allocation5 + $0x38] sm:$0xff]  ;;  %v100_v12 = vld [vmem:[%s6428_s1 + $0x8] sm:$0xf] }
  0x4c   :  { %v5487_v8 = vpack.c.bf16 %v104_v7, %v101_v6  ;;  %v5492_v9 = vld [vmem:[%s6427_s0] sm:$0xff]  ;;  %3236 = vmatprep.subr.msk.mxu1 %vm199_vm0, %v176_v4  ;;  %v5499_v13 = vpack.c.bf16 %v111_v11, %v108_v10  ;;  %v107_v14 = vld [vmem:[#allocation5 + $0x30] sm:$0xff]  ;;  %v110_v15 = vld [vmem:[#allocation5 + $0x48] sm:$0xff] }
  0x4d   :  { %4172 = vmatprep.subr.bf16.mxu0 %v5485_v5  ;;  %3237 = vmatpush1.msk.msra.mxu1 %vm199_vm0, %v99_v1  ;;  %v5503_v16 = vpack.c.bf16 %v110_v15, %v107_v14  ;;  %v114_v17 = vld [vmem:[#allocation5 + $0x68] sm:$0xff]  ;;  %v117_v18 = vld [vmem:[#allocation5 + $0x80] sm:$0xff]  ;;  %v116_v21 = vld [vmem:[#allocation5 + $0x78] sm:$0xff] }
  0x4e   :  { %4174 = vmatpush1.bf16.msra.mxu0 %v5487_v8  ;;  %3238 = vmatmul.mubr.msk.f32.vlgmr.msra.gmra.mrb[0].mxu1 %vm177_vm1, %v5492_v9  ;;  %v5508_v19 = vpack.c.bf16 %v117_v18, %v114_v17  ;;  %v113_v20 = vld [vmem:[#allocation5 + $0x60] sm:$0xff]  ;;  %v5515_v22 = vld [vmem:[%s6427_s0 + $0x8] sm:$0xff]  ;;  %v120_v23 = vld [vmem:[#allocation5 + $0x98] sm:$0xff] }
  0x4f   :  { %3570 = vmatprep.subr.mxu1 %v5346_v0  ;;  %4176 = vmatprep.subr.bf16.mxu0 %v5499_v13  ;;  %v123_v24 = vld [vmem:[#allocation5 + $0xb0] sm:$0xff]  ;;  %v5520_v26 = vpack.c.bf16 %v116_v21, %v113_v20  ;;  %v122_v29 = vld [vmem:[#allocation5 + $0xa8] sm:$0xff]  ;;  %v129_v32 = vld [vmem:[#allocation5 + $0xe0] sm:$0xff] }
  0x50   :  { %3571 = vmatpush3.msk.msra.mxu1 %vm199_vm0, %v100_v12  ;;  %276 = vmatprep.mubr.f32.mxu1 %v5346_v0  ;;  %v5525_v27 = vpack.c.bf16 %v123_v24, %v120_v23  ;;  %v119_v28 = vld [vmem:[#allocation5 + $0x90] sm:$0xff]  ;;  %v126_v31 = vld [vmem:[#allocation5 + $0xc8] sm:$0xff]  ;;  %v125_v35 = vld [vmem:[#allocation5 + $0xc0] sm:$0xff] }
  0x51   :  { %4203 = vmatprep.subr.bf16.mxu1 %v5347_v25  ;;  %v5531_v30 = vld [vmem:[%s6427_s0 + $0x10] sm:$0xff]  ;;  %v5534_v33 = vpack.c.bf16 %v122_v29, %v119_v28  ;;  %v5539_v34 = vpack.c.bf16 %v129_v32, %v126_v31  ;;  %v128_v36 = vld [vmem:[#allocation5 + $0xd8] sm:$0xff]  ;;  %v134_v43 = vld [vmem:[#allocation5 + $0x108] sm:$0xff]  ;;  %v159_v29 = vlaneseq }
  0x52   :  { %4178 = vmatpush1.bf16.msra.mxu0 %v5503_v16  ;;  %3239 = vmatmul.mubr.msk.f32.gmra.mrb[2].mxu1 %vm177_vm1, %v5515_v22  ;;  %v5545_v37 = vld [vmem:[%s6427_s0 + $0x18] sm:$0xff]  ;;  %v135_v39 = vld [vmem:[#allocation5 + $0x110] sm:$0xff]  ;;  %v5548_v40 = vpack.c.bf16 %v128_v36, %v125_v35  ;;  %v5559_v44 = vld [vmem:[%s6427_s0 + $0x20] sm:$0xff] }
  0x53   :  { %4180 = vmatprep.subr.bf16.mxu0 %v5508_v19  ;;  %282 = vmatprep.mubr.f32.mxu1 %v5346_v0  ;;  %v132_v38 = vld [vmem:[#allocation5 + $0xf8] sm:$0xff]  ;;  %v131_v42 = vld [vmem:[#allocation5 + $0xf0] sm:$0xff]  ;;  %v138_v45 = vld [vmem:[#allocation5 + $0x128] sm:$0xff] }
  0x54   :  { %v5553_v41 = vpack.c.bf16 %v135_v39, %v132_v38  ;;  %v141_v46 = vld [vmem:[#allocation5 + $0x140] sm:$0xff]  ;;  %v5562_v47 = vpack.c.bf16 %v134_v43, %v131_v42  ;;  %v140_v50 = vld [vmem:[#allocation5 + $0x138] sm:$0xff]  ;;  %v5573_v51 = vld [vmem:[%s6427_s0 + $0x28] sm:$0xff] }
  0x55   :  { %v5567_v48 = vpack.c.bf16 %v141_v46, %v138_v45  ;;  %v137_v49 = vld [vmem:[#allocation5 + $0x120] sm:$0xff]  ;;  %v144_v52 = vld [vmem:[#allocation5 + $0x158] sm:$0xff]  ;;  %v147_v53 = vld [vmem:[#allocation5 + $0x170] sm:$0xff] }
  0x56   :  { %4182 = vmatpush1.bf16.msra.mxu0 %v5520_v26  ;;  %3240 = vmatmul.mubr.msk.f32.gmra.mrb[4].mxu1 %vm177_vm1, %v5531_v30  ;;  %v5576_v54 = vpack.c.bf16 %v140_v50, %v137_v49  ;;  %v5581_v55 = vpack.c.bf16 %v147_v53, %v144_v52  ;;  %v143_v56 = vld [vmem:[#allocation5 + $0x150] sm:$0xff]  ;;  %v146_v57 = vld [vmem:[#allocation5 + $0x168] sm:$0xff]  ;;  %v109_v63 = vld [vmem:[#allocation5 + $0x40] sm:$0xff] }
  0x57   :  { %4184 = vmatprep.subr.bf16.mxu0 %v5525_v27  ;;  %288 = vmatprep.mubr.f32.mxu1 %v5346_v0  ;;  %v5587_v58 = vld [vmem:[%s6427_s0 + $0x30] sm:$0xff]  ;;  %v106_v60 = vld [vmem:[#allocation5 + $0x28] sm:$0xff]  ;;  %v5590_v61 = vpack.c.bf16 %v146_v57, %v143_v56  ;;  %v112_v1 = vld [vmem:[#allocation5 + $0x58] sm:$0xff] }
  0x58   :  { %v103_v59 = vld [vmem:[#allocation5 + $0x10] sm:$0xff]  ;;  %v5604_v2 = vpack.c.bf16 %v112_v1, %v109_v63  ;;  %v118_v4 = vld [vmem:[#allocation5 + $0x88] sm:$0xff]  ;;  %v121_v7 = vld [vmem:[#allocation5 + $0xa0] sm:$0xff] }
  0x59   :  { %v5597_v62 = vpack.c.bf16 %v106_v60, %v103_v59  ;;  %v115_v3 = vld [vmem:[#allocation5 + $0x70] sm:$0xff]  ;;  %v130_v12 = vld [vmem:[#allocation5 + $0xe8] sm:$0xff]  ;;  %v133_v15 = vld [vmem:[#allocation5 + $0x100] sm:$0xff] }
  0x5a   :  { %4186 = vmatpush1.bf16.msra.mxu0 %v5534_v33  ;;  %3241 = vmatmul.mubr.msk.f32.gmra.mrb[6].mxu1 %vm177_vm1, %v5545_v37  ;;  %v5616_v6 = vpack.c.bf16 %v118_v4, %v115_v3  ;;  %v127_v11 = vld [vmem:[#allocation5 + $0xd0] sm:$0xff]  ;;  %v136_v17 = vld [vmem:[#allocation5 + $0x118] sm:$0xff]  ;;  %v142_v21 = vld [vmem:[#allocation5 + $0x148] sm:$0xff] }
  0x5b   :  { %4188 = vmatprep.subr.bf16.mxu0 %v5539_v34  ;;  %294 = vmatprep.mubr.f32.mxu1 %v5346_v0  ;;  %v5636_v14 = vpack.c.bf16 %v130_v12, %v127_v11  ;;  %v5646_v18 = vpack.c.bf16 %v136_v17, %v133_v15  ;;  %v139_v20 = vld [vmem:[#allocation5 + $0x130] sm:$0xff]  ;;  %v145_v23 = vld [vmem:[#allocation5 + $0x160] sm:$0xff]  ;;  %v148_v24 = vld [vmem:[#allocation5 + $0x178] sm:$0xff] }
  0x5c   :  { %v5666_v28 = vpack.c.bf16 %v148_v24, %v145_v23  ;;  %v149_v32 = vld [vmem:[%s6430_s3] sm:$0x7] }
  0x5e   :  { %4190 = vmatpush1.bf16.msra.mxu0 %v5548_v40  ;;  %3242 = vmatmul.mubr.msk.f32.gmra.mrb[8].mxu1 %vm177_vm1, %v5559_v44 }
  0x5f   :  { %4192 = vmatprep.subr.bf16.mxu0 %v5553_v41  ;;  %300 = vmatprep.mubr.f32.mxu1 %v5346_v0 }
  0x62   :  { %4194 = vmatpush1.bf16.msra.mxu0 %v5562_v47  ;;  %3243 = vmatmul.mubr.msk.f32.gmra.mrb[10].mxu1 %vm177_vm1, %v5573_v51 }
  0x63   :  { %4196 = vmatprep.subr.bf16.mxu0 %v5567_v48  ;;  %306 = vmatprep.mubr.f32.mxu1 %v5346_v0 }
  0x66   :  { %4198 = vmatpush1.bf16.msra.mxu0 %v5576_v54  ;;  %3244 = vmatmul.mubr.msk.f32.gmra.mrb[12].mxu1 %vm177_vm1, %v5587_v58 }
  0x67   :  { %4200 = vmatprep.subr.bf16.mxu0 %v5581_v55  ;;  %3572 = vmatprep.mubr.msk.f32.mxu1 %vm5348_vm2, %v5346_v0 }
  0x6a   :  { %4202 = vmatpush1.bf16.msra.mxu0 %v5590_v61  ;;  %3573 = vmatmul.mubr.msk.f32.vlgmr.msra.gmra.mrb[14].mxu1 %vm177_vm1, %v5492_v9  ;;  %v124_v9 = vld [vmem:[#allocation5 + $0xb8] sm:$0xff] }
  0x6b   :  { %4228 = vmatprep.subr.bf16.mxu0 %v5485_v5  ;;  %4205 = vmatpush3.bf16.msra.mxu1 %v5597_v62  ;;  %v5626_v10 = vpack.c.bf16 %v124_v9, %v121_v7 }
  0x6c   :  { %3575 = vmatprep.mubr.msk.f32.mxu1 %vm5348_vm2, %v5346_v0  ;;  %4206 = vmatprep.subr.bf16.mxu1 %v5347_v25 }
  0x6d   :  { %503 = vmatmul.mubr.f32.vlgmr.msra.gmra.mrb[0].mxu0 %v5346_v0 }
  0x6e   :  { %4230 = vmatpush1.bf16.msra.mxu0 %v5487_v8  ;;  %675 = vmatprep.mubr.f32.mxu0 %v5346_v0 }
  0x6f   :  { %3576 = vmatmul.mubr.msk.f32.gmra.mrb[16].mxu1 %vm177_vm1, %v5515_v22  ;;  %4232 = vmatprep.subr.bf16.mxu0 %v5499_v13  ;;  %v5656_v22 = vpack.c.bf16 %v142_v21, %v139_v20 }
  0x70   :  { %4208 = vmatpush3.bf16.msra.mxu1 %v5604_v2  ;;  %3578 = vmatprep.mubr.msk.f32.mxu1 %vm5348_vm2, %v5346_v0 }
  0x71   :  { %4209 = vmatprep.subr.bf16.mxu1 %v5347_v25 }
  0x72   :  { %4234 = vmatpush1.bf16.msra.mxu0 %v5503_v16 }
  0x73   :  { %3579 = vmatmul.mubr.msk.f32.gmra.mrb[18].mxu1 %vm177_vm1, %v5531_v30  ;;  %4236 = vmatprep.subr.bf16.mxu0 %v5508_v19  ;;  %v5696_v30 = vshrl.u32 %v159_v29, 7 }
  0x74   :  { %4211 = vmatpush3.bf16.msra.mxu1 %v5616_v6  ;;  %3581 = vmatprep.mubr.msk.f32.mxu1 %vm5348_vm2, %v5346_v0 }
  0x75   :  { %4212 = vmatprep.subr.bf16.mxu1 %v5347_v25  ;;  %v161_v31 = vsub.s32 0, %v5696_v30  ;;  %v6440_v36 = vsub.s32 1, %v5696_v30  ;;  %v6439_v17 = vsub.s32 2, %v5696_v30 }
  0x76   :  { %4238 = vmatpush1.bf16.msra.mxu0 %v5520_v26 }
  0x77   :  { %3582 = vmatmul.mubr.msk.f32.gmra.mrb[20].mxu1 %vm177_vm1, %v5545_v37  ;;  %4240 = vmatprep.subr.bf16.mxu0 %v5525_v27  ;;  %v162_v38 = vrot.slane %v149_v32, %v161_v31  ;;  %v166_v39 = vrot.slane %v149_v32, %v6440_v36 }
  0x78   :  { %4214 = vmatpush3.bf16.msra.mxu1 %v5626_v10  ;;  %3584 = vmatprep.mubr.msk.f32.mxu1 %vm5348_vm2, %v5346_v0 }
  0x79   :  { %4215 = vmatprep.subr.bf16.mxu1 %v5347_v25 }
  0x7a   :  { %4242 = vmatpush1.bf16.msra.mxu0 %v5534_v33 }
  0x7b   :  { %3585 = vmatmul.mubr.msk.f32.gmra.mrb[22].mxu1 %vm177_vm1, %v5559_v44  ;;  %4244 = vmatprep.subr.bf16.mxu0 %v5539_v34 }
  0x7c   :  { %4217 = vmatpush3.bf16.msra.mxu1 %v5636_v14  ;;  %3587 = vmatprep.mubr.msk.f32.mxu1 %vm5348_vm2, %v5346_v0 }
  0x7d   :  { %4218 = vmatprep.subr.bf16.mxu1 %v5347_v25 }
  0x7e   :  { %4246 = vmatpush1.bf16.msra.mxu0 %v5548_v40 }
  0x7f   :  { %3588 = vmatmul.mubr.msk.f32.gmra.mrb[24].mxu1 %vm177_vm1, %v5573_v51  ;;  %4248 = vmatprep.subr.bf16.mxu0 %v5553_v41 }
  0x80   :  { %4220 = vmatpush3.bf16.msra.mxu1 %v5646_v18  ;;  %3590 = vmatprep.mubr.msk.f32.mxu1 %vm5348_vm2, %v5346_v0 }
  0x81   :  { %4221 = vmatprep.subr.bf16.mxu1 %v5347_v25 }
  0x82   :  { %4250 = vmatpush1.bf16.msra.mxu0 %v5562_v47 }
  0x83   :  { %3591 = vmatmul.mubr.msk.f32.gmra.mrb[26].mxu1 %vm177_vm1, %v5587_v58  ;;  %4252 = vmatprep.subr.bf16.mxu0 %v5567_v48 }
  0x84   :  { %4223 = vmatpush3.bf16.msra.mxu1 %v5656_v22  ;;  %3625 = vmatprep.mubr.msk.f32.mxu1 %vm5348_vm2, %v5346_v0 }
  0x85   :  { %4224 = vmatprep.subr.bf16.mxu1 %v5347_v25 }
  0x86   :  { %4254 = vmatpush1.bf16.msra.mxu0 %v5576_v54 }
  0x87   :  { %4256 = vmatprep.subr.bf16.mxu0 %v5581_v55 }
  0x88   :  { %4226 = vmatpush3.bf16.msra.mxu1 %v5666_v28 }
  0x89   :  { %4259 = vmatprep.subr.bf16.mxu1 %v5347_v25 }
  0x8a   :  { %4258 = vmatpush1.bf16.msra.mxu0 %v5590_v61 }
  0x8b   :  { %3626 = vmatmul.mubr.f32.vlgmr.msra.gmra.mrb[28].mxu1 %v5346_v0  ;;  %4284 = vmatprep.subr.bf16.mxu0 %v5485_v5 }
  0x8c   :  { %4261 = vmatpush3.bf16.msra.mxu1 %v5597_v62  ;;  %3660 = vmatprep.mubr.msk.f32.mxu1 %vm5348_vm2, %v5346_v0 }
  0x8d   :  { %4262 = vmatprep.subr.bf16.mxu1 %v5347_v25 }
  0x90   :  { %4264 = vmatpush3.bf16.msra.mxu1 %v5604_v2 }
  0x91   :  { %4265 = vmatprep.subr.bf16.mxu1 %v5347_v25 }
  0x94   :  { %4267 = vmatpush3.bf16.msra.mxu1 %v5616_v6 }
  0x95   :  { %4268 = vmatprep.subr.bf16.mxu1 %v5347_v25 }
  0x98   :  { %4270 = vmatpush3.bf16.msra.mxu1 %v5626_v10 }
  0x99   :  { %4271 = vmatprep.subr.bf16.mxu1 %v5347_v25 }
  0x9c   :  { %4273 = vmatpush3.bf16.msra.mxu1 %v5636_v14 }
  0x9d   :  { %4274 = vmatprep.subr.bf16.mxu1 %v5347_v25 }
  0xa0   :  { %4276 = vmatpush3.bf16.msra.mxu1 %v5646_v18 }
  0xa1   :  { %4277 = vmatprep.subr.bf16.mxu1 %v5347_v25 }
  0xa4   :  { %4279 = vmatpush3.bf16.msra.mxu1 %v5656_v22 }
  0xa5   :  { %4280 = vmatprep.subr.bf16.mxu1 %v5347_v25 }
  0xa8   :  { %4282 = vmatpush3.bf16.msra.mxu1 %v5666_v28 }
  0xa9   :  { %4315 = vmatprep.subr.bf16.mxu1 %v5347_v25 }
 0x121   :  { %v272_v35 = vpop.f32.mrb[0].mxu1 }
 0x122   :  { %v274_v37 = vpop.f32.mrb[1].mxu1  ;;  %v273_v21 = vadd.f32 %v272_v35, %v162_v38 }
 0x123   :  { %v275_v24 = vadd.f32 %v274_v37, %v166_v39 }
 0x125   :  { %v278_v42 = vpop.f32.mrb[2].mxu1 }
 0x126   :  { %v5707_v43 = vadd.f32 %v278_v42, %v162_v38  ;;  %v280_v44 = vpop.f32.mrb[3].mxu1  ;;  %v170_v42 = vrot.slane %v149_v32, %v6439_v17 }
 0x127   :  { %v5709_v45 = vadd.f32 %v280_v44, %v166_v39 }
 0x129   :  { %v284_v46 = vpop.f32.mrb[4].mxu1 }
 0x12a   :  { %v5711_v49 = vadd.f32 %v284_v46, %v162_v38  ;;  %v286_v50 = vpop.f32.mrb[5].mxu1 }
 0x12b   :  { %v5713_v51 = vadd.f32 %v286_v50, %v166_v39 }
 0x12d   :  { %v290_v52 = vpop.f32.mrb[6].mxu1 }
 0x12e   :  { %v5715_v53 = vadd.f32 %v290_v52, %v162_v38  ;;  %v292_v56 = vpop.f32.mrb[7].mxu1 }
 0x12f   :  { %v5717_v57 = vadd.f32 %v292_v56, %v166_v39 }
 0x131   :  { %v296_v58 = vpop.f32.mrb[8].mxu1 }
 0x132   :  { %v5719_v59 = vadd.f32 %v296_v58, %v162_v38  ;;  %v298_v60 = vpop.f32.mrb[9].mxu1 }
 0x133   :  { %v5721_v63 = vadd.f32 %v298_v60, %v166_v39 }
 0x135   :  { %v302_v1 = vpop.f32.mrb[10].mxu1 }
 0x136   :  { %v5723_v3 = vadd.f32 %v302_v1, %v162_v38  ;;  %v304_v4 = vpop.f32.mrb[11].mxu1 }
 0x137   :  { %v5725_v7 = vadd.f32 %v304_v4, %v166_v39 }
 0x139   :  { %v308_v9 = vpop.f32.mrb[12].mxu1 }
 0x13a   :  { %v5727_v11 = vadd.f32 %v308_v9, %v162_v38  ;;  %v310_v12 = vpop.f32.mrb[13].mxu1 }
 0x13b   :  { %v5729_v15 = vadd.f32 %v310_v12, %v166_v39 }
 0x13d   :  { %v379_v20 = vpop.f32.mrb[14].mxu1 }
 0x13e   :  { %v3574_v23 = vpop.f32.mrb[15].mxu1 }
 0x140   :  { %v504_v29 = vpop.f32.mrb[0].mxu0 }
 0x141   :  { %v579_v44 = vadd.f32 %v504_v29, %v273_v21  ;;  %v506_v46 = vpop.f32.mrb[1].mxu0 }
 0x142   :  { %v580_v50 = vadd.f32 %v506_v46, %v275_v24  ;;  %v384_v52 = vpop.f32.mrb[16].mxu1 }
 0x143   :  { %v3253_v56 = vmul.f32 -1.442695, %v579_v44  ;;  %v5734_v58 = vadd.f32 %v384_v52, %v170_v42  ;;  %v3577_v60 = vpop.f32.mrb[17].mxu1 }
 0x144   :  { %v3254_v39 = vmul.f32 -1.442695, %v580_v50  ;;  %v5749_v50 = vld [vmem:[%s6431_s4] ss:$0 sm:$0xff] }
 0x145   :  { %5103 = vpow2.f32 %v3253_v56 }
 0x146   :  { %v389_v1 = vpop.f32.mrb[18].mxu1  ;;  %5105 = vpow2.f32 %v3254_v39 }
 0x147   :  { %v5736_v4 = vadd.f32 %v389_v1, %v170_v42  ;;  %v3580_v9 = vpop.f32.mrb[19].mxu1 }
 0x14a   :  { %v394_v35 = vpop.f32.mrb[20].mxu1 }
 0x14b   :  { %v5738_v38 = vadd.f32 %v394_v35, %v170_v42  ;;  %v3583_v37 = vpop.f32.mrb[21].mxu1 }
 0x14e   :  { %v399_v12 = vpop.f32.mrb[22].mxu1 }
 0x14f   :  { %v5104_v32 = vpop.eup %5103  ;;  %v5740_v21 = vadd.f32 %v399_v12, %v170_v42  ;;  %v3586_v23 = vpop.f32.mrb[23].mxu1 }
 0x150   :  { %v587_v24 = vadd.f32 1.0, %v5104_v32  ;;  %v5106_v1 = vpop.eup %5105  ;;  %v380_v32 = vadd.f32 %v379_v20, %v170_v42 }
 0x151   :  { %v588_v9 = vadd.f32 1.0, %v5106_v1 }
 0x152   :  { %v404_v29 = vpop.f32.mrb[24].mxu1  ;;  %5107 = vrcp.f32 %v587_v24 }
 0x153   :  { %v5742_v44 = vadd.f32 %v404_v29, %v170_v42  ;;  %v3589_v46 = vpop.f32.mrb[25].mxu1  ;;  %5109 = vrcp.f32 %v588_v9 }
 0x156   :  { %v409_v52 = vpop.f32.mrb[26].mxu1 }
 0x157   :  { %v5744_v56 = vadd.f32 %v409_v52, %v170_v42  ;;  %v3592_v60 = vpop.f32.mrb[27].mxu1 }
 0x15c   :  { %v5108_v12 = vpop.eup %5107 }
 0x15d   :  { %v5110_v29 = vpop.eup %5109 }
 0x15e   :  { %v575_v35 = vpop.f32.mrb[28].mxu1  ;;  %v603_v46 = vsub.f32 1.0, %v5110_v29  ;;  %v605_v17 = vmul.f32 0.0, %v5110_v29 }
 0x15f   :  { %v599_v37 = vadd.f32 %v5749_v50, %v575_v35  ;;  %v3627_v39 = vpop.f32.mrb[29].mxu1 }
 0x161   :  { %v600_v23 = vmul.f32 %v5108_v12, %v599_v37 }
 0x163   :  { %v601_v24 = vadd.f32 %v600_v23, %v380_v32 }
 0x165   :  { %5111 = vtanh.f32 %v601_v24 }
 0x16f   :  { %v5112_v52 = vpop.eup %5111 }
 0x170   :  { %v604_v60 = vmul.f32 %v5112_v52, %v603_v46 }
 0x172   :  { %v5752_v36 = vadd.f32 %v605_v17, %v604_v60 }
 0x174   :  { %676 = vmatmul.mubr.f32.vlgmr.msra.gmra.mrb[2].mxu0 %v5752_v36  ;;  %3661 = vmatmul.mubr.f32.vlgmr.msra.gmra.mrb[30].mxu1 %v5752_v36 }
 0x175   :  { %4286 = vmatpush1.bf16.msra.mxu0 %v5487_v8  ;;  %4317 = vmatpush3.bf16.msra.mxu1 %v5597_v62 }
 0x176   :  { %4288 = vmatprep.subr.bf16.mxu0 %v5499_v13  ;;  %4318 = vmatprep.subr.bf16.mxu1 %v5347_v25 }
 0x177   :  { %842 = vmatprep.mubr.f32.mxu0 %v5346_v0  ;;  %3695 = vmatprep.mubr.msk.f32.mxu1 %vm5348_vm2, %v5346_v0 }
 0x179   :  { %4290 = vmatpush1.bf16.msra.mxu0 %v5503_v16  ;;  %4320 = vmatpush3.bf16.msra.mxu1 %v5604_v2 }
 0x17a   :  { %4292 = vmatprep.subr.bf16.mxu0 %v5508_v19  ;;  %4321 = vmatprep.subr.bf16.mxu1 %v5347_v25 }
 0x17d   :  { %4294 = vmatpush1.bf16.msra.mxu0 %v5520_v26  ;;  %4323 = vmatpush3.bf16.msra.mxu1 %v5616_v6 }
 0x17e   :  { %4296 = vmatprep.subr.bf16.mxu0 %v5525_v27  ;;  %4324 = vmatprep.subr.bf16.mxu1 %v5347_v25 }
 0x181   :  { %4298 = vmatpush1.bf16.msra.mxu0 %v5534_v33  ;;  %4326 = vmatpush3.bf16.msra.mxu1 %v5626_v10 }
 0x182   :  { %4300 = vmatprep.subr.bf16.mxu0 %v5539_v34  ;;  %4327 = vmatprep.subr.bf16.mxu1 %v5347_v25 }
 0x185   :  { %4302 = vmatpush1.bf16.msra.mxu0 %v5548_v40  ;;  %4329 = vmatpush3.bf16.msra.mxu1 %v5636_v14 }
 0x186   :  { %4304 = vmatprep.subr.bf16.mxu0 %v5553_v41  ;;  %4330 = vmatprep.subr.bf16.mxu1 %v5347_v25 }
 0x189   :  { %4306 = vmatpush1.bf16.msra.mxu0 %v5562_v47  ;;  %4332 = vmatpush3.bf16.msra.mxu1 %v5646_v18 }
 0x18a   :  { %4308 = vmatprep.subr.bf16.mxu0 %v5567_v48  ;;  %4333 = vmatprep.subr.bf16.mxu1 %v5347_v25 }
 0x18d   :  { %4310 = vmatpush1.bf16.msra.mxu0 %v5576_v54  ;;  %4335 = vmatpush3.bf16.msra.mxu1 %v5656_v22 }
 0x18e   :  { %4312 = vmatprep.subr.bf16.mxu0 %v5581_v55  ;;  %4336 = vmatprep.subr.bf16.mxu1 %v5347_v25 }
 0x191   :  { %4314 = vmatpush1.bf16.msra.mxu0 %v5590_v61  ;;  %4338 = vmatpush3.bf16.msra.mxu1 %v5666_v28 }
 0x192   :  { %4340 = vmatprep.subr.bf16.mxu0 %v5485_v5  ;;  %4371 = vmatprep.subr.bf16.mxu1 %v5347_v25 }
 0x247   :  { %v677_v17 = vpop.f32.mrb[2].mxu0  ;;  %v748_v20 = vpop.f32.mrb[30].mxu1 }
 0x248   :  { %v752_v42 = vadd.f32 %v677_v17, %v5707_v43  ;;  %v679_v1 = vpop.f32.mrb[3].mxu0  ;;  %v3662_v9 = vpop.f32.mrb[31].mxu1  ;;  %v766_v29 = vadd.f32 %v5749_v50, %v748_v20 }
 0x249   :  { %v753_v35 = vadd.f32 %v679_v1, %v5709_v45 }
 0x24a   :  { %v3256_v37 = vmul.f32 -1.442695, %v752_v42 }
 0x24b   :  { %v3257_v39 = vmul.f32 -1.442695, %v753_v35 }
 0x24c   :  { %5113 = vpow2.f32 %v3256_v37 }
 0x24d   :  { %5115 = vpow2.f32 %v3257_v39 }
 0x256   :  { %v5114_v12 = vpop.eup %5113 }
 0x257   :  { %v760_v32 = vadd.f32 1.0, %v5114_v12  ;;  %v5116_v23 = vpop.eup %5115 }
 0x258   :  { %v761_v24 = vadd.f32 1.0, %v5116_v23 }
 0x259   :  { %5117 = vrcp.f32 %v760_v32 }
 0x25a   :  { %5119 = vrcp.f32 %v761_v24 }
 0x263   :  { %v5118_v46 = vpop.eup %5117 }
 0x264   :  { %v767_v52 = vmul.f32 %v5118_v46, %v766_v29  ;;  %v5120_v60 = vpop.eup %5119 }
 0x265   :  { %v770_v17 = vsub.f32 1.0, %v5120_v60  ;;  %v772_v1 = vmul.f32 %v5120_v60, %v5752_v36 }
 0x266   :  { %v768_v43 = vadd.f32 %v767_v52, %v5734_v58 }
 0x268   :  { %5121 = vtanh.f32 %v768_v43 }
 0x272   :  { %v5122_v45 = vpop.eup %5121 }
 0x273   :  { %v771_v42 = vmul.f32 %v5122_v45, %v770_v17 }
 0x275   :  { %v5796_v9 = vadd.f32 %v772_v1, %v771_v42 }
 0x277   :  { %843 = vmatmul.mubr.f32.vlgmr.msra.gmra.mrb[4].mxu0 %v5796_v9  ;;  %3696 = vmatmul.mubr.f32.vlgmr.msra.gmra.mrb[32].mxu1 %v5796_v9 }
 0x278   :  { %4342 = vmatpush1.bf16.msra.mxu0 %v5487_v8  ;;  %4373 = vmatpush3.bf16.msra.mxu1 %v5597_v62 }
 0x279   :  { %4344 = vmatprep.subr.bf16.mxu0 %v5499_v13  ;;  %4374 = vmatprep.subr.bf16.mxu1 %v5347_v25 }
 0x27a   :  { %1009 = vmatprep.mubr.f32.mxu0 %v5346_v0  ;;  %3730 = vmatprep.mubr.msk.f32.mxu1 %vm5348_vm2, %v5346_v0 }
 0x27c   :  { %4346 = vmatpush1.bf16.msra.mxu0 %v5503_v16  ;;  %4376 = vmatpush3.bf16.msra.mxu1 %v5604_v2 }
 0x27d   :  { %4348 = vmatprep.subr.bf16.mxu0 %v5508_v19  ;;  %4377 = vmatprep.subr.bf16.mxu1 %v5347_v25 }
 0x280   :  { %4350 = vmatpush1.bf16.msra.mxu0 %v5520_v26  ;;  %4379 = vmatpush3.bf16.msra.mxu1 %v5616_v6 }
 0x281   :  { %4352 = vmatprep.subr.bf16.mxu0 %v5525_v27  ;;  %4380 = vmatprep.subr.bf16.mxu1 %v5347_v25 }
 0x284   :  { %4354 = vmatpush1.bf16.msra.mxu0 %v5534_v33  ;;  %4382 = vmatpush3.bf16.msra.mxu1 %v5626_v10 }
 0x285   :  { %4356 = vmatprep.subr.bf16.mxu0 %v5539_v34  ;;  %4383 = vmatprep.subr.bf16.mxu1 %v5347_v25 }
 0x288   :  { %4358 = vmatpush1.bf16.msra.mxu0 %v5548_v40  ;;  %4385 = vmatpush3.bf16.msra.mxu1 %v5636_v14 }
 0x289   :  { %4360 = vmatprep.subr.bf16.mxu0 %v5553_v41  ;;  %4386 = vmatprep.subr.bf16.mxu1 %v5347_v25 }
 0x28c   :  { %4362 = vmatpush1.bf16.msra.mxu0 %v5562_v47  ;;  %4388 = vmatpush3.bf16.msra.mxu1 %v5646_v18 }
 0x28d   :  { %4364 = vmatprep.subr.bf16.mxu0 %v5567_v48  ;;  %4389 = vmatprep.subr.bf16.mxu1 %v5347_v25 }
 0x290   :  { %4366 = vmatpush1.bf16.msra.mxu0 %v5576_v54  ;;  %4391 = vmatpush3.bf16.msra.mxu1 %v5656_v22 }
 0x291   :  { %4368 = vmatprep.subr.bf16.mxu0 %v5581_v55  ;;  %4392 = vmatprep.subr.bf16.mxu1 %v5347_v25 }
 0x294   :  { %4370 = vmatpush1.bf16.msra.mxu0 %v5590_v61  ;;  %4394 = vmatpush3.bf16.msra.mxu1 %v5666_v28 }
 0x295   :  { %4396 = vmatprep.subr.bf16.mxu0 %v5485_v5  ;;  %4427 = vmatprep.subr.bf16.mxu1 %v5347_v25 }
 0x34a   :  { %v844_v58 = vpop.f32.mrb[4].mxu0  ;;  %v915_v20 = vpop.f32.mrb[32].mxu1 }
 0x34b   :  { %v919_v35 = vadd.f32 %v844_v58, %v5711_v49  ;;  %v846_v37 = vpop.f32.mrb[5].mxu0  ;;  %v3697_v39 = vpop.f32.mrb[33].mxu1  ;;  %v933_v43 = vadd.f32 %v5749_v50, %v915_v20 }
 0x34c   :  { %v920_v12 = vadd.f32 %v846_v37, %v5713_v51 }
 0x34d   :  { %v3258_v32 = vmul.f32 -1.442695, %v919_v35 }
 0x34e   :  { %v3259_v23 = vmul.f32 -1.442695, %v920_v12 }
 0x34f   :  { %5123 = vpow2.f32 %v3258_v32 }
 0x350   :  { %5125 = vpow2.f32 %v3259_v23 }
 0x359   :  { %v5124_v24 = vpop.eup %5123 }
 0x35a   :  { %v927_v29 = vadd.f32 1.0, %v5124_v24  ;;  %v5126_v46 = vpop.eup %5125 }
 0x35b   :  { %v928_v52 = vadd.f32 1.0, %v5126_v46 }
 0x35c   :  { %5127 = vrcp.f32 %v927_v29 }
 0x35d   :  { %5129 = vrcp.f32 %v928_v52 }
 0x366   :  { %v5128_v60 = vpop.eup %5127 }
 0x367   :  { %v934_v17 = vmul.f32 %v5128_v60, %v933_v43  ;;  %v5130_v45 = vpop.eup %5129 }
 0x368   :  { %v937_v42 = vsub.f32 1.0, %v5130_v45  ;;  %v939_v58 = vmul.f32 %v5130_v45, %v5796_v9 }
 0x369   :  { %v935_v49 = vadd.f32 %v934_v17, %v5736_v4 }
 0x36b   :  { %5131 = vtanh.f32 %v935_v49 }
 0x375   :  { %v5132_v51 = vpop.eup %5131 }
 0x376   :  { %v938_v1 = vmul.f32 %v5132_v51, %v937_v42 }
 0x378   :  { %v5840_v35 = vadd.f32 %v939_v58, %v938_v1 }
 0x37a   :  { %1010 = vmatmul.mubr.f32.vlgmr.msra.gmra.mrb[6].mxu0 %v5840_v35  ;;  %3731 = vmatmul.mubr.f32.vlgmr.msra.gmra.mrb[34].mxu1 %v5840_v35 }
 0x37b   :  { %4398 = vmatpush1.bf16.msra.mxu0 %v5487_v8  ;;  %4429 = vmatpush3.bf16.msra.mxu1 %v5597_v62 }
 0x37c   :  { %4400 = vmatprep.subr.bf16.mxu0 %v5499_v13  ;;  %4430 = vmatprep.subr.bf16.mxu1 %v5347_v25 }
 0x37d   :  { %1176 = vmatprep.mubr.f32.mxu0 %v5346_v0  ;;  %3765 = vmatprep.mubr.msk.f32.mxu1 %vm5348_vm2, %v5346_v0 }
 0x37f   :  { %4402 = vmatpush1.bf16.msra.mxu0 %v5503_v16  ;;  %4432 = vmatpush3.bf16.msra.mxu1 %v5604_v2 }
 0x380   :  { %4404 = vmatprep.subr.bf16.mxu0 %v5508_v19  ;;  %4433 = vmatprep.subr.bf16.mxu1 %v5347_v25 }
 0x383   :  { %4406 = vmatpush1.bf16.msra.mxu0 %v5520_v26  ;;  %4435 = vmatpush3.bf16.msra.mxu1 %v5616_v6 }
 0x384   :  { %4408 = vmatprep.subr.bf16.mxu0 %v5525_v27  ;;  %4436 = vmatprep.subr.bf16.mxu1 %v5347_v25 }
 0x387   :  { %4410 = vmatpush1.bf16.msra.mxu0 %v5534_v33  ;;  %4438 = vmatpush3.bf16.msra.mxu1 %v5626_v10 }
 0x388   :  { %4412 = vmatprep.subr.bf16.mxu0 %v5539_v34  ;;  %4439 = vmatprep.subr.bf16.mxu1 %v5347_v25 }
 0x38b   :  { %4414 = vmatpush1.bf16.msra.mxu0 %v5548_v40  ;;  %4441 = vmatpush3.bf16.msra.mxu1 %v5636_v14 }
 0x38c   :  { %4416 = vmatprep.subr.bf16.mxu0 %v5553_v41  ;;  %4442 = vmatprep.subr.bf16.mxu1 %v5347_v25 }
 0x38f   :  { %4418 = vmatpush1.bf16.msra.mxu0 %v5562_v47  ;;  %4444 = vmatpush3.bf16.msra.mxu1 %v5646_v18 }
 0x390   :  { %4420 = vmatprep.subr.bf16.mxu0 %v5567_v48  ;;  %4445 = vmatprep.subr.bf16.mxu1 %v5347_v25 }
 0x393   :  { %4422 = vmatpush1.bf16.msra.mxu0 %v5576_v54  ;;  %4447 = vmatpush3.bf16.msra.mxu1 %v5656_v22 }
 0x394   :  { %4424 = vmatprep.subr.bf16.mxu0 %v5581_v55  ;;  %4448 = vmatprep.subr.bf16.mxu1 %v5347_v25 }
 0x397   :  { %4426 = vmatpush1.bf16.msra.mxu0 %v5590_v61  ;;  %4450 = vmatpush3.bf16.msra.mxu1 %v5666_v28 }
 0x398   :  { %4452 = vmatprep.subr.bf16.mxu0 %v5485_v5  ;;  %4483 = vmatprep.subr.bf16.mxu1 %v5347_v25 }
 0x44d   :  { %v1011_v4 = vpop.f32.mrb[6].mxu0  ;;  %v1082_v20 = vpop.f32.mrb[34].mxu1 }
 0x44e   :  { %v1086_v37 = vadd.f32 %v1011_v4, %v5715_v53  ;;  %v1013_v39 = vpop.f32.mrb[7].mxu0  ;;  %v3732_v12 = vpop.f32.mrb[35].mxu1  ;;  %v1100_v60 = vadd.f32 %v5749_v50, %v1082_v20 }
 0x44f   :  { %v1087_v32 = vadd.f32 %v1013_v39, %v5717_v57 }
 0x450   :  { %v3260_v23 = vmul.f32 -1.442695, %v1086_v37 }
 0x451   :  { %v3261_v24 = vmul.f32 -1.442695, %v1087_v32 }
 0x452   :  { %5133 = vpow2.f32 %v3260_v23 }
 0x453   :  { %5135 = vpow2.f32 %v3261_v24 }
 0x45c   :  { %v5134_v29 = vpop.eup %5133 }
 0x45d   :  { %v1094_v46 = vadd.f32 1.0, %v5134_v29  ;;  %v5136_v52 = vpop.eup %5135 }
 0x45e   :  { %v1095_v43 = vadd.f32 1.0, %v5136_v52 }
 0x45f   :  { %5137 = vrcp.f32 %v1094_v46 }
 0x460   :  { %5139 = vrcp.f32 %v1095_v43 }
 0x469   :  { %v5138_v17 = vpop.eup %5137 }
 0x46a   :  { %v1101_v49 = vmul.f32 %v5138_v17, %v1100_v60  ;;  %v5140_v45 = vpop.eup %5139 }
 0x46b   :  { %v1104_v42 = vsub.f32 1.0, %v5140_v45  ;;  %v1106_v1 = vmul.f32 %v5140_v45, %v5840_v35 }
 0x46c   :  { %v1102_v53 = vadd.f32 %v1101_v49, %v5738_v38 }
 0x46e   :  { %5141 = vtanh.f32 %v1102_v53 }
 0x478   :  { %v5142_v57 = vpop.eup %5141 }
 0x479   :  { %v1105_v51 = vmul.f32 %v5142_v57, %v1104_v42  ;;  %v1618_v57 = vld [vmem:[#allocation7 + $0x38] sm:$0xff] }
 0x47b   :  { %v5884_v58 = vadd.f32 %v1106_v1, %v1105_v51  ;;  %v1621_v51 = vld [vmem:[#allocation7 + $0x50] sm:$0xff] }
 0x47d   :  { %1177 = vmatmul.mubr.f32.vlgmr.msra.gmra.mrb[8].mxu0 %v5884_v58  ;;  %3766 = vmatmul.mubr.f32.vlgmr.msra.gmra.mrb[36].mxu1 %v5884_v58 }
 0x47e   :  { %4454 = vmatpush1.bf16.msra.mxu0 %v5487_v8  ;;  %4485 = vmatpush3.bf16.msra.mxu1 %v5597_v62 }
 0x47f   :  { %4456 = vmatprep.subr.bf16.mxu0 %v5499_v13  ;;  %4486 = vmatprep.subr.bf16.mxu1 %v5347_v25 }
 0x480   :  { %1343 = vmatprep.mubr.f32.mxu0 %v5346_v0  ;;  %3800 = vmatprep.mubr.msk.f32.mxu1 %vm5348_vm2, %v5346_v0 }
 0x482   :  { %4458 = vmatpush1.bf16.msra.mxu0 %v5503_v16  ;;  %4488 = vmatpush3.bf16.msra.mxu1 %v5604_v2 }
 0x483   :  { %4460 = vmatprep.subr.bf16.mxu0 %v5508_v19  ;;  %4489 = vmatprep.subr.bf16.mxu1 %v5347_v25 }
 0x486   :  { %4462 = vmatpush1.bf16.msra.mxu0 %v5520_v26  ;;  %4491 = vmatpush3.bf16.msra.mxu1 %v5616_v6 }
 0x487   :  { %4464 = vmatprep.subr.bf16.mxu0 %v5525_v27  ;;  %4492 = vmatprep.subr.bf16.mxu1 %v5347_v25 }
 0x48a   :  { %4466 = vmatpush1.bf16.msra.mxu0 %v5534_v33  ;;  %4494 = vmatpush3.bf16.msra.mxu1 %v5626_v10 }
 0x48b   :  { %4468 = vmatprep.subr.bf16.mxu0 %v5539_v34  ;;  %4495 = vmatprep.subr.bf16.mxu1 %v5347_v25 }
 0x48e   :  { %4470 = vmatpush1.bf16.msra.mxu0 %v5548_v40  ;;  %4497 = vmatpush3.bf16.msra.mxu1 %v5636_v14 }
 0x48f   :  { %4472 = vmatprep.subr.bf16.mxu0 %v5553_v41  ;;  %4498 = vmatprep.subr.bf16.mxu1 %v5347_v25 }
 0x492   :  { %4474 = vmatpush1.bf16.msra.mxu0 %v5562_v47  ;;  %4500 = vmatpush3.bf16.msra.mxu1 %v5646_v18 }
 0x493   :  { %4476 = vmatprep.subr.bf16.mxu0 %v5567_v48  ;;  %4501 = vmatprep.subr.bf16.mxu1 %v5347_v25 }
 0x496   :  { %4478 = vmatpush1.bf16.msra.mxu0 %v5576_v54  ;;  %4503 = vmatpush3.bf16.msra.mxu1 %v5656_v22 }
 0x497   :  { %4480 = vmatprep.subr.bf16.mxu0 %v5581_v55  ;;  %4504 = vmatprep.subr.bf16.mxu1 %v5347_v25 }
 0x49a   :  { %4482 = vmatpush1.bf16.msra.mxu0 %v5590_v61  ;;  %4506 = vmatpush3.bf16.msra.mxu1 %v5666_v28 }
 0x49b   :  { %4508 = vmatprep.subr.bf16.mxu0 %v5485_v5  ;;  %4539 = vmatprep.subr.bf16.mxu1 %v5347_v25 }
 0x550   :  { %v1178_v38 = vpop.f32.mrb[8].mxu0  ;;  %v1249_v4 = vpop.f32.mrb[36].mxu1 }
 0x551   :  { %v1253_v20 = vadd.f32 %v1178_v38, %v5719_v59  ;;  %v1180_v37 = vpop.f32.mrb[9].mxu0  ;;  %v3767_v39 = vpop.f32.mrb[37].mxu1  ;;  %v1267_v5 = vadd.f32 %v5749_v50, %v1249_v4 }
 0x552   :  { %v1254_v12 = vadd.f32 %v1180_v37, %v5721_v63  ;;  %v4567_v39 = vpack.c.bf16 %v1621_v51, %v1618_v57  ;;  %v1647_v57 = vld [vmem:[#allocation7 + $0x120] sm:$0xff] }
 0x553   :  { %v3262_v32 = vmul.f32 -1.442695, %v1253_v20  ;;  %v1617_v20 = vld [vmem:[#allocation7 + $0x30] sm:$0xff] }
 0x554   :  { %v3263_v23 = vmul.f32 -1.442695, %v1254_v12  ;;  %v1619_v12 = vld [vmem:[#allocation7 + $0x40] sm:$0xff] }
 0x555   :  { %5143 = vpow2.f32 %v3262_v32  ;;  %v1622_v32 = vld [vmem:[#allocation7 + $0x58] sm:$0xff] }
 0x556   :  { %5145 = vpow2.f32 %v3263_v23  ;;  %v1624_v23 = vld [vmem:[#allocation7 + $0x68] sm:$0xff] }
 0x55f   :  { %v5144_v24 = vpop.eup %5143 }
 0x560   :  { %v1261_v29 = vadd.f32 1.0, %v5144_v24  ;;  %v5146_v46 = vpop.eup %5145  ;;  %v1627_v24 = vld [vmem:[#allocation7 + $0x80] sm:$0xff] }
 0x561   :  { %v1262_v52 = vadd.f32 1.0, %v5146_v46  ;;  %v4599_v46 = vpack.c.bf16 %v1622_v32, %v1619_v12  ;;  %v1653_v12 = vld [vmem:[#allocation7 + $0x150] sm:$0xff] }
 0x562   :  { %5147 = vrcp.f32 %v1261_v29 }
 0x563   :  { %5149 = vrcp.f32 %v1262_v52  ;;  %v1623_v52 = vld [vmem:[#allocation7 + $0x60] sm:$0xff] }
 0x56c   :  { %v5148_v43 = vpop.eup %5147 }
 0x56d   :  { %v1268_v60 = vmul.f32 %v5148_v43, %v1267_v5  ;;  %v5150_v17 = vpop.eup %5149  ;;  %v4571_v5 = vpack.c.bf16 %v1627_v24, %v1624_v23  ;;  %v1626_v43 = vld [vmem:[#allocation7 + $0x78] sm:$0xff]  ;;  %v1656_v23 = vld [vmem:[#allocation7 + $0x168] sm:$0xff]  ;;  %v1655_v24 = vld [vmem:[#allocation7 + $0x160] sm:$0xff] }
 0x56e   :  { %v1271_v49 = vsub.f32 1.0, %v5150_v17  ;;  %v1273_v45 = vmul.f32 %v5150_v17, %v5884_v58  ;;  %v1630_v17 = vld [vmem:[#allocation7 + $0x98] sm:$0xff] }
 0x56f   :  { %v1269_v59 = vadd.f32 %v1268_v60, %v5740_v21  ;;  %v1625_v60 = vld [vmem:[#allocation7 + $0x70] sm:$0xff] }
 0x571   :  { %5151 = vtanh.f32 %v1269_v59  ;;  %v1628_v59 = vld [vmem:[#allocation7 + $0x88] sm:$0xff] }
 0x57b   :  { %v5152_v63 = vpop.eup %5151 }
 0x57c   :  { %v1272_v53 = vmul.f32 %v5152_v63, %v1271_v49  ;;  %v1633_v49 = vld [vmem:[#allocation7 + $0xb0] sm:$0xff]  ;;  %v4573_v63 = vpack.c.bf16 %v1626_v43, %v1623_v52  ;;  %v1666_v43 = vld [vmem:[#allocation9 + $0x38] sm:$0xff] }
 0x57e   :  { %v5928_v42 = vadd.f32 %v1273_v45, %v1272_v53  ;;  %v4602_v53 = vpack.c.bf16 %v1628_v59, %v1625_v60  ;;  %v1629_v45 = vld [vmem:[#allocation7 + $0x90] sm:$0xff] }
 0x57f   :  { %v1669_v60 = vld [vmem:[#allocation9 + $0x50] sm:$0xff] }
 0x580   :  { %1344 = vmatmul.mubr.f32.vlgmr.msra.gmra.mrb[10].mxu0 %v5928_v42  ;;  %3801 = vmatmul.mubr.f32.vlgmr.msra.gmra.mrb[38].mxu1 %v5928_v42  ;;  %v6022_v59 = vpack.c.bf16 %v1669_v60, %v1666_v43  ;;  %v1685_v43 = vld [vmem:[#allocation9 + $0xd0] sm:$0xff]  ;;  %v1688_v60 = vld [vmem:[#allocation9 + $0xe8] sm:$0xff] }
 0x581   :  { %4510 = vmatpush1.bf16.msra.mxu0 %v5487_v8  ;;  %4541 = vmatpush3.bf16.msra.mxu1 %v5597_v62  ;;  %v1612_v8 = vld [vmem:[#allocation7 + $0x8] sm:$0xff] }
 0x582   :  { %4512 = vmatprep.subr.bf16.mxu0 %v5499_v13  ;;  %4542 = vmatprep.subr.bf16.mxu1 %v5347_v25  ;;  %v1615_v13 = vld [vmem:[#allocation7 + $0x20] sm:$0xff] }
 0x583   :  { %1510 = vmatprep.mubr.f32.mxu0 %v5346_v0  ;;  %3835 = vmatprep.mubr.msk.f32.mxu1 %vm5348_vm2, %v5346_v0 }
 0x585   :  { %4514 = vmatpush1.bf16.msra.mxu0 %v5503_v16  ;;  %4544 = vmatpush3.bf16.msra.mxu1 %v5604_v2  ;;  %v4563_v16 = vpack.c.bf16 %v1615_v13, %v1612_v8  ;;  %v4575_v8 = vpack.c.bf16 %v1633_v49, %v1630_v17  ;;  %v1632_v13 = vld [vmem:[#allocation7 + $0xa8] sm:$0xff]  ;;  %v1665_v17 = vld [vmem:[#allocation9 + $0x30] sm:$0xff] }
 0x586   :  { %4516 = vmatprep.subr.bf16.mxu0 %v5508_v19  ;;  %4545 = vmatprep.subr.bf16.mxu1 %v5347_v25  ;;  %v1668_v49 = vld [vmem:[#allocation9 + $0x48] sm:$0xff] }
 0x589   :  { %4518 = vmatpush1.bf16.msra.mxu0 %v5520_v26  ;;  %4547 = vmatpush3.bf16.msra.mxu1 %v5616_v6 }
 0x58a   :  { %4520 = vmatprep.subr.bf16.mxu0 %v5525_v27  ;;  %4548 = vmatprep.subr.bf16.mxu1 %v5347_v25 }
 0x58d   :  { %4522 = vmatpush1.bf16.msra.mxu0 %v5534_v33  ;;  %4550 = vmatpush3.bf16.msra.mxu1 %v5626_v10 }
 0x58e   :  { %4524 = vmatprep.subr.bf16.mxu0 %v5539_v34  ;;  %4551 = vmatprep.subr.bf16.mxu1 %v5347_v25 }
 0x591   :  { %4526 = vmatpush1.bf16.msra.mxu0 %v5548_v40  ;;  %4553 = vmatpush3.bf16.msra.mxu1 %v5636_v14 }
 0x592   :  { %4528 = vmatprep.subr.bf16.mxu0 %v5553_v41  ;;  %4554 = vmatprep.subr.bf16.mxu1 %v5347_v25 }
 0x595   :  { %4530 = vmatpush1.bf16.msra.mxu0 %v5562_v47  ;;  %4556 = vmatpush3.bf16.msra.mxu1 %v5646_v18  ;;  %v1611_v18 = vld [vmem:[#allocation7] sm:$0xff] }
 0x596   :  { %4532 = vmatprep.subr.bf16.mxu0 %v5567_v48  ;;  %4557 = vmatprep.subr.bf16.mxu1 %v5347_v25 }
 0x599   :  { %4534 = vmatpush1.bf16.msra.mxu0 %v5576_v54  ;;  %4559 = vmatpush3.bf16.msra.mxu1 %v5656_v22 }
 0x59a   :  { %4536 = vmatprep.subr.bf16.mxu0 %v5581_v55  ;;  %4560 = vmatprep.subr.bf16.mxu1 %v5347_v25 }
 0x59d   :  { %4538 = vmatpush1.bf16.msra.mxu0 %v5590_v61  ;;  %4562 = vmatpush3.bf16.msra.mxu1 %v5666_v28  ;;  %v1614_v28 = vld [vmem:[#allocation7 + $0x18] sm:$0xff] }
 0x59e   :  { %4595 = vmatprep.subr.bf16.mxu1 %v5347_v25  ;;  %4564 = vmatprep.subr.bf16.mxu0 %v4563_v16  ;;  %v4565_v4 = vpack.c.bf16 %v1614_v28, %v1611_v18  ;;  %v1631_v16 = vld [vmem:[#allocation7 + $0xa0] sm:$0xff]  ;;  %v1648_v28 = vld [vmem:[#allocation7 + $0x128] sm:$0xff] }
 0x59f   :  { %v1643_v18 = vld [vmem:[#allocation7 + $0x100] sm:$0xff] }
 0x653   :  { %v1345_v19 = vpop.f32.mrb[10].mxu0  ;;  %v1416_v26 = vpop.f32.mrb[38].mxu1 }
 0x654   :  { %v1420_v27 = vadd.f32 %v1345_v19, %v5723_v3  ;;  %v1347_v33 = vpop.f32.mrb[11].mxu0  ;;  %v3802_v34 = vpop.f32.mrb[39].mxu1  ;;  %v1434_v62 = vadd.f32 %v5749_v50, %v1416_v26  ;;  %v1613_v3 = vld [vmem:[#allocation7 + $0x10] sm:$0xff]  ;;  %v1634_v19 = vld [vmem:[#allocation7 + $0xb8] sm:$0xff]  ;;  %v1636_v26 = vld [vmem:[#allocation7 + $0xc8] sm:$0xff] }
 0x655   :  { %v1421_v40 = vadd.f32 %v1347_v33, %v5725_v7  ;;  %v1616_v7 = vld [vmem:[#allocation7 + $0x28] sm:$0xff]  ;;  %v4577_v33 = vpack.c.bf16 %v1632_v13, %v1629_v45  ;;  %v4605_v34 = vpack.c.bf16 %v1634_v19, %v1631_v16  ;;  %v1675_v45 = vld [vmem:[#allocation9 + $0x80] sm:$0xff]  ;;  %v1674_v16 = vld [vmem:[#allocation9 + $0x78] sm:$0xff] }
 0x656   :  { %v3264_v41 = vmul.f32 -1.442695, %v1420_v27  ;;  %v4596_v50 = vpack.c.bf16 %v1616_v7, %v1613_v3  ;;  %v1639_v27 = vld [vmem:[#allocation7 + $0xe0] sm:$0xff] }
 0x657   :  { %v3265_v47 = vmul.f32 -1.442695, %v1421_v40  ;;  %v1635_v40 = vld [vmem:[#allocation7 + $0xc0] sm:$0xff] }
 0x658   :  { %5153 = vpow2.f32 %v3264_v41  ;;  %v4579_v41 = vpack.c.bf16 %v1639_v27, %v1636_v26  ;;  %v1651_v3 = vld [vmem:[#allocation7 + $0x140] sm:$0xff]  ;;  %v1678_v26 = vld [vmem:[#allocation9 + $0x98] sm:$0xff]  ;;  %v1681_v27 = vld [vmem:[#allocation9 + $0xb0] sm:$0xff] }
 0x659   :  { %5155 = vpow2.f32 %v3265_v47  ;;  %v1638_v47 = vld [vmem:[#allocation7 + $0xd8] sm:$0xff]  ;;  %v4587_v51 = vpack.c.bf16 %v1651_v3, %v1648_v28  ;;  %v1671_v13 = vld [vmem:[#allocation9 + $0x60] sm:$0xff]  ;;  %v1696_v28 = vld [vmem:[#allocation9 + $0x128] sm:$0xff] }
 0x65a   :  { %v6030_v19 = vpack.c.bf16 %v1674_v16, %v1671_v13  ;;  %v1699_v3 = vld [vmem:[#allocation9 + $0x140] sm:$0xff]  ;;  %v1697_v13 = vld [vmem:[#allocation9 + $0x130] sm:$0xff]  ;;  %v1700_v16 = vld [vmem:[#allocation9 + $0x148] sm:$0xff] }
 0x662   :  { %v5154_v48 = vpop.eup %5153 }
 0x663   :  { %v1428_v54 = vadd.f32 1.0, %v5154_v48  ;;  %v5156_v55 = vpop.eup %5155  ;;  %v1637_v48 = vld [vmem:[#allocation7 + $0xd0] sm:$0xff] }
 0x664   :  { %v1429_v61 = vadd.f32 1.0, %v5156_v55  ;;  %v1642_v55 = vld [vmem:[#allocation7 + $0xf8] sm:$0xff] }
 0x665   :  { %5157 = vrcp.f32 %v1428_v54  ;;  %v1640_v54 = vld [vmem:[#allocation7 + $0xe8] sm:$0xff] }
 0x666   :  { %5159 = vrcp.f32 %v1429_v61  ;;  %v1645_v61 = vld [vmem:[#allocation7 + $0x110] sm:$0xff] }
 0x66f   :  { %v5158_v2 = vpop.eup %5157 }
 0x670   :  { %v1435_v6 = vmul.f32 %v5158_v2, %v1434_v62  ;;  %v5160_v14 = vpop.eup %5159  ;;  %v4581_v62 = vpack.c.bf16 %v1638_v47, %v1635_v40  ;;  %v4608_v2 = vpack.c.bf16 %v1640_v54, %v1637_v48  ;;  %v1680_v40 = vld [vmem:[#allocation9 + $0xa8] sm:$0xff]  ;;  %v1687_v48 = vld [vmem:[#allocation9 + $0xe0] sm:$0xff] }
 0x671   :  { %v1438_v22 = vsub.f32 1.0, %v5160_v14  ;;  %v1440_v38 = vmul.f32 %v5160_v14, %v5928_v42  ;;  %v1644_v14 = vld [vmem:[#allocation7 + $0x108] sm:$0xff] }
 0x672   :  { %v1436_v10 = vadd.f32 %v1435_v6, %v5742_v44  ;;  %v1620_v44 = vld [vmem:[#allocation7 + $0x48] sm:$0xff]  ;;  %v1641_v6 = vld [vmem:[#allocation7 + $0xf0] sm:$0xff] }
 0x673   :  { %v4569_v29 = vpack.c.bf16 %v1620_v44, %v1617_v20  ;;  %v4585_v7 = vpack.c.bf16 %v1644_v14, %v1641_v6  ;;  %v1657_v20 = vld [vmem:[#allocation7 + $0x170] sm:$0xff]  ;;  %v1684_v47 = vld [vmem:[#allocation9 + $0xc8] sm:$0xff] }
 0x674   :  { %5161 = vtanh.f32 %v1436_v10  ;;  %v4583_v10 = vpack.c.bf16 %v1645_v61, %v1642_v55  ;;  %v6040_v54 = vpack.c.bf16 %v1687_v48, %v1684_v47  ;;  %v1683_v55 = vld [vmem:[#allocation9 + $0xc0] sm:$0xff]  ;;  %v1686_v61 = vld [vmem:[#allocation9 + $0xd8] sm:$0xff]  ;;  %v1693_v6 = vld [vmem:[#allocation9 + $0x110] sm:$0xff] }
 0x675   :  { %v1689_v14 = vld [vmem:[#allocation9 + $0xf0] sm:$0xff] }
 0x67e   :  { %v5162_v21 = vpop.eup %5161 }
 0x67f   :  { %v1439_v1 = vmul.f32 %v5162_v21, %v1438_v22  ;;  %v1646_v22 = vld [vmem:[#allocation7 + $0x118] sm:$0xff] }
 0x680   :  { %v4611_v21 = vpack.c.bf16 %v1646_v22, %v1643_v18  ;;  %v1692_v18 = vld [vmem:[#allocation9 + $0x108] sm:$0xff] }
 0x681   :  { %v5971_v37 = vadd.f32 %v1440_v38, %v1439_v1  ;;  %v1650_v1 = vld [vmem:[#allocation7 + $0x138] sm:$0xff]  ;;  %v1649_v38 = vld [vmem:[#allocation7 + $0x130] sm:$0xff]  ;;  %v6048_v22 = vpack.c.bf16 %v1692_v18, %v1689_v14 }
 0x683   :  { %1511 = vmatmul.mubr.f32.vlgmr.msra.gmra.mrb[12].mxu0 %v5971_v37  ;;  %3836 = vmatmul.mubr.f32.vlgmr.msra.gmra.mrb[40].mxu1 %v5971_v37 }
 0x684   :  { %4566 = vmatpush1.bf16.msra.mxu0 %v4565_v4  ;;  %4597 = vmatpush3.bf16.msra.mxu1 %v4596_v50  ;;  %v1652_v4 = vld [vmem:[#allocation7 + $0x148] sm:$0xff]  ;;  %v1654_v50 = vld [vmem:[#allocation7 + $0x158] sm:$0xff] }
 0x685   :  { %4568 = vmatprep.subr.bf16.mxu0 %v4567_v39  ;;  %4598 = vmatprep.subr.bf16.mxu1 %v5347_v25  ;;  %v4589_v39 = vpack.c.bf16 %v1650_v1, %v1647_v57  ;;  %v4614_v44 = vpack.c.bf16 %v1652_v4, %v1649_v38  ;;  %v4591_v32 = vpack.c.bf16 %v1657_v20, %v1654_v50  ;;  %v1698_v57 = vld [vmem:[#allocation9 + $0x138] sm:$0xff]  ;;  %v1661_v1 = vld [vmem:[#allocation9 + $0x10] sm:$0xff]  ;;  %v1664_v38 = vld [vmem:[#allocation9 + $0x28] sm:$0xff] }
 0x686   :  { %1796 = vmatprep.mubr.f32.mxu0 %v5346_v0  ;;  %3870 = vmatprep.mubr.msk.f32.mxu1 %vm5348_vm2, %v5346_v0  ;;  %v6057_v4 = vpack.c.bf16 %v1664_v38, %v1661_v1  ;;  %v1702_v50 = vld [vmem:[#allocation9 + $0x158] sm:$0xff]  ;;  %v1705_v20 = vld [vmem:[#allocation9 + $0x170] sm:$0xff]  ;;  %v5243_v1 = vld [vmem:[%s6431_s4] ss:$0 sm:$0xff] }
 0x688   :  { %4570 = vmatpush1.bf16.msra.mxu0 %v4569_v29  ;;  %4600 = vmatpush3.bf16.msra.mxu1 %v4599_v46  ;;  %v1658_v29 = vld [vmem:[#allocation7 + $0x178] sm:$0xff]  ;;  %v4593_v46 = vpack.c.bf16 %v1656_v23, %v1653_v12  ;;  %v1704_v12 = vld [vmem:[#allocation9 + $0x168] sm:$0xff]  ;;  %v1667_v23 = vld [vmem:[#allocation9 + $0x40] sm:$0xff] }
 0x689   :  { %4572 = vmatprep.subr.bf16.mxu0 %v4571_v5  ;;  %4601 = vmatprep.subr.bf16.mxu1 %v5347_v25  ;;  %v4617_v52 = vpack.c.bf16 %v1658_v29, %v1655_v24  ;;  %v1670_v24 = vld [vmem:[#allocation9 + $0x58] sm:$0xff] }
 0x68a   :  { %v6067_v29 = vpack.c.bf16 %v1670_v24, %v1667_v23 }
 0x68c   :  { %4574 = vmatpush1.bf16.msra.mxu0 %v4573_v63  ;;  %4603 = vmatpush3.bf16.msra.mxu1 %v4602_v53  ;;  %v6024_v63 = vpack.c.bf16 %v1668_v49, %v1665_v17  ;;  %v1672_v53 = vld [vmem:[#allocation9 + $0x68] sm:$0xff]  ;;  %v6080_v17 = vpack.c.bf16 %v1688_v60, %v1685_v43  ;;  %v1691_v49 = vld [vmem:[#allocation9 + $0x100] sm:$0xff] }
 0x68d   :  { %4576 = vmatprep.subr.bf16.mxu0 %v4575_v8  ;;  %4604 = vmatprep.subr.bf16.mxu1 %v5347_v25  ;;  %v6028_v8 = vpack.c.bf16 %v1675_v45, %v1672_v53  ;;  %v1694_v53 = vld [vmem:[#allocation9 + $0x118] sm:$0xff] }
 0x68e   :  { %v6084_v45 = vpack.c.bf16 %v1694_v53, %v1691_v49 }
 0x690   :  { %4578 = vmatpush1.bf16.msra.mxu0 %v4577_v33  ;;  %4606 = vmatpush3.bf16.msra.mxu1 %v4605_v34  ;;  %v6034_v33 = vpack.c.bf16 %v1681_v27, %v1678_v26  ;;  %v1677_v34 = vld [vmem:[#allocation9 + $0x90] sm:$0xff]  ;;  %v6088_v26 = vpack.c.bf16 %v1700_v16, %v1697_v13  ;;  %v1703_v27 = vld [vmem:[#allocation9 + $0x160] sm:$0xff] }
 0x691   :  { %4580 = vmatprep.subr.bf16.mxu0 %v4579_v41  ;;  %4607 = vmatprep.subr.bf16.mxu1 %v5347_v25  ;;  %v6036_v41 = vpack.c.bf16 %v1680_v40, %v1677_v34  ;;  %v1706_v34 = vld [vmem:[#allocation9 + $0x178] sm:$0xff] }
 0x692   :  { %v6092_v40 = vpack.c.bf16 %v1706_v34, %v1703_v27 }
 0x694   :  { %4582 = vmatpush1.bf16.msra.mxu0 %v4581_v62  ;;  %4609 = vmatpush3.bf16.msra.mxu1 %v4608_v2  ;;  %v6042_v62 = vpack.c.bf16 %v1686_v61, %v1683_v55  ;;  %v1690_v2 = vld [vmem:[#allocation9 + $0xf8] sm:$0xff] }
 0x695   :  { %4584 = vmatprep.subr.bf16.mxu0 %v4583_v10  ;;  %4610 = vmatprep.subr.bf16.mxu1 %v5347_v25  ;;  %v6046_v10 = vpack.c.bf16 %v1693_v6, %v1690_v2 }
 0x698   :  { %4586 = vmatpush1.bf16.msra.mxu0 %v4585_v7  ;;  %4612 = vmatpush3.bf16.msra.mxu1 %v4611_v21  ;;  %v6052_v7 = vpack.c.bf16 %v1699_v3, %v1696_v28  ;;  %v1695_v21 = vld [vmem:[#allocation9 + $0x120] sm:$0xff] }
 0x699   :  { %4588 = vmatprep.subr.bf16.mxu0 %v4587_v51  ;;  %4613 = vmatprep.subr.bf16.mxu1 %v5347_v25  ;;  %v6054_v51 = vpack.c.bf16 %v1698_v57, %v1695_v21 }
 0x69c   :  { %4590 = vmatpush1.bf16.msra.mxu0 %v4589_v39  ;;  %4615 = vmatpush3.bf16.msra.mxu1 %v4614_v44  ;;  %v6061_v39 = vpack.c.bf16 %v1705_v20, %v1702_v50  ;;  %v1701_v44 = vld [vmem:[#allocation9 + $0x150] sm:$0xff] }
 0x69d   :  { %4592 = vmatprep.subr.bf16.mxu0 %v4591_v32  ;;  %4616 = vmatprep.subr.bf16.mxu1 %v5347_v25  ;;  %v6063_v32 = vpack.c.bf16 %v1704_v12, %v1701_v44 }
 0x6a0   :  { %4594 = vmatpush1.bf16.msra.mxu0 %v4593_v46  ;;  %4618 = vmatpush3.bf16.msra.mxu1 %v4617_v52  ;;  %v1673_v46 = vld [vmem:[#allocation9 + $0x70] sm:$0xff]  ;;  %v1676_v52 = vld [vmem:[#allocation9 + $0x88] sm:$0xff] }
 0x6a1   :  { %4651 = vmatprep.subr.bf16.mxu1 %v5347_v25 }
 0x6a3   :  { %1797 = vmatmul.mubr.f32.vlgmr.msra.gmra.mrb[14].mxu0 %v5752_v36  ;;  %3871 = vmatmul.mubr.f32.vlgmr.msra.gmra.mrb[42].mxu1 %v5752_v36  ;;  %v1660_v36 = vld [vmem:[#allocation9 + $0x8] sm:$0xff] }
 0x6a4   :  { %1802 = vmatprep.mubr.f32.mxu0 %v5346_v0  ;;  %3873 = vmatprep.mubr.msk.f32.mxu1 %vm5348_vm2, %v5346_v0 }
 0x6a5   :  { %4653 = vmatpush3.bf16.msra.mxu1 %v6057_v4 }
 0x6a6   :  { %4654 = vmatprep.subr.bf16.mxu1 %v5347_v25 }
 0x6a7   :  { %1803 = vmatmul.mubr.f32.gmra.mrb[16].mxu0 %v5796_v9  ;;  %3874 = vmatmul.mubr.f32.gmra.mrb[44].mxu1 %v5796_v9  ;;  %v1663_v9 = vld [vmem:[#allocation9 + $0x20] sm:$0xff] }
 0x6a8   :  { %1808 = vmatprep.mubr.f32.mxu0 %v5346_v0  ;;  %3876 = vmatprep.mubr.msk.f32.mxu1 %vm5348_vm2, %v5346_v0 }
 0x6a9   :  { %4656 = vmatpush3.bf16.msra.mxu1 %v6067_v29 }
 0x6aa   :  { %4657 = vmatprep.subr.bf16.mxu1 %v5347_v25 }
 0x6ab   :  { %1809 = vmatmul.mubr.f32.gmra.mrb[18].mxu0 %v5840_v35  ;;  %3877 = vmatmul.mubr.f32.gmra.mrb[46].mxu1 %v5840_v35  ;;  %v6016_v35 = vpack.c.bf16 %v1663_v9, %v1660_v36  ;;  %v6073_v36 = vpack.c.bf16 %v1676_v52, %v1673_v46  ;;  %v1679_v9 = vld [vmem:[#allocation9 + $0xa0] sm:$0xff] }
 0x6ac   :  { %1814 = vmatprep.mubr.f32.mxu0 %v5346_v0  ;;  %3879 = vmatprep.mubr.msk.f32.mxu1 %vm5348_vm2, %v5346_v0 }
 0x6ad   :  { %4620 = vmatprep.subr.bf16.mxu0 %v6016_v35  ;;  %4659 = vmatpush3.bf16.msra.mxu1 %v6073_v36 }
 0x6ae   :  { %4660 = vmatprep.subr.bf16.mxu1 %v5347_v25 }
 0x6af   :  { %1815 = vmatmul.mubr.f32.gmra.mrb[20].mxu0 %v5884_v58  ;;  %3880 = vmatmul.mubr.f32.gmra.mrb[48].mxu1 %v5884_v58  ;;  %v1659_v58 = vld [vmem:[#allocation9] sm:$0xff] }
 0x6b0   :  { %1820 = vmatprep.mubr.f32.mxu0 %v5346_v0  ;;  %3882 = vmatprep.mubr.msk.f32.mxu1 %vm5348_vm2, %v5346_v0 }
 0x6b3   :  { %1821 = vmatmul.mubr.f32.gmra.mrb[22].mxu0 %v5928_v42  ;;  %3883 = vmatmul.mubr.f32.gmra.mrb[50].mxu1 %v5928_v42  ;;  %v1662_v42 = vld [vmem:[#allocation9 + $0x18] sm:$0xff] }
 0x6b4   :  { %1826 = vmatprep.mubr.f32.mxu0 %v5346_v0  ;;  %3885 = vmatprep.mubr.msk.f32.mxu1 %vm5348_vm2, %v5346_v0  ;;  %v6018_v5 = vpack.c.bf16 %v1662_v42, %v1659_v58  ;;  %v1682_v58 = vld [vmem:[#allocation9 + $0xb8] sm:$0xff] }
 0x6b5   :  { %v6076_v42 = vpack.c.bf16 %v1682_v58, %v1679_v9 }
 0x6b6   :  { %4622 = vmatpush1.bf16.msra.mxu0 %v6018_v5 }
 0x6b7   :  { %1827 = vmatmul.mubr.f32.gmra.mrb[24].mxu0 %v5971_v37  ;;  %3886 = vmatmul.mubr.f32.gmra.mrb[52].mxu1 %v5971_v37 }
 0x6b8   :  { %1832 = vmatprep.mubr.f32.mxu0 %v5346_v0  ;;  %3888 = vmatprep.mubr.msk.f32.mxu1 %vm5348_vm2, %v5346_v0 }
 0x6b9   :  { %4624 = vmatprep.subr.bf16.mxu0 %v6022_v59  ;;  %4662 = vmatpush3.bf16.msra.mxu1 %v6076_v42 }
 0x6ba   :  { %4626 = vmatpush1.bf16.msra.mxu0 %v6024_v63  ;;  %4663 = vmatprep.subr.bf16.mxu1 %v5347_v25 }
 0x6bb   :  { %4628 = vmatprep.subr.bf16.mxu0 %v6028_v8 }
 0x6bd   :  { %4665 = vmatpush3.bf16.msra.mxu1 %v6080_v17 }
 0x6be   :  { %4630 = vmatpush1.bf16.msra.mxu0 %v6030_v19  ;;  %4666 = vmatprep.subr.bf16.mxu1 %v5347_v25 }
 0x6bf   :  { %4632 = vmatprep.subr.bf16.mxu0 %v6034_v33 }
 0x6c1   :  { %4668 = vmatpush3.bf16.msra.mxu1 %v6084_v45 }
 0x6c2   :  { %4634 = vmatpush1.bf16.msra.mxu0 %v6036_v41  ;;  %4669 = vmatprep.subr.bf16.mxu1 %v5347_v25 }
 0x6c3   :  { %4636 = vmatprep.subr.bf16.mxu0 %v6040_v54 }
 0x6c5   :  { %4671 = vmatpush3.bf16.msra.mxu1 %v6088_v26 }
 0x6c6   :  { %4638 = vmatpush1.bf16.msra.mxu0 %v6042_v62  ;;  %4672 = vmatprep.subr.bf16.mxu1 %v5347_v25 }
 0x6c7   :  { %4640 = vmatprep.subr.bf16.mxu0 %v6046_v10 }
 0x6c9   :  { %4674 = vmatpush3.bf16.msra.mxu1 %v6092_v40 }
 0x6ca   :  { %4642 = vmatpush1.bf16.msra.mxu0 %v6048_v22  ;;  %4707 = vmatprep.subr.bf16.mxu1 %v5347_v25 }
 0x6cb   :  { %4644 = vmatprep.subr.bf16.mxu0 %v6052_v7 }
 0x6ce   :  { %4646 = vmatpush1.bf16.msra.mxu0 %v6054_v51 }
 0x6cf   :  { %4648 = vmatprep.subr.bf16.mxu0 %v6061_v39 }
 0x6d2   :  { %4650 = vmatpush1.bf16.msra.mxu0 %v6063_v32 }
 0x6d3   :  { %4676 = vmatprep.subr.bf16.mxu0 %v6016_v35 }
 0x756   :  { %v1512_v47 = vpop.f32.mrb[12].mxu0  ;;  %v1583_v48 = vpop.f32.mrb[40].mxu1 }
 0x757   :  { %v1587_v55 = vadd.f32 %v1512_v47, %v5727_v11  ;;  %v1514_v61 = vpop.f32.mrb[13].mxu0  ;;  %v3837_v2 = vpop.f32.mrb[41].mxu1  ;;  %v1601_v38 = vadd.f32 %v5243_v1, %v1583_v48 }
 0x758   :  { %v1588_v6 = vadd.f32 %v1514_v61, %v5729_v15  ;;  %v6441_v2 = vsub.s32 1, %v5696_v30 }
 0x759   :  { %v3266_v14 = vmul.f32 -1.442695, %v1587_v55 }
 0x75a   :  { %v3267_v18 = vmul.f32 -1.442695, %v1588_v6 }
 0x75b   :  { %5163 = vpow2.f32 %v3266_v14 }
 0x75c   :  { %5165 = vpow2.f32 %v3267_v18 }
 0x765   :  { %v5164_v28 = vpop.eup %5163 }
 0x766   :  { %v1595_v3 = vadd.f32 1.0, %v5164_v28  ;;  %v5166_v21 = vpop.eup %5165 }
 0x767   :  { %v1596_v57 = vadd.f32 1.0, %v5166_v21 }
 0x768   :  { %5167 = vrcp.f32 %v1595_v3 }
 0x769   :  { %5169 = vrcp.f32 %v1596_v57 }
 0x772   :  { %v5168_v50 = vpop.eup %5167 }
 0x773   :  { %v1602_v11 = vmul.f32 %v5168_v50, %v1601_v38  ;;  %v5170_v24 = vpop.eup %5169 }
 0x774   :  { %v1605_v9 = vsub.f32 1.0, %v5170_v24  ;;  %v1607_v49 = vmul.f32 %v5170_v24, %v5971_v37  ;;  %v1707_v37 = vld [vmem:[%s6434_s7] sm:$0x7] }
 0x775   :  { %v1603_v20 = vadd.f32 %v1602_v11, %v5744_v56  ;;  %v6163_v55 = vrot.slane %v1707_v37, %v161_v31  ;;  %v6167_v6 = vrot.slane %v1707_v37, %v6441_v2  ;;  %v6174_v11 = vld [vmem:[%s6435_s8] ss:$0 sm:$0xff] }
 0x776   :  { %v6103_v15 = vpop.f32.mrb[42].mxu1 }
 0x777   :  { %5171 = vtanh.f32 %v1603_v20  ;;  %v3872_v44 = vpop.f32.mrb[43].mxu1  ;;  %v6442_v20 = vsub.s32 2, %v5696_v30 }
 0x779   :  { %v6178_v44 = vrot.slane %v1707_v37, %v6442_v20 }
 0x77a   :  { %v6105_v12 = vpop.f32.mrb[44].mxu1 }
 0x77b   :  { %v3875_v23 = vpop.f32.mrb[45].mxu1 }
 0x77e   :  { %v6107_v46 = vpop.f32.mrb[46].mxu1 }
 0x77f   :  { %v3878_v52 = vpop.f32.mrb[47].mxu1 }
 0x781   :  { %v5172_v58 = vpop.eup %5171 }
 0x782   :  { %v6109_v43 = vpop.f32.mrb[48].mxu1  ;;  %v1606_v60 = vmul.f32 %v5172_v58, %v1605_v9  ;;  %v1906_v9 = vadd.f32 %v6103_v15, %v6178_v44 }
 0x783   :  { %v3881_v53 = vpop.f32.mrb[49].mxu1 }
 0x784   :  { %v1608_v56 = vadd.f32 %v1607_v49, %v1606_v60 }
 0x786   :  { %v6112_v13 = vpop.f32.mrb[50].mxu1  ;;  %1833 = vmatmul.mubr.f32.gmra.mrb[26].mxu0 %v1608_v56  ;;  %3889 = vmatmul.mubr.f32.gmra.mrb[54].mxu1 %v1608_v56 }
 0x787   :  { %v3884_v16 = vpop.f32.mrb[51].mxu1  ;;  %2029 = vmatprep.mubr.f32.mxu0 %v5346_v0  ;;  %3923 = vmatprep.mubr.msk.f32.mxu1 %vm5348_vm2, %v5346_v0 }
 0x78a   :  { %v6117_v27 = vpop.f32.mrb[52].mxu1  ;;  %2030 = vmatmul.mubr.f32.vlgmr.msra.gmra.mrb[14].mxu0 %v5346_v0  ;;  %3924 = vmatmul.mubr.f32.vlgmr.msra.gmra.mrb[56].mxu1 %v5346_v0 }
 0x78b   :  { %v3887_v34 = vpop.f32.mrb[53].mxu1  ;;  %4678 = vmatpush1.bf16.msra.mxu0 %v6018_v5  ;;  %4709 = vmatpush3.bf16.msra.mxu1 %v6057_v4 }
 0x78c   :  { %4680 = vmatprep.subr.bf16.mxu0 %v6022_v59  ;;  %4710 = vmatprep.subr.bf16.mxu1 %v5347_v25 }
 0x78d   :  { %2201 = vmatprep.mubr.f32.mxu0 %v5346_v0  ;;  %3958 = vmatprep.mubr.msk.f32.mxu1 %vm5348_vm2, %v5346_v0 }
 0x78f   :  { %4682 = vmatpush1.bf16.msra.mxu0 %v6024_v63  ;;  %4712 = vmatpush3.bf16.msra.mxu1 %v6067_v29 }
 0x790   :  { %4684 = vmatprep.subr.bf16.mxu0 %v6028_v8  ;;  %4713 = vmatprep.subr.bf16.mxu1 %v5347_v25 }
 0x793   :  { %4686 = vmatpush1.bf16.msra.mxu0 %v6030_v19  ;;  %4715 = vmatpush3.bf16.msra.mxu1 %v6073_v36 }
 0x794   :  { %4688 = vmatprep.subr.bf16.mxu0 %v6034_v33  ;;  %4716 = vmatprep.subr.bf16.mxu1 %v5347_v25 }
 0x797   :  { %4690 = vmatpush1.bf16.msra.mxu0 %v6036_v41  ;;  %4718 = vmatpush3.bf16.msra.mxu1 %v6076_v42 }
 0x798   :  { %4692 = vmatprep.subr.bf16.mxu0 %v6040_v54  ;;  %4719 = vmatprep.subr.bf16.mxu1 %v5347_v25 }
 0x79b   :  { %4694 = vmatpush1.bf16.msra.mxu0 %v6042_v62  ;;  %4721 = vmatpush3.bf16.msra.mxu1 %v6080_v17 }
 0x79c   :  { %4696 = vmatprep.subr.bf16.mxu0 %v6046_v10  ;;  %4722 = vmatprep.subr.bf16.mxu1 %v5347_v25 }
 0x79f   :  { %4698 = vmatpush1.bf16.msra.mxu0 %v6048_v22  ;;  %4724 = vmatpush3.bf16.msra.mxu1 %v6084_v45 }
 0x7a0   :  { %4700 = vmatprep.subr.bf16.mxu0 %v6052_v7  ;;  %4725 = vmatprep.subr.bf16.mxu1 %v5347_v25 }
 0x7a3   :  { %4702 = vmatpush1.bf16.msra.mxu0 %v6054_v51  ;;  %4727 = vmatpush3.bf16.msra.mxu1 %v6088_v26 }
 0x7a4   :  { %4704 = vmatprep.subr.bf16.mxu0 %v6061_v39  ;;  %4728 = vmatprep.subr.bf16.mxu1 %v5347_v25 }
 0x7a7   :  { %4706 = vmatpush1.bf16.msra.mxu0 %v6063_v32  ;;  %4730 = vmatpush3.bf16.msra.mxu1 %v6092_v40 }
 0x7a8   :  { %4732 = vmatprep.subr.bf16.mxu0 %v6016_v35  ;;  %4763 = vmatprep.subr.bf16.mxu1 %v5347_v25 }
 0x859   :  { %v6159_v47 = vpop.f32.mrb[54].mxu1 }
 0x85a   :  { %v3890_v48 = vpop.f32.mrb[55].mxu1 }
 0x85d   :  { %v2031_v61 = vpop.f32.mrb[14].mxu0  ;;  %v2102_v14 = vpop.f32.mrb[56].mxu1 }
 0x85e   :  { %v5063_v18 = vadd.f32 %v2031_v61, %v6163_v55  ;;  %v2033_v28 = vpop.f32.mrb[15].mxu0  ;;  %v3925_v3 = vpop.f32.mrb[57].mxu1  ;;  %v2126_v24 = vadd.f32 %v6174_v11, %v2102_v14 }
 0x85f   :  { %v5064_v57 = vadd.f32 %v2033_v28, %v6167_v6 }
 0x860   :  { %v3268_v21 = vmul.f32 -1.442695, %v5063_v18 }
 0x861   :  { %v3269_v1 = vmul.f32 -1.442695, %v5064_v57 }
 0x862   :  { %5173 = vpow2.f32 %v3268_v21 }
 0x863   :  { %5175 = vpow2.f32 %v3269_v1 }
 0x86c   :  { %v5174_v38 = vpop.eup %5173 }
 0x86d   :  { %v2114_v50 = vadd.f32 1.0, %v5174_v38  ;;  %v5176_v31 = vpop.eup %5175 }
 0x86e   :  { %v2115_v23 = vadd.f32 1.0, %v5176_v31  ;;  %v1911_v31 = vadd.f32 %v6105_v12, %v6178_v44 }
 0x86f   :  { %5177 = vrcp.f32 %v2114_v50 }
 0x870   :  { %5179 = vrcp.f32 %v2115_v23 }
 0x879   :  { %v5178_v52 = vpop.eup %5177 }
 0x87a   :  { %v2127_v58 = vmul.f32 %v5178_v52, %v2126_v24  ;;  %v5180_v49 = vpop.eup %5179 }
 0x87b   :  { %v2130_v53 = vsub.f32 1.0, %v5180_v49  ;;  %v2132_v34 = vmul.f32 0.0, %v5180_v49 }
 0x87c   :  { %v2128_v60 = vadd.f32 %v2127_v58, %v1906_v9 }
 0x87e   :  { %5181 = vtanh.f32 %v2128_v60 }
 0x888   :  { %v5182_v56 = vpop.eup %5181 }
 0x889   :  { %v2131_v16 = vmul.f32 %v5182_v56, %v2130_v53 }
 0x88b   :  { %v6183_v48 = vadd.f32 %v2132_v34, %v2131_v16 }
 0x88d   :  { %2202 = vmatmul.mubr.f32.vlgmr.msra.gmra.mrb[16].mxu0 %v6183_v48  ;;  %3959 = vmatmul.mubr.f32.vlgmr.msra.gmra.mrb[58].mxu1 %v6183_v48 }
 0x88e   :  { %4734 = vmatpush1.bf16.msra.mxu0 %v6018_v5  ;;  %4765 = vmatpush3.bf16.msra.mxu1 %v6057_v4 }
 0x88f   :  { %4736 = vmatprep.subr.bf16.mxu0 %v6022_v59  ;;  %4766 = vmatprep.subr.bf16.mxu1 %v5347_v25 }
 0x890   :  { %2367 = vmatprep.mubr.f32.mxu0 %v5346_v0  ;;  %3993 = vmatprep.mubr.msk.f32.mxu1 %vm5348_vm2, %v5346_v0 }
 0x892   :  { %4738 = vmatpush1.bf16.msra.mxu0 %v6024_v63  ;;  %4768 = vmatpush3.bf16.msra.mxu1 %v6067_v29 }
 0x893   :  { %4740 = vmatprep.subr.bf16.mxu0 %v6028_v8  ;;  %4769 = vmatprep.subr.bf16.mxu1 %v5347_v25 }
 0x896   :  { %4742 = vmatpush1.bf16.msra.mxu0 %v6030_v19  ;;  %4771 = vmatpush3.bf16.msra.mxu1 %v6073_v36 }
 0x897   :  { %4744 = vmatprep.subr.bf16.mxu0 %v6034_v33  ;;  %4772 = vmatprep.subr.bf16.mxu1 %v5347_v25 }
 0x89a   :  { %4746 = vmatpush1.bf16.msra.mxu0 %v6036_v41  ;;  %4774 = vmatpush3.bf16.msra.mxu1 %v6076_v42 }
 0x89b   :  { %4748 = vmatprep.subr.bf16.mxu0 %v6040_v54  ;;  %4775 = vmatprep.subr.bf16.mxu1 %v5347_v25 }
 0x89e   :  { %4750 = vmatpush1.bf16.msra.mxu0 %v6042_v62  ;;  %4777 = vmatpush3.bf16.msra.mxu1 %v6080_v17 }
 0x89f   :  { %4752 = vmatprep.subr.bf16.mxu0 %v6046_v10  ;;  %4778 = vmatprep.subr.bf16.mxu1 %v5347_v25 }
 0x8a2   :  { %4754 = vmatpush1.bf16.msra.mxu0 %v6048_v22  ;;  %4780 = vmatpush3.bf16.msra.mxu1 %v6084_v45 }
 0x8a3   :  { %4756 = vmatprep.subr.bf16.mxu0 %v6052_v7  ;;  %4781 = vmatprep.subr.bf16.mxu1 %v5347_v25 }
 0x8a6   :  { %4758 = vmatpush1.bf16.msra.mxu0 %v6054_v51  ;;  %4783 = vmatpush3.bf16.msra.mxu1 %v6088_v26 }
 0x8a7   :  { %4760 = vmatprep.subr.bf16.mxu0 %v6061_v39  ;;  %4784 = vmatprep.subr.bf16.mxu1 %v5347_v25 }
 0x8aa   :  { %4762 = vmatpush1.bf16.msra.mxu0 %v6063_v32  ;;  %4786 = vmatpush3.bf16.msra.mxu1 %v6092_v40 }
 0x8ab   :  { %4788 = vmatprep.subr.bf16.mxu0 %v6016_v35  ;;  %4819 = vmatprep.subr.bf16.mxu1 %v5347_v25 }
 0x960   :  { %v2203_v30 = vpop.f32.mrb[16].mxu0  ;;  %v2274_v15 = vpop.f32.mrb[58].mxu1 }
 0x961   :  { %v5065_v37 = vadd.f32 %v2203_v30, %v6163_v55  ;;  %v2205_v61 = vpop.f32.mrb[17].mxu0  ;;  %v3960_v2 = vpop.f32.mrb[59].mxu1  ;;  %v2292_v38 = vadd.f32 %v6174_v11, %v2274_v15 }
 0x962   :  { %v5066_v18 = vadd.f32 %v2205_v61, %v6167_v6 }
 0x963   :  { %v3271_v14 = vmul.f32 -1.442695, %v5065_v37 }
 0x964   :  { %v3272_v28 = vmul.f32 -1.442695, %v5066_v18 }
 0x965   :  { %5183 = vpow2.f32 %v3271_v14 }
 0x966   :  { %5185 = vpow2.f32 %v3272_v28 }
 0x96f   :  { %v5184_v3 = vpop.eup %5183 }
 0x970   :  { %v2286_v21 = vadd.f32 1.0, %v5184_v3  ;;  %v5186_v57 = vpop.eup %5185  ;;  %v1916_v3 = vadd.f32 %v6107_v46, %v6178_v44 }
 0x971   :  { %v2287_v1 = vadd.f32 1.0, %v5186_v57 }
 0x972   :  { %5187 = vrcp.f32 %v2286_v21 }
 0x973   :  { %5189 = vrcp.f32 %v2287_v1 }
 0x97c   :  { %v5188_v50 = vpop.eup %5187 }
 0x97d   :  { %v2293_v20 = vmul.f32 %v5188_v50, %v2292_v38  ;;  %v5190_v24 = vpop.eup %5189 }
 0x97e   :  { %v2296_v52 = vsub.f32 1.0, %v5190_v24  ;;  %v2298_v60 = vmul.f32 %v5190_v24, %v6183_v48 }
 0x97f   :  { %v2294_v23 = vadd.f32 %v2293_v20, %v1911_v31 }
 0x981   :  { %5191 = vtanh.f32 %v2294_v23 }
 0x98b   :  { %v5192_v9 = vpop.eup %5191 }
 0x98c   :  { %v2297_v58 = vmul.f32 %v5192_v9, %v2296_v52 }
 0x98e   :  { %v6228_v49 = vadd.f32 %v2298_v60, %v2297_v58 }
 0x990   :  { %2368 = vmatmul.mubr.f32.vlgmr.msra.gmra.mrb[18].mxu0 %v6228_v49  ;;  %3994 = vmatmul.mubr.f32.vlgmr.msra.gmra.mrb[60].mxu1 %v6228_v49 }
 0x991   :  { %4790 = vmatpush1.bf16.msra.mxu0 %v6018_v5  ;;  %4821 = vmatpush3.bf16.msra.mxu1 %v6057_v4 }
 0x992   :  { %4792 = vmatprep.subr.bf16.mxu0 %v6022_v59  ;;  %4822 = vmatprep.subr.bf16.mxu1 %v5347_v25 }
 0x993   :  { %2533 = vmatprep.mubr.f32.mxu0 %v5346_v0  ;;  %4028 = vmatprep.mubr.msk.f32.mxu1 %vm5348_vm2, %v5346_v0 }
 0x995   :  { %4794 = vmatpush1.bf16.msra.mxu0 %v6024_v63  ;;  %4824 = vmatpush3.bf16.msra.mxu1 %v6067_v29 }
 0x996   :  { %4796 = vmatprep.subr.bf16.mxu0 %v6028_v8  ;;  %4825 = vmatprep.subr.bf16.mxu1 %v5347_v25 }
 0x999   :  { %4798 = vmatpush1.bf16.msra.mxu0 %v6030_v19  ;;  %4827 = vmatpush3.bf16.msra.mxu1 %v6073_v36 }
 0x99a   :  { %4800 = vmatprep.subr.bf16.mxu0 %v6034_v33  ;;  %4828 = vmatprep.subr.bf16.mxu1 %v5347_v25 }
 0x99d   :  { %4802 = vmatpush1.bf16.msra.mxu0 %v6036_v41  ;;  %4830 = vmatpush3.bf16.msra.mxu1 %v6076_v42 }
 0x99e   :  { %4804 = vmatprep.subr.bf16.mxu0 %v6040_v54  ;;  %4831 = vmatprep.subr.bf16.mxu1 %v5347_v25 }
 0x9a1   :  { %4806 = vmatpush1.bf16.msra.mxu0 %v6042_v62  ;;  %4833 = vmatpush3.bf16.msra.mxu1 %v6080_v17 }
 0x9a2   :  { %4808 = vmatprep.subr.bf16.mxu0 %v6046_v10  ;;  %4834 = vmatprep.subr.bf16.mxu1 %v5347_v25 }
 0x9a5   :  { %4810 = vmatpush1.bf16.msra.mxu0 %v6048_v22  ;;  %4836 = vmatpush3.bf16.msra.mxu1 %v6084_v45 }
 0x9a6   :  { %4812 = vmatprep.subr.bf16.mxu0 %v6052_v7  ;;  %4837 = vmatprep.subr.bf16.mxu1 %v5347_v25 }
 0x9a9   :  { %4814 = vmatpush1.bf16.msra.mxu0 %v6054_v51  ;;  %4839 = vmatpush3.bf16.msra.mxu1 %v6088_v26 }
 0x9aa   :  { %4816 = vmatprep.subr.bf16.mxu0 %v6061_v39  ;;  %4840 = vmatprep.subr.bf16.mxu1 %v5347_v25 }
 0x9ad   :  { %4818 = vmatpush1.bf16.msra.mxu0 %v6063_v32  ;;  %4842 = vmatpush3.bf16.msra.mxu1 %v6092_v40 }
 0x9ae   :  { %4844 = vmatprep.subr.bf16.mxu0 %v6016_v35  ;;  %4875 = vmatprep.subr.bf16.mxu1 %v5347_v25 }
 0xa63   :  { %v2369_v12 = vpop.f32.mrb[18].mxu0  ;;  %v2440_v53 = vpop.f32.mrb[60].mxu1 }
 0xa64   :  { %v5067_v56 = vadd.f32 %v2369_v12, %v6163_v55  ;;  %v2371_v16 = vpop.f32.mrb[19].mxu0  ;;  %v3995_v34 = vpop.f32.mrb[61].mxu1  ;;  %v2458_v18 = vadd.f32 %v6174_v11, %v2440_v53 }
 0xa65   :  { %v5068_v30 = vadd.f32 %v2371_v16, %v6167_v6 }
 0xa66   :  { %v3273_v48 = vmul.f32 -1.442695, %v5067_v56 }
 0xa67   :  { %v3274_v15 = vmul.f32 -1.442695, %v5068_v30 }
 0xa68   :  { %5193 = vpow2.f32 %v3273_v48 }
 0xa69   :  { %5195 = vpow2.f32 %v3274_v15  ;;  %v1921_v15 = vadd.f32 %v6109_v43, %v6178_v44 }
 0xa72   :  { %v5194_v37 = vpop.eup %5193 }
 0xa73   :  { %v2452_v61 = vadd.f32 1.0, %v5194_v37  ;;  %v5196_v2 = vpop.eup %5195 }
 0xa74   :  { %v2453_v14 = vadd.f32 1.0, %v5196_v2 }
 0xa75   :  { %5197 = vrcp.f32 %v2452_v61 }
 0xa76   :  { %5199 = vrcp.f32 %v2453_v14 }
 0xa7f   :  { %v5198_v28 = vpop.eup %5197 }
 0xa80   :  { %v2459_v21 = vmul.f32 %v5198_v28, %v2458_v18  ;;  %v5200_v1 = vpop.eup %5199 }
 0xa81   :  { %v2462_v38 = vsub.f32 1.0, %v5200_v1  ;;  %v2464_v20 = vmul.f32 %v5200_v1, %v6228_v49 }
 0xa82   :  { %v2460_v57 = vadd.f32 %v2459_v21, %v1916_v3 }
 0xa84   :  { %5201 = vtanh.f32 %v2460_v57 }
 0xa8e   :  { %v5202_v50 = vpop.eup %5201 }
 0xa8f   :  { %v2463_v31 = vmul.f32 %v5202_v50, %v2462_v38 }
 0xa91   :  { %v6273_v23 = vadd.f32 %v2464_v20, %v2463_v31 }
 0xa93   :  { %2534 = vmatmul.mubr.f32.vlgmr.msra.gmra.mrb[20].mxu0 %v6273_v23  ;;  %4029 = vmatmul.mubr.f32.vlgmr.msra.gmra.mrb[62].mxu1 %v6273_v23 }
 0xa94   :  { %4846 = vmatpush1.bf16.msra.mxu0 %v6018_v5  ;;  %4877 = vmatpush3.bf16.msra.mxu1 %v6057_v4 }
 0xa95   :  { %4848 = vmatprep.subr.bf16.mxu0 %v6022_v59  ;;  %4878 = vmatprep.subr.bf16.mxu1 %v5347_v25 }
 0xa96   :  { %2699 = vmatprep.mubr.f32.mxu0 %v5346_v0  ;;  %4063 = vmatprep.mubr.msk.f32.mxu1 %vm5348_vm2, %v5346_v0 }
 0xa98   :  { %4850 = vmatpush1.bf16.msra.mxu0 %v6024_v63  ;;  %4880 = vmatpush3.bf16.msra.mxu1 %v6067_v29 }
 0xa99   :  { %4852 = vmatprep.subr.bf16.mxu0 %v6028_v8  ;;  %4881 = vmatprep.subr.bf16.mxu1 %v5347_v25 }
 0xa9c   :  { %4854 = vmatpush1.bf16.msra.mxu0 %v6030_v19  ;;  %4883 = vmatpush3.bf16.msra.mxu1 %v6073_v36 }
 0xa9d   :  { %4856 = vmatprep.subr.bf16.mxu0 %v6034_v33  ;;  %4884 = vmatprep.subr.bf16.mxu1 %v5347_v25 }
 0xaa0   :  { %4858 = vmatpush1.bf16.msra.mxu0 %v6036_v41  ;;  %4886 = vmatpush3.bf16.msra.mxu1 %v6076_v42 }
 0xaa1   :  { %4860 = vmatprep.subr.bf16.mxu0 %v6040_v54  ;;  %4887 = vmatprep.subr.bf16.mxu1 %v5347_v25 }
 0xaa4   :  { %4862 = vmatpush1.bf16.msra.mxu0 %v6042_v62  ;;  %4889 = vmatpush3.bf16.msra.mxu1 %v6080_v17 }
 0xaa5   :  { %4864 = vmatprep.subr.bf16.mxu0 %v6046_v10  ;;  %4890 = vmatprep.subr.bf16.mxu1 %v5347_v25 }
 0xaa8   :  { %4866 = vmatpush1.bf16.msra.mxu0 %v6048_v22  ;;  %4892 = vmatpush3.bf16.msra.mxu1 %v6084_v45 }
 0xaa9   :  { %4868 = vmatprep.subr.bf16.mxu0 %v6052_v7  ;;  %4893 = vmatprep.subr.bf16.mxu1 %v5347_v25 }
 0xaac   :  { %4870 = vmatpush1.bf16.msra.mxu0 %v6054_v51  ;;  %4895 = vmatpush3.bf16.msra.mxu1 %v6088_v26 }
 0xaad   :  { %4872 = vmatprep.subr.bf16.mxu0 %v6061_v39  ;;  %4896 = vmatprep.subr.bf16.mxu1 %v5347_v25 }
 0xab0   :  { %4874 = vmatpush1.bf16.msra.mxu0 %v6063_v32  ;;  %4898 = vmatpush3.bf16.msra.mxu1 %v6092_v40 }
 0xab1   :  { %4900 = vmatprep.subr.bf16.mxu0 %v6016_v35  ;;  %4931 = vmatprep.subr.bf16.mxu1 %v5347_v25 }
 0xb66   :  { %v2535_v46 = vpop.f32.mrb[20].mxu0  ;;  %v2606_v24 = vpop.f32.mrb[62].mxu1 }
 0xb67   :  { %v5069_v52 = vadd.f32 %v2535_v46, %v6163_v55  ;;  %v2537_v9 = vpop.f32.mrb[21].mxu0  ;;  %v4030_v58 = vpop.f32.mrb[63].mxu1  ;;  %v2624_v48 = vadd.f32 %v6174_v11, %v2606_v24 }
 0xb68   :  { %v5070_v49 = vadd.f32 %v2537_v9, %v6167_v6 }
 0xb69   :  { %v3275_v60 = vmul.f32 -1.442695, %v5069_v52 }
 0xb6a   :  { %v3276_v12 = vmul.f32 -1.442695, %v5070_v49 }
 0xb6b   :  { %5203 = vpow2.f32 %v3275_v60  ;;  %v1926_v60 = vadd.f32 %v6112_v13, %v6178_v44  ;;  %v3135_v13 = vld [vmem:[#allocation10] sm:$0xff] }
 0xb6c   :  { %5205 = vpow2.f32 %v3276_v12 }
 0xb75   :  { %v5204_v53 = vpop.eup %5203 }
 0xb76   :  { %v2618_v56 = vadd.f32 1.0, %v5204_v53  ;;  %v5206_v16 = vpop.eup %5205 }
 0xb77   :  { %v2619_v34 = vadd.f32 1.0, %v5206_v16 }
 0xb78   :  { %5207 = vrcp.f32 %v2618_v56 }
 0xb79   :  { %5209 = vrcp.f32 %v2619_v34 }
 0xb82   :  { %v5208_v30 = vpop.eup %5207 }
 0xb83   :  { %v2625_v37 = vmul.f32 %v5208_v30, %v2624_v48  ;;  %v5210_v2 = vpop.eup %5209 }
 0xb84   :  { %v2628_v14 = vsub.f32 1.0, %v5210_v2  ;;  %v2630_v3 = vmul.f32 %v5210_v2, %v6273_v23 }
 0xb85   :  { %v2626_v61 = vadd.f32 %v2625_v37, %v1921_v15  ;;  %v3137_v37 = vld [vmem:[#allocation10 + $0x10] sm:$0xff] }
 0xb87   :  { %5211 = vtanh.f32 %v2626_v61  ;;  %v3138_v61 = vld [vmem:[#allocation10 + $0x18] sm:$0xff] }
 0xb88   :  { %v5015_v2 = vpack.c.bf16 %v3138_v61, %v3137_v37 }
 0xb91   :  { %v5212_v18 = vpop.eup %5211 }
 0xb92   :  { %v2629_v28 = vmul.f32 %v5212_v18, %v2628_v14  ;;  %v3139_v14 = vld [vmem:[#allocation10 + $0x20] sm:$0xff]  ;;  %v3140_v18 = vld [vmem:[#allocation10 + $0x28] sm:$0xff] }
 0xb94   :  { %v6318_v21 = vadd.f32 %v2630_v3, %v2629_v28  ;;  %v5018_v28 = vpack.c.bf16 %v3140_v18, %v3139_v14  ;;  %v3141_v3 = vld [vmem:[#allocation10 + $0x30] sm:$0xff] }
 0xb96   :  { %2700 = vmatmul.mubr.f32.vlgmr.msra.gmra.mrb[22].mxu0 %v6318_v21  ;;  %4064 = vmatmul.mubr.f32.vlgmr.msra.gmra.mrb[64].mxu1 %v6318_v21 }
 0xb97   :  { %4902 = vmatpush1.bf16.msra.mxu0 %v6018_v5  ;;  %4933 = vmatpush3.bf16.msra.mxu1 %v6057_v4 }
 0xb98   :  { %4904 = vmatprep.subr.bf16.mxu0 %v6022_v59  ;;  %4934 = vmatprep.subr.bf16.mxu1 %v5347_v25 }
 0xb99   :  { %2865 = vmatprep.mubr.f32.mxu0 %v5346_v0  ;;  %4098 = vmatprep.mubr.msk.f32.mxu1 %vm5348_vm2, %v5346_v0 }
 0xb9b   :  { %4906 = vmatpush1.bf16.msra.mxu0 %v6024_v63  ;;  %4936 = vmatpush3.bf16.msra.mxu1 %v6067_v29 }
 0xb9c   :  { %4908 = vmatprep.subr.bf16.mxu0 %v6028_v8  ;;  %4937 = vmatprep.subr.bf16.mxu1 %v5347_v25 }
 0xb9f   :  { %4910 = vmatpush1.bf16.msra.mxu0 %v6030_v19  ;;  %4939 = vmatpush3.bf16.msra.mxu1 %v6073_v36 }
 0xba0   :  { %4912 = vmatprep.subr.bf16.mxu0 %v6034_v33  ;;  %4940 = vmatprep.subr.bf16.mxu1 %v5347_v25 }
 0xba3   :  { %4914 = vmatpush1.bf16.msra.mxu0 %v6036_v41  ;;  %4942 = vmatpush3.bf16.msra.mxu1 %v6076_v42 }
 0xba4   :  { %4916 = vmatprep.subr.bf16.mxu0 %v6040_v54  ;;  %4943 = vmatprep.subr.bf16.mxu1 %v5347_v25 }
 0xba7   :  { %4918 = vmatpush1.bf16.msra.mxu0 %v6042_v62  ;;  %4945 = vmatpush3.bf16.msra.mxu1 %v6080_v17 }
 0xba8   :  { %4920 = vmatprep.subr.bf16.mxu0 %v6046_v10  ;;  %4946 = vmatprep.subr.bf16.mxu1 %v5347_v25 }
 0xbab   :  { %4922 = vmatpush1.bf16.msra.mxu0 %v6048_v22  ;;  %4948 = vmatpush3.bf16.msra.mxu1 %v6084_v45 }
 0xbac   :  { %4924 = vmatprep.subr.bf16.mxu0 %v6052_v7  ;;  %4949 = vmatprep.subr.bf16.mxu1 %v5347_v25 }
 0xbaf   :  { %4926 = vmatpush1.bf16.msra.mxu0 %v6054_v51  ;;  %4951 = vmatpush3.bf16.msra.mxu1 %v6088_v26 }
 0xbb0   :  { %4928 = vmatprep.subr.bf16.mxu0 %v6061_v39  ;;  %4952 = vmatprep.subr.bf16.mxu1 %v5347_v25 }
 0xbb3   :  { %4930 = vmatpush1.bf16.msra.mxu0 %v6063_v32  ;;  %4954 = vmatpush3.bf16.msra.mxu1 %v6092_v40 }
 0xbb4   :  { %4956 = vmatprep.subr.bf16.mxu0 %v6016_v35  ;;  %4987 = vmatprep.subr.bf16.mxu1 %v5347_v25 }
 0xc69   :  { %v2701_v43 = vpop.f32.mrb[22].mxu0  ;;  %v2772_v57 = vpop.f32.mrb[64].mxu1 }
 0xc6a   :  { %v5071_v1 = vadd.f32 %v2701_v43, %v6163_v55  ;;  %v2703_v38 = vpop.f32.mrb[23].mxu0  ;;  %v4065_v50 = vpop.f32.mrb[65].mxu1  ;;  %v2790_v35 = vadd.f32 %v6174_v11, %v2772_v57  ;;  %v3143_v43 = vld [vmem:[#allocation10 + $0x40] sm:$0xff]  ;;  %v3144_v57 = vld [vmem:[#allocation10 + $0x48] sm:$0xff] }
 0xc6b   :  { %v5072_v20 = vadd.f32 %v2703_v38, %v6167_v6  ;;  %v3145_v38 = vld [vmem:[#allocation10 + $0x50] sm:$0xff]  ;;  %v3146_v50 = vld [vmem:[#allocation10 + $0x58] sm:$0xff] }
 0xc6c   :  { %v3277_v31 = vmul.f32 -1.442695, %v5071_v1  ;;  %v5024_v1 = vpack.c.bf16 %v3144_v57, %v3143_v43 }
 0xc6d   :  { %v3278_v23 = vmul.f32 -1.442695, %v5072_v20  ;;  %v3147_v20 = vld [vmem:[#allocation10 + $0x60] sm:$0xff] }
 0xc6e   :  { %5213 = vpow2.f32 %v3277_v31  ;;  %v5027_v31 = vpack.c.bf16 %v3146_v50, %v3145_v38 }
 0xc6f   :  { %5215 = vpow2.f32 %v3278_v23  ;;  %v3148_v23 = vld [vmem:[#allocation10 + $0x68] sm:$0xff] }
 0xc78   :  { %v5214_v46 = vpop.eup %5213 }
 0xc79   :  { %v2784_v24 = vadd.f32 1.0, %v5214_v46  ;;  %v5216_v52 = vpop.eup %5215  ;;  %v5030_v46 = vpack.c.bf16 %v3148_v23, %v3147_v20 }
 0xc7a   :  { %v2785_v9 = vadd.f32 1.0, %v5216_v52  ;;  %v3150_v52 = vld [vmem:[#allocation10 + $0x78] sm:$0xff] }
 0xc7b   :  { %5217 = vrcp.f32 %v2784_v24  ;;  %v3149_v24 = vld [vmem:[#allocation10 + $0x70] sm:$0xff] }
 0xc7c   :  { %5219 = vrcp.f32 %v2785_v9  ;;  %v5033_v9 = vpack.c.bf16 %v3150_v52, %v3149_v24 }
 0xc85   :  { %v5218_v58 = vpop.eup %5217 }
 0xc86   :  { %v2791_v49 = vmul.f32 %v5218_v58, %v2790_v35  ;;  %v5220_v53 = vpop.eup %5219 }
 0xc87   :  { %v2794_v56 = vsub.f32 1.0, %v5220_v53  ;;  %v2796_v48 = vmul.f32 %v5220_v53, %v6318_v21 }
 0xc88   :  { %v2792_v12 = vadd.f32 %v2791_v49, %v1926_v60 }
 0xc8a   :  { %5221 = vtanh.f32 %v2792_v12 }
 0xc94   :  { %v5222_v16 = vpop.eup %5221 }
 0xc95   :  { %v2795_v34 = vmul.f32 %v5222_v16, %v2794_v56 }
 0xc97   :  { %v2797_v30 = vadd.f32 %v2796_v48, %v2795_v34 }
 0xc99   :  { %2866 = vmatmul.mubr.f32.vlgmr.msra.gmra.mrb[24].mxu0 %v2797_v30  ;;  %4099 = vmatmul.mubr.f32.vlgmr.msra.gmra.mrb[66].mxu1 %v2797_v30 }
 0xc9a   :  { %4958 = vmatpush1.bf16.msra.mxu0 %v6018_v5  ;;  %4989 = vmatpush3.bf16.msra.mxu1 %v6057_v4 }
 0xc9b   :  { %4960 = vmatprep.subr.bf16.mxu0 %v6022_v59  ;;  %4990 = vmatprep.subr.bf16.mxu1 %v5347_v25 }
 0xc9c   :  { %3031 = vmatprep.mubr.f32.mxu0 %v5346_v0  ;;  %4133 = vmatprep.mubr.msk.f32.mxu1 %vm5348_vm2, %v5346_v0 }
 0xc9e   :  { %4962 = vmatpush1.bf16.msra.mxu0 %v6024_v63  ;;  %4992 = vmatpush3.bf16.msra.mxu1 %v6067_v29 }
 0xc9f   :  { %4964 = vmatprep.subr.bf16.mxu0 %v6028_v8  ;;  %4993 = vmatprep.subr.bf16.mxu1 %v5347_v25 }
 0xca2   :  { %4966 = vmatpush1.bf16.msra.mxu0 %v6030_v19  ;;  %4995 = vmatpush3.bf16.msra.mxu1 %v6073_v36 }
 0xca3   :  { %4968 = vmatprep.subr.bf16.mxu0 %v6034_v33  ;;  %4996 = vmatprep.subr.bf16.mxu1 %v5347_v25 }
 0xca6   :  { %4970 = vmatpush1.bf16.msra.mxu0 %v6036_v41  ;;  %4998 = vmatpush3.bf16.msra.mxu1 %v6076_v42 }
 0xca7   :  { %4972 = vmatprep.subr.bf16.mxu0 %v6040_v54  ;;  %4999 = vmatprep.subr.bf16.mxu1 %v5347_v25 }
 0xcaa   :  { %4974 = vmatpush1.bf16.msra.mxu0 %v6042_v62  ;;  %5001 = vmatpush3.bf16.msra.mxu1 %v6080_v17 }
 0xcab   :  { %4976 = vmatprep.subr.bf16.mxu0 %v6046_v10  ;;  %5002 = vmatprep.subr.bf16.mxu1 %v5347_v25 }
 0xcae   :  { %4978 = vmatpush1.bf16.msra.mxu0 %v6048_v22  ;;  %5004 = vmatpush3.bf16.msra.mxu1 %v6084_v45 }
 0xcaf   :  { %4980 = vmatprep.subr.bf16.mxu0 %v6052_v7  ;;  %5005 = vmatprep.subr.bf16.mxu1 %v5347_v25 }
 0xcb2   :  { %4982 = vmatpush1.bf16.msra.mxu0 %v6054_v51  ;;  %5007 = vmatpush3.bf16.msra.mxu1 %v6088_v26 }
 0xcb3   :  { %4984 = vmatprep.subr.bf16.mxu0 %v6061_v39  ;;  %5008 = vmatprep.subr.bf16.mxu1 %v5347_v25  ;;  %v1931_v39 = vadd.f32 %v6117_v27, %v6178_v44  ;;  %v3136_v27 = vld [vmem:[#allocation10 + $0x8] sm:$0xff] }
 0xcb4   :  { %v5012_v15 = vpack.c.bf16 %v3136_v27, %v3135_v13 }
 0xcb6   :  { %4986 = vmatpush1.bf16.msra.mxu0 %v6063_v32  ;;  %5010 = vmatpush3.bf16.msra.mxu1 %v6092_v40 }
 0xcb7   :  { %5011 = vmatprep.subr.bf16.mxu0 %v5347_v25 }
 0xd6c   :  { %v2867_v5 = vpop.f32.mrb[24].mxu0  ;;  %v2938_v59 = vpop.f32.mrb[66].mxu1 }
 0xd6d   :  { %v5073_v63 = vadd.f32 %v2867_v5, %v6163_v55  ;;  %v2869_v8 = vpop.f32.mrb[25].mxu0  ;;  %v4100_v19 = vpop.f32.mrb[67].mxu1  ;;  %v2956_v51 = vadd.f32 %v6174_v11, %v2938_v59 }
 0xd6e   :  { %v5074_v41 = vadd.f32 %v2869_v8, %v6167_v6 }
 0xd6f   :  { %v3279_v33 = vmul.f32 -1.442695, %v5073_v63  ;;  %v1936_v63 = vadd.f32 %v6159_v47, %v6178_v44 }
 0xd70   :  { %v3280_v54 = vmul.f32 -1.442695, %v5074_v41 }
 0xd71   :  { %5223 = vpow2.f32 %v3279_v33 }
 0xd72   :  { %5225 = vpow2.f32 %v3280_v54 }
 0xd7b   :  { %v5224_v62 = vpop.eup %5223 }
 0xd7c   :  { %v2950_v10 = vadd.f32 1.0, %v5224_v62  ;;  %v5226_v22 = vpop.eup %5225 }
 0xd7d   :  { %v2951_v7 = vadd.f32 1.0, %v5226_v22 }
 0xd7e   :  { %5227 = vrcp.f32 %v2950_v10 }
 0xd7f   :  { %5229 = vrcp.f32 %v2951_v7 }
 0xd88   :  { %v5228_v4 = vpop.eup %5227 }
 0xd89   :  { %v2957_v32 = vmul.f32 %v5228_v4, %v2956_v51  ;;  %v5230_v36 = vpop.eup %5229 }
 0xd8a   :  { %v2960_v42 = vsub.f32 1.0, %v5230_v36  ;;  %v2962_v26 = vmul.f32 %v5230_v36, %v2797_v30 }
 0xd8b   :  { %v2958_v29 = vadd.f32 %v2957_v32, %v1931_v39 }
 0xd8d   :  { %5231 = vtanh.f32 %v2958_v29 }
 0xd97   :  { %v5232_v17 = vpop.eup %5231 }
 0xd98   :  { %v2961_v45 = vmul.f32 %v5232_v17, %v2960_v42 }
 0xd9a   :  { %v6402_v40 = vadd.f32 %v2962_v26, %v2961_v45 }
 0xd9c   :  { %3032 = vmatmul.mubr.f32.vlgmr.msra.gmra.mrb[26].mxu0 %v6402_v40  ;;  %4134 = vmatmul.mubr.f32.vlgmr.msra.gmra.mrb[68].mxu1 %v6402_v40 }
 0xd9d   :  { %4168 = vmatprep.mubr.msk.f32.mxu0 %vm5348_vm2, %v5346_v0  ;;  %5013 = vmatpush3.bf16.msra.mxu0 %v5012_v15  ;;  %v3142_v0 = vld [vmem:[#allocation10 + $0x38] sm:$0xff] }
 0xd9e   :  { %5014 = vmatprep.subr.bf16.mxu0 %v5347_v25  ;;  %v5021_v21 = vpack.c.bf16 %v3142_v0, %v3141_v3 }
 0xda1   :  { %5016 = vmatpush3.bf16.msra.mxu0 %v5015_v2 }
 0xda2   :  { %5017 = vmatprep.subr.bf16.mxu0 %v5347_v25 }
 0xda5   :  { %5019 = vmatpush3.bf16.msra.mxu0 %v5018_v28 }
 0xda6   :  { %5020 = vmatprep.subr.bf16.mxu0 %v5347_v25 }
 0xda9   :  { %5022 = vmatpush3.bf16.msra.mxu0 %v5021_v21 }
 0xdaa   :  { %5023 = vmatprep.subr.bf16.mxu0 %v5347_v25 }
 0xdad   :  { %5025 = vmatpush3.bf16.msra.mxu0 %v5024_v1 }
 0xdae   :  { %5026 = vmatprep.subr.bf16.mxu0 %v5347_v25 }
 0xdb1   :  { %5028 = vmatpush3.bf16.msra.mxu0 %v5027_v31 }
 0xdb2   :  { %5029 = vmatprep.subr.bf16.mxu0 %v5347_v25 }
 0xdb5   :  { %5031 = vmatpush3.bf16.msra.mxu0 %v5030_v46 }
 0xdb6   :  { %5032 = vmatprep.subr.bf16.mxu0 %v5347_v25 }
 0xdb9   :  { %5034 = vmatpush3.bf16.msra.mxu0 %v5033_v9 }
 0xe6f   :  { %v3033_v35 = vpop.f32.mrb[26].mxu0  ;;  %v3104_v58 = vpop.f32.mrb[68].mxu1 }
 0xe70   :  { %v5075_v60 = vadd.f32 %v3033_v35, %v6163_v55  ;;  %v3035_v49 = vpop.f32.mrb[27].mxu0  ;;  %v4135_v12 = vpop.f32.mrb[69].mxu1  ;;  %v3122_v25 = vadd.f32 %v6174_v11, %v3104_v58  ;;  %v3283_v11 = vld [vmem:[%s6437_s10] ss:$0 sm:$0xff] }
 0xe71   :  { %v5076_v56 = vadd.f32 %v3035_v49, %v6167_v6 }
 0xe72   :  { %v3281_v53 = vmul.f32 -1.442695, %v5075_v60 }
 0xe73   :  { %v3282_v16 = vmul.f32 -1.442695, %v5076_v56 }
 0xe74   :  { %5233 = vpow2.f32 %v3281_v53 }
 0xe75   :  { %5235 = vpow2.f32 %v3282_v16 }
 0xe7e   :  { %v5234_v34 = vpop.eup %5233 }
 0xe7f   :  { %v3116_v48 = vadd.f32 1.0, %v5234_v34  ;;  %v5236_v30 = vpop.eup %5235 }
 0xe80   :  { %v3117_v5 = vadd.f32 1.0, %v5236_v30 }
 0xe81   :  { %5237 = vrcp.f32 %v3116_v48 }
 0xe82   :  { %5239 = vrcp.f32 %v3117_v5 }
 0xe8b   :  { %v5238_v59 = vpop.eup %5237 }
 0xe8c   :  { %v3123_v55 = vmul.f32 %v5238_v59, %v3122_v25  ;;  %v5240_v19 = vpop.eup %5239 }
 0xe8d   :  { %v3126_v6 = vsub.f32 1.0, %v5240_v19  ;;  %v3128_v54 = vmul.f32 %v5240_v19, %v6402_v40 }
 0xe8e   :  { %v3124_v8 = vadd.f32 %v3123_v55, %v1936_v63 }
 0xe90   :  { %5241 = vtanh.f32 %v3124_v8 }
 0xe9a   :  { %v5242_v33 = vpop.eup %5241 }
 0xe9b   :  { %v3127_v41 = vmul.f32 %v5242_v33, %v3126_v6 }
 0xe9d   :  { %v3129_v62 = vadd.f32 %v3128_v54, %v3127_v41 }
 0xe9f   :  { %4169 = vmatmul.mubr.f32.vlgmr.msra.gmra.mrb[28].mxu0 %v3129_v62 }
 0xf72   :  { %v3224_v10 = vpop.f32.mrb[28].mxu0 }
 0xf73   :  { %v3225_v22 = vadd.f32 %v3283_v11, %v3224_v10  ;;  %v4170_v7 = vpop.f32.mrb[29].mxu0 }
 0xf75   :  { %3228 = vst [vmem:[%s6438_s11] sm:$0xff] %v3225_v22 }
 0xf76   :  { %3233 = vsyncpa [#allocation6], 1 }
 0xf77   :  { %3234 = vsyncpa [#allocation8], 1 }
 0xf78   :  { %3235 = vsyncpa [#allocation11], 1 }

</bundles_post_ra>
